<compile_context>
chip_gen: v5e
topology: v5e:2x2
jax: 0.10.0
libtpu: 0.0.40
codegen_flags: <defaults>
</compile_context>

<pallas_src>
import functools
import math

import jax
import jax.numpy as jnp
import numpy as np
from jax import lax
from jax.experimental import pallas as pl
from jax.experimental.pallas import tpu as pltpu

LANE = 128
NEG_BIG = -1e30          # finite "minus infinity" for masked softmax lanes


def _round_up(n, m):
    return ((n + m - 1) // m) * m


def _pad2(a, rows, cols):
    return jnp.pad(a, ((0, rows - a.shape[0]), (0, cols - a.shape[1])))


def _vmem_limit_bytes():
    # Generation-aware VMEM budget: ~80% of physical capacity with headroom,
    # capped at 100 MiB (v5e/v6e have 128 MiB, v7x has 64 MiB per TensorCore).
    try:
        cap = int(getattr(pltpu.get_tpu_info(), "vmem_capacity_bytes", 0))
    except Exception:
        cap = 0
    if cap <= 0:
        cap = 64 * 1024 * 1024
    return min(int(cap * 0.8), 100 * 1024 * 1024)


# ----------------------------------------------------------------------------
# Kernel 1: intermediate fused SAGEConv('mean') + folded-BN + ReLU layer.
# grid = (row_tiles, kmax); k walks the COMPACTED list of nonzero A blocks.
# ----------------------------------------------------------------------------
def _sage_layer_kernel(cnt_ref, cols_ref, a_ref, xk_ref, xrow_ref, invdeg_ref,
                       wself_ref, wneigh_ref, shift_ref, o_ref, acc_ref):
    i = pl.program_id(0)
    k = pl.program_id(1)

    @pl.when(k == 0)
    def _():
        acc_ref[...] = jnp.zeros_like(acc_ref)

    # Only the first cnt[i] grid steps correspond to real nonzero A blocks;
    # padding steps reuse the previous block index (no DMA) and skip compute.
    @pl.when(k < cnt_ref[i])
    def _():
        acc_ref[...] += jnp.dot(a_ref[...], xk_ref[...],
                                preferred_element_type=jnp.float32)

    @pl.when(k == pl.num_programs(1) - 1)
    def _():
        # mean = (0/1-adjacency @ X) * (1/indeg), scale applied in f32.
        neigh = (acc_ref[...] * invdeg_ref[...]).astype(jnp.bfloat16)
        h = jnp.dot(xrow_ref[...], wself_ref[...],
                    preferred_element_type=jnp.float32)
        h = h + jnp.dot(neigh, wneigh_ref[...],
                        preferred_element_type=jnp.float32)
        h = h + shift_ref[...]               # folded bias + BN shift
        o_ref[...] = jnp.maximum(h, 0.0).astype(o_ref.dtype)


def sage_layer(adj, x, cnt, cols, invdeg, wself, wneigh, shift, *, tm, tk):
    Np = adj.shape[0]
    Fin = x.shape[1]
    Fout = wself.shape[1]
    R = Np // tm
    kmax = cols.shape[0] // R

    def a_map(i, k, cnt_r, cols_r):
        return (i, cols_r[i * kmax + k])

    def xk_map(i, k, cnt_r, cols_r):
        return (cols_r[i * kmax + k], 0)

    def row_map(i, k, cnt_r, cols_r):
        return (i, 0)

    def const_map(i, k, cnt_r, cols_r):
        return (0, 0)

    return pl.pallas_call(
        _sage_layer_kernel,
        out_shape=jax.ShapeDtypeStruct((Np, Fout), jnp.bfloat16),
        grid_spec=pltpu.PrefetchScalarGridSpec(
            num_scalar_prefetch=2,
            grid=(R, kmax),
            in_specs=[
                pl.BlockSpec((tm, tk), a_map),          # 0/1 adjacency tile
                pl.BlockSpec((tk, Fin), xk_map),        # X k-tile (nonzero blocks only)
                pl.BlockSpec((tm, Fin), row_map),       # X row-tile (self features)
                pl.BlockSpec((tm, 1), row_map),         # 1/indeg per row (f32)
                pl.BlockSpec((Fin, Fout), const_map),   # W_self  * BN scale
                pl.BlockSpec((Fin, Fout), const_map),   # W_neigh * BN scale
                pl.BlockSpec((1, Fout), const_map),     # folded bias + BN shift
            ],
            out_specs=pl.BlockSpec((tm, Fout), row_map),
            scratch_shapes=[pltpu.VMEM((tm, Fin), jnp.float32)],
        ),
        compiler_params=pltpu.CompilerParams(
            dimension_semantics=("parallel", "arbitrary"),
            vmem_limit_bytes=_vmem_limit_bytes()),
    )(cnt, cols, adj, x, x, invdeg, wself, wneigh, shift)


# ----------------------------------------------------------------------------
# Kernel 2: last SAGE layer fused with the MLP head
# (SAGEConv + BN + ReLU -> Linear + folded-BN -> ReLU -> Linear -> log_softmax)
# ----------------------------------------------------------------------------
def _sage_last_head_kernel(cnt_ref, cols_ref, a_ref, xk_ref, xrow_ref,
                           invdeg_ref, wself_ref, wneigh_ref, shift_ref,
                           w1_ref, shift1_ref, w2_ref, b2_ref,
                           o_ref, acc_ref, *, n_classes):
    i = pl.program_id(0)
    k = pl.program_id(1)

    @pl.when(k == 0)
    def _():
        acc_ref[...] = jnp.zeros_like(acc_ref)

    @pl.when(k < cnt_ref[i])
    def _():
        acc_ref[...] += jnp.dot(a_ref[...], xk_ref[...],
                                preferred_element_type=jnp.float32)

    @pl.when(k == pl.num_programs(1) - 1)
    def _():
        neigh = (acc_ref[...] * invdeg_ref[...]).astype(jnp.bfloat16)
        h = jnp.dot(xrow_ref[...], wself_ref[...],
                    preferred_element_type=jnp.float32)
        h = h + jnp.dot(neigh, wneigh_ref[...],
                        preferred_element_type=jnp.float32)
        h = jnp.maximum(h + shift_ref[...], 0.0)

        # MLP head. TODO(synk): Dropout(p) omitted — eval-mode identity.
        h1 = jnp.dot(h.astype(jnp.bfloat16), w1_ref[...],
                     preferred_element_type=jnp.float32)
        h1 = jnp.maximum(h1 + shift1_ref[...], 0.0)
        logits = jnp.dot(h1.astype(jnp.bfloat16), w2_ref[...],
                         preferred_element_type=jnp.float32)
        logits = logits + b2_ref[...]

        # masked, numerically stable log_softmax over the lane-padded classes
        # (classes padded to exactly one 128-lane vreg, so no wasted vregs).
        lane = lax.broadcasted_iota(jnp.int32, logits.shape, 1)
        valid = lane < n_classes
        logits = jnp.where(valid, logits, NEG_BIG)
        m = jnp.max(logits, axis=-1, keepdims=True)
        s = logits - m
        e = jnp.where(valid, jnp.exp(s), 0.0)
        lse = jnp.log(jnp.sum(e, axis=-1, keepdims=True))
        o_ref[...] = s - lse


def sage_last_with_head(adj, x, cnt, cols, invdeg, wself, wneigh, shift,
                        w1, shift1, w2, b2, *, tm, tk, n_classes):
    Np = adj.shape[0]
    Fin = x.shape[1]
    H = wself.shape[1]
    Cp = w2.shape[1]
    R = Np // tm
    kmax = cols.shape[0] // R
    kernel = functools.partial(_sage_last_head_kernel, n_classes=n_classes)

    def a_map(i, k, cnt_r, cols_r):
        return (i, cols_r[i * kmax + k])

    def xk_map(i, k, cnt_r, cols_r):
        return (cols_r[i * kmax + k], 0)

    def row_map(i, k, cnt_r, cols_r):
        return (i, 0)

    def const_map(i, k, cnt_r, cols_r):
        return (0, 0)

    return pl.pallas_call(
        kernel,
        out_shape=jax.ShapeDtypeStruct((Np, Cp), jnp.float32),
        grid_spec=pltpu.PrefetchScalarGridSpec(
            num_scalar_prefetch=2,
            grid=(R, kmax),
            in_specs=[
                pl.BlockSpec((tm, tk), a_map),
                pl.BlockSpec((tk, Fin), xk_map),
                pl.BlockSpec((tm, Fin), row_map),
                pl.BlockSpec((tm, 1), row_map),
                pl.BlockSpec((Fin, H), const_map),
                pl.BlockSpec((Fin, H), const_map),
                pl.BlockSpec((1, H), const_map),
                pl.BlockSpec((H, H), const_map),
                pl.BlockSpec((1, H), const_map),
                pl.BlockSpec((H, Cp), const_map),
                pl.BlockSpec((1, Cp), const_map),
            ],
            out_specs=pl.BlockSpec((tm, Cp), row_map),
            scratch_shapes=[pltpu.VMEM((tm, Fin), jnp.float32)],
        ),
        compiler_params=pltpu.CompilerParams(
            dimension_semantics=("parallel", "arbitrary"),
            vmem_limit_bytes=_vmem_limit_bytes()),
    )(cnt, cols, adj, x, x, invdeg, wself, wneigh, shift, w1, shift1, w2, b2)


# ----------------------------------------------------------------------------
# Host-side parameter construction, BN/bias folding, padding, bf16 casting.
# ----------------------------------------------------------------------------
def fold_bn(gamma, beta, rmean, rvar, eps=1e-5):
    scale = gamma / jnp.sqrt(rvar + eps)
    shift = beta - rmean * scale
    return scale, shift


def make_raw_params(key, in_feats, n_hidden, n_classes, n_layers):
    layers = []
    dims = [in_feats] + [n_hidden] * n_layers
    for l in range(n_layers):
        fin, fout = dims[l], dims[l + 1]
        key, *ks = jax.random.split(key, 8)
        layers.append(dict(
            wself=0.1 * jax.random.normal(ks[0], (fin, fout), jnp.float32),
            wneigh=0.1 * jax.random.normal(ks[1], (fin, fout), jnp.float32),
            bias=0.1 * jax.random.normal(ks[2], (fout,), jnp.float32),
            gamma=1.0 + 0.1 * jax.random.normal(ks[3], (fout,), jnp.float32),
            beta=0.1 * jax.random.normal(ks[4], (fout,), jnp.float32),
            rmean=0.1 * jax.random.normal(ks[5], (fout,), jnp.float32),
            rvar=0.5 + jax.random.uniform(ks[6], (fout,), jnp.float32),
        ))
    key, *ks = jax.random.split(key, 9)
    mlp = dict(
        w1=0.1 * jax.random.normal(ks[0], (n_hidden, n_hidden), jnp.float32),
        b1=0.1 * jax.random.normal(ks[1], (n_hidden,), jnp.float32),
        gamma=1.0 + 0.1 * jax.random.normal(ks[2], (n_hidden,), jnp.float32),
        beta=0.1 * jax.random.normal(ks[3], (n_hidden,), jnp.float32),
        rmean=0.1 * jax.random.normal(ks[4], (n_hidden,), jnp.float32),
        rvar=0.5 + jax.random.uniform(ks[5], (n_hidden,), jnp.float32),
        w2=0.1 * jax.random.normal(ks[6], (n_hidden, n_classes), jnp.float32),
        b2=0.1 * jax.random.normal(ks[7], (n_classes,), jnp.float32),
    )
    return dict(layers=layers, mlp=mlp)


def prepare_inputs_and_params(adj, x, raw, *, tm, tk, n_hidden, n_classes):
    N = adj.shape[0]
    in_feats = x.shape[1]
    # Np must divide both tm and tk (grid = Np//tm, Np//tk): pad to the lcm so
    # no rows are dropped even if tm != tk are re-tuned per generation.
    lcm = tm * tk // math.gcd(tm, tk)
    Np = _round_up(N, lcm)
    Fin0 = _round_up(in_feats, LANE)
    Hp = _round_up(n_hidden, LANE)
    Cp = _round_up(n_classes, LANE)

    adj_np = np.zeros((Np, Np), np.float32)
    adj_np[:N, :N] = np.asarray(adj, np.float32)
    # NOTE: padded rows/columns of adj are exactly zero.  Padded rows end up
    # with h = relu(shift) != 0 after each layer, which is harmless ONLY
    # because real rows never read them (their adjacency columns are zero and
    # those blocks are skipped).  Keep this invariant if padding changes.

    # Compacted per-row-tile nonzero k-block indices, stored as 1-D SMEM
    # arrays (cnt: length R, cols: length R*kmax) to avoid 2-D SMEM padding.
    R, K = Np // tm, Np // tk
    blk_nz = adj_np.reshape(R, tm, K, tk).sum(axis=(1, 3)) > 0
    cnt_np = blk_nz.sum(axis=1).astype(np.int32)
    kmax = max(int(cnt_np.max()), 1)
    cols_np = np.zeros((R, kmax), np.int32)
    for i in range(R):
        nzi = np.nonzero(blk_nz[i])[0].astype(np.int32)
        if nzi.size:
            cols_np[i, :nzi.size] = nzi
            cols_np[i, nzi.size:] = nzi[-1]   # repeat last idx -> no extra DMA
    cnt = jnp.asarray(cnt_np)
    cols = jnp.asarray(cols_np.reshape(-1))

    indeg = np.maximum(adj_np.sum(axis=1, keepdims=True), 1.0)
    invdeg = jnp.asarray(1.0 / indeg, jnp.float32)           # (Np, 1) f32
    adj_pad = jnp.asarray(adj_np, jnp.bfloat16)               # 0/1, exact in bf16

    x_pad = jnp.zeros((Np, Fin0), jnp.float32).at[:N, :in_feats].set(x)
    x_pad = x_pad.astype(jnp.bfloat16)

    layer_params = []
    fin_p = Fin0
    for lp in raw["layers"]:
        scale, shift = fold_bn(lp["gamma"], lp["beta"], lp["rmean"], lp["rvar"])
        wself = lp["wself"] * scale[None, :]
        wneigh = lp["wneigh"] * scale[None, :]
        shift_f = lp["bias"] * scale + shift
        fout_p = Hp
        layer_params.append(dict(
            wself=_pad2(wself, fin_p, fout_p).astype(jnp.bfloat16),
            wneigh=_pad2(wneigh, fin_p, fout_p).astype(jnp.bfloat16),
            shift=jnp.zeros((1, fout_p), jnp.float32
                            ).at[0, :shift_f.shape[0]].set(shift_f),
        ))
        fin_p = fout_p

    m = raw["mlp"]
    scale1, shift1 = fold_bn(m["gamma"], m["beta"], m["rmean"], m["rvar"])
    w1 = m["w1"] * scale1[None, :]
    shift1_f = m["b1"] * scale1 + shift1
    head_params = dict(
        w1=_pad2(w1, Hp, Hp).astype(jnp.bfloat16),
        shift1=jnp.zeros((1, Hp), jnp.float32).at[0, :n_hidden].set(shift1_f),
        w2=_pad2(m["w2"], Hp, Cp).astype(jnp.bfloat16),
        b2=jnp.zeros((1, Cp), jnp.float32).at[0, :n_classes].set(m["b2"]),
    )
    return adj_pad, x_pad, cnt, cols, invdeg, layer_params, head_params, Np


@functools.partial(jax.jit, static_argnames=("tm", "tk", "n_classes"))
def sage_mlp_forward(adj_pad, x_pad, cnt, cols, invdeg, layer_params,
                     head_params, *, tm, tk, n_classes):
    h = x_pad
    for lp in layer_params[:-1]:
        h = sage_layer(adj_pad, h, cnt, cols, invdeg,
                       lp["wself"], lp["wneigh"], lp["shift"], tm=tm, tk=tk)
    lp = layer_params[-1]
    return sage_last_with_head(adj_pad, h, cnt, cols, invdeg,
                               lp["wself"], lp["wneigh"], lp["shift"],
                               head_params["w1"], head_params["shift1"],
                               head_params["w2"], head_params["b2"],
                               tm=tm, tk=tk, n_classes=n_classes)


# ----------------------------------------------------------------------------
# float64 numpy reference (unfolded, unpadded parameters)
# ----------------------------------------------------------------------------
def sage_mlp_reference(adj, x, raw):
    adj64 = np.asarray(adj, np.float64)
    indeg = np.maximum(adj64.sum(axis=1, keepdims=True), 1.0)
    A64 = adj64 / indeg
    h = np.asarray(x, np.float64)
    for lp in raw["layers"]:
        neigh = A64 @ h
        h = (h @ np.asarray(lp["wself"], np.float64)
             + neigh @ np.asarray(lp["wneigh"], np.float64)
             + np.asarray(lp["bias"], np.float64))
        scale = np.asarray(lp["gamma"], np.float64) / np.sqrt(
            np.asarray(lp["rvar"], np.float64) + 1e-5)
        shift = np.asarray(lp["beta"], np.float64) - np.asarray(
            lp["rmean"], np.float64) * scale
        h = np.maximum(h * scale + shift, 0.0)
    m = raw["mlp"]
    h = h @ np.asarray(m["w1"], np.float64) + np.asarray(m["b1"], np.float64)
    scale = np.asarray(m["gamma"], np.float64) / np.sqrt(
        np.asarray(m["rvar"], np.float64) + 1e-5)
    shift = np.asarray(m["beta"], np.float64) - np.asarray(
        m["rmean"], np.float64) * scale
    h = np.maximum(h * scale + shift, 0.0)
    logits = h @ np.asarray(m["w2"], np.float64) + np.asarray(m["b2"], np.float64)
    mx = logits.max(axis=-1, keepdims=True)
    s = logits - mx
    return s - np.log(np.exp(s).sum(axis=-1, keepdims=True))


if __name__ == "__main__":
    # Small deterministic problem: 512 nodes, in_feats=16, hidden=32, 8 classes,
    # 2 SAGE layers.  256x256 tiles -> grid (2, kmax); one adjacency block is
    # forced to zero so the compacted DMA-skip path is exercised.
    N, IN_FEATS, N_HIDDEN, N_CLASSES, N_LAYERS = 512, 16, 32, 8, 2
    TM = TK = 256   # fills v6e/v7x 256x256 MXU; also fine on v5e (128x128 MXU)

    key = jax.random.PRNGKey(0)
    key, kx, kadj = jax.random.split(key, 3)

    x = jax.random.normal(kx, (N, IN_FEATS), jnp.float32)

    # random directed 0/1 graph, no self loops; zero out block (0, 1) so one
    # (row-tile, k-tile) adjacency block is empty and gets skipped entirely.
    adj = (jax.random.uniform(kadj, (N, N)) < 0.05).astype(jnp.float32)
    adj = adj * (1.0 - jnp.eye(N, dtype=jnp.float32))
    adj = adj.at[:TM, TK:].set(0.0)

    raw = make_raw_params(key, IN_FEATS, N_HIDDEN, N_CLASSES, N_LAYERS)
    (adj_pad, x_pad, cnt, cols, invdeg, layer_params, head_params,
     Np) = prepare_inputs_and_params(adj, x, raw, tm=TM, tk=TK,
                                     n_hidden=N_HIDDEN, n_classes=N_CLASSES)

    out_pad = sage_mlp_forward(adj_pad, x_pad, cnt, cols, invdeg,
                               layer_params, head_params,
                               tm=TM, tk=TK, n_classes=N_CLASSES)
    out_pad = jax.block_until_ready(out_pad)
    out = np.asarray(out_pad)[:N, :N_CLASSES]

    ref = sage_mlp_reference(adj, x, raw)
    # bf16 MXU inputs (f32 accumulation, exact 0/1 adjacency, f32 1/indeg)
    # vs float64 reference -> widened tolerance.
    np.testing.assert_allclose(out, ref, rtol=2e-2, atol=2e-2)
    assert out.shape == (N, N_CLASSES)

    print("KERNEL_OK")
</pallas_src>

<mosaic_0001>
module attributes {stable_mosaic.version = 11 : i64} {
  func.func @_sage_layer_kernel(%arg0: i32, %arg1: i32, %arg2: memref<2xi32, #tpu.memory_space<smem>>, %arg3: memref<4xi32, #tpu.memory_space<smem>>, %arg4: memref<256x256xbf16, #tpu.memory_space<vmem>>, %arg5: memref<256x128xbf16, #tpu.memory_space<vmem>>, %arg6: memref<256x128xbf16, #tpu.memory_space<vmem>>, %arg7: memref<256x1xf32, #tpu.memory_space<vmem>>, %arg8: memref<128x128xbf16, #tpu.memory_space<vmem>>, %arg9: memref<128x128xbf16, #tpu.memory_space<vmem>>, %arg10: memref<1x128xf32, #tpu.memory_space<vmem>>, %arg11: memref<256x128xbf16, #tpu.memory_space<vmem>>, %arg12: memref<256x128xf32, #tpu.memory_space<vmem>>) attributes {dimension_semantics = [#tpu.dimension_semantics<parallel>, #tpu.dimension_semantics<arbitrary>], iteration_bounds = array<i64: 2, 2>, scalar_prefetch = 2 : i64, scratch_operands = 1 : i64, tpu.core_type = #tpu.core_type<tc>, window_params = [{transform_indices = @transform_0, window_bounds = array<i64: 256, 256>}, {transform_indices = @transform_1, window_bounds = array<i64: 256, 128>}, {transform_indices = @transform_2, window_bounds = array<i64: 256, 128>}, {transform_indices = @transform_3, window_bounds = array<i64: 256, 1>}, {pipeline_mode = #tpu.pipeline_mode<synchronous>, transform_indices = @transform_4, window_bounds = array<i64: 128, 128>}, {pipeline_mode = #tpu.pipeline_mode<synchronous>, transform_indices = @transform_5, window_bounds = array<i64: 128, 128>}, {pipeline_mode = #tpu.pipeline_mode<synchronous>, transform_indices = @transform_6, window_bounds = array<i64: 1, 128>}, {transform_indices = @transform_7, window_bounds = array<i64: 256, 128>}]} {
    %c0_i32 = arith.constant 0 : i32
    %0 = arith.cmpi eq, %arg1, %c0_i32 : i32
    %1 = arith.extui %0 : i1 to i32
    %c0_i32_0 = arith.constant 0 : i32
    %2 = arith.cmpi ne, %1, %c0_i32_0 : i32
    scf.if %2 {
      %cst = arith.constant 0.000000e+00 : f32
      %11 = vector.broadcast %cst : f32 to vector<256x128xf32>
      %c0 = arith.constant 0 : index
      %c0_3 = arith.constant 0 : index
      %12 = vector.load %arg12[%c0, %c0_3] : memref<256x128xf32, #tpu.memory_space<vmem>>, vector<256x128xf32>
      tpu.vector_store %arg12[%c0, %c0_3], %11 {strides = array<i32>} : memref<256x128xf32, #tpu.memory_space<vmem>>, vector<256x128xf32>,
    } else {
    }
    %3 = arith.index_cast %arg0 : i32 to index
    %4 = memref.load %arg2[%3] : memref<2xi32, #tpu.memory_space<smem>>
    %5 = arith.cmpi slt, %arg1, %4 : i32
    %6 = arith.extui %5 : i1 to i32
    %c0_i32_1 = arith.constant 0 : i32
    %7 = arith.cmpi ne, %6, %c0_i32_1 : i32
    scf.if %7 {
      %c0 = arith.constant 0 : index
      %c0_3 = arith.constant 0 : index
      %11 = vector.load %arg12[%c0, %c0_3] : memref<256x128xf32, #tpu.memory_space<vmem>>, vector<256x128xf32>
      %c0_4 = arith.constant 0 : index
      %c0_5 = arith.constant 0 : index
      %12 = vector.load %arg4[%c0_4, %c0_5] : memref<256x256xbf16, #tpu.memory_space<vmem>>, vector<256x256xbf16>
      %c0_6 = arith.constant 0 : index
      %c0_7 = arith.constant 0 : index
      %13 = vector.load %arg5[%c0_6, %c0_7] : memref<256x128xbf16, #tpu.memory_space<vmem>>, vector<256x128xbf16>
      %cst = arith.constant dense<0.000000e+00> : vector<256x128xf32>
      %14 = tpu.matmul %12, %13, %cst {dimension_numbers = #tpu.dot_dimension_numbers<[1], [0], [0], [1], [0, 0, 1, 1], [], []>} : vector<256x256xbf16>, vector<256x128xbf16>, vector<256x128xf32> -> vector<256x128xf32>
      %15 = arith.addf %11, %14 : vector<256x128xf32>
      %c0_8 = arith.constant 0 : index
      %c0_9 = arith.constant 0 : index
      %16 = vector.load %arg12[%c0_8, %c0_9] : memref<256x128xf32, #tpu.memory_space<vmem>>, vector<256x128xf32>
      tpu.vector_store %arg12[%c0_8, %c0_9], %15 {strides = array<i32>} : memref<256x128xf32, #tpu.memory_space<vmem>>, vector<256x128xf32>,
    } else {
    }
    %c1_i32 = arith.constant 1 : i32
    %8 = arith.cmpi eq, %arg1, %c1_i32 : i32
    %9 = arith.extui %8 : i1 to i32
    %c0_i32_2 = arith.constant 0 : i32
    %10 = arith.cmpi ne, %9, %c0_i32_2 : i32
    scf.if %10 {
      %c0 = arith.constant 0 : index
      %c0_3 = arith.constant 0 : index
      %11 = vector.load %arg12[%c0, %c0_3] : memref<256x128xf32, #tpu.memory_space<vmem>>, vector<256x128xf32>
      %c0_4 = arith.constant 0 : index
      %c0_5 = arith.constant 0 : index
      %12 = vector.load %arg7[%c0_4, %c0_5] : memref<256x1xf32, #tpu.memory_space<vmem>>, vector<256x1xf32>
      %13 = vector.broadcast %12 : vector<256x1xf32> to vector<256x128xf32>
      %14 = arith.mulf %11, %13 : vector<256x128xf32>
      %15 = arith.truncf %14 : vector<256x128xf32> to vector<256x128xbf16>
      %c0_6 = arith.constant 0 : index
      %c0_7 = arith.constant 0 : index
      %16 = vector.load %arg6[%c0_6, %c0_7] : memref<256x128xbf16, #tpu.memory_space<vmem>>, vector<256x128xbf16>
      %c0_8 = arith.constant 0 : index
      %c0_9 = arith.constant 0 : index
      %17 = vector.load %arg8[%c0_8, %c0_9] : memref<128x128xbf16, #tpu.memory_space<vmem>>, vector<128x128xbf16>
      %cst = arith.constant dense<0.000000e+00> : vector<256x128xf32>
      %18 = tpu.matmul %16, %17, %cst {dimension_numbers = #tpu.dot_dimension_numbers<[1], [0], [0], [1], [0, 0, 1, 1], [], []>} : vector<256x128xbf16>, vector<128x128xbf16>, vector<256x128xf32> -> vector<256x128xf32>
      %c0_10 = arith.constant 0 : index
      %c0_11 = arith.constant 0 : index
      %19 = vector.load %arg9[%c0_10, %c0_11] : memref<128x128xbf16, #tpu.memory_space<vmem>>, vector<128x128xbf16>
      %cst_12 = arith.constant dense<0.000000e+00> : vector<256x128xf32>
      %20 = tpu.matmul %15, %19, %cst_12 {dimension_numbers = #tpu.dot_dimension_numbers<[1], [0], [0], [1], [0, 0, 1, 1], [], []>} : vector<256x128xbf16>, vector<128x128xbf16>, vector<256x128xf32> -> vector<256x128xf32>
      %21 = arith.addf %18, %20 : vector<256x128xf32>
      %c0_13 = arith.constant 0 : index
      %c0_14 = arith.constant 0 : index
      %22 = vector.load %arg10[%c0_13, %c0_14] : memref<1x128xf32, #tpu.memory_space<vmem>>, vector<1x128xf32>
      %23 = vector.broadcast %22 : vector<1x128xf32> to vector<256x128xf32>
      %24 = arith.addf %21, %23 : vector<256x128xf32>
      %cst_15 = arith.constant 0.000000e+00 : f32
      %25 = vector.broadcast %cst_15 : f32 to vector<256x128xf32>
      %26 = arith.maximumf %24, %25 : vector<256x128xf32>
      %27 = arith.truncf %26 : vector<256x128xf32> to vector<256x128xbf16>
      %c0_16 = arith.constant 0 : index
      %c0_17 = arith.constant 0 : index
      %28 = vector.load %arg11[%c0_16, %c0_17] : memref<256x128xbf16, #tpu.memory_space<vmem>>, vector<256x128xbf16>
      tpu.vector_store %arg11[%c0_16, %c0_17], %27 {strides = array<i32>} : memref<256x128xbf16, #tpu.memory_space<vmem>>, vector<256x128xbf16>,
    } else {
    }
    return
  }
  func.func @transform_0(%arg0: i32, %arg1: i32, %arg2: memref<2xi32, #tpu.memory_space<smem>>, %arg3: memref<4xi32, #tpu.memory_space<smem>>) -> (i32, i32) {
    %c2_i32 = arith.constant 2 : i32
    %0 = arith.muli %arg0, %c2_i32 : i32
    %1 = arith.addi %0, %arg1 : i32
    %2 = arith.index_cast %1 : i32 to index
    %3 = memref.load %arg3[%2] : memref<4xi32, #tpu.memory_space<smem>>
    %c0_i32 = arith.constant 0 : i32
    return %arg0, %3 : i32, i32
  }
  func.func @transform_1(%arg0: i32, %arg1: i32, %arg2: memref<2xi32, #tpu.memory_space<smem>>, %arg3: memref<4xi32, #tpu.memory_space<smem>>) -> (i32, i32) {
    %c2_i32 = arith.constant 2 : i32
    %0 = arith.muli %arg0, %c2_i32 : i32
    %1 = arith.addi %0, %arg1 : i32
    %2 = arith.index_cast %1 : i32 to index
    %3 = memref.load %arg3[%2] : memref<4xi32, #tpu.memory_space<smem>>
    %c0_i32 = arith.constant 0 : i32
    %c0_i32_0 = arith.constant 0 : i32
    return %3, %c0_i32 : i32, i32
  }
  func.func @transform_2(%arg0: i32, %arg1: i32, %arg2: memref<2xi32, #tpu.memory_space<smem>>, %arg3: memref<4xi32, #tpu.memory_space<smem>>) -> (i32, i32) {
    %c0_i32 = arith.constant 0 : i32
    %c0_i32_0 = arith.constant 0 : i32
    return %arg0, %c0_i32 : i32, i32
  }
  func.func @transform_3(%arg0: i32, %arg1: i32, %arg2: memref<2xi32, #tpu.memory_space<smem>>, %arg3: memref<4xi32, #tpu.memory_space<smem>>) -> (i32, i32) {
    %c0_i32 = arith.constant 0 : i32
    %c0_i32_0 = arith.constant 0 : i32
    return %arg0, %c0_i32 : i32, i32
  }
  func.func @transform_4(%arg0: i32, %arg1: i32, %arg2: memref<2xi32, #tpu.memory_space<smem>>, %arg3: memref<4xi32, #tpu.memory_space<smem>>) -> (i32, i32) {
    %c0_i32 = arith.constant 0 : i32
    %c0_i32_0 = arith.constant 0 : i32
    %c0_i32_1 = arith.constant 0 : i32
    return %c0_i32, %c0_i32_0 : i32, i32
  }
  func.func @transform_5(%arg0: i32, %arg1: i32, %arg2: memref<2xi32, #tpu.memory_space<smem>>, %arg3: memref<4xi32, #tpu.memory_space<smem>>) -> (i32, i32) {
    %c0_i32 = arith.constant 0 : i32
    %c0_i32_0 = arith.constant 0 : i32
    %c0_i32_1 = arith.constant 0 : i32
    return %c0_i32, %c0_i32_0 : i32, i32
  }
  func.func @transform_6(%arg0: i32, %arg1: i32, %arg2: memref<2xi32, #tpu.memory_space<smem>>, %arg3: memref<4xi32, #tpu.memory_space<smem>>) -> (i32, i32) {
    %c0_i32 = arith.constant 0 : i32
    %c0_i32_0 = arith.constant 0 : i32
    %c0_i32_1 = arith.constant 0 : i32
    return %c0_i32, %c0_i32_0 : i32, i32
  }
  func.func @transform_7(%arg0: i32, %arg1: i32, %arg2: memref<2xi32, #tpu.memory_space<smem>>, %arg3: memref<4xi32, #tpu.memory_space<smem>>) -> (i32, i32) {
    %c0_i32 = arith.constant 0 : i32
    %c0_i32_0 = arith.constant 0 : i32
    return %arg0, %c0_i32 : i32, i32
  }
}

module attributes {stable_mosaic.version = 11 : i64} {
  func.func @_sage_last_head_kernel(%arg0: i32, %arg1: i32, %arg2: memref<2xi32, #tpu.memory_space<smem>>, %arg3: memref<4xi32, #tpu.memory_space<smem>>, %arg4: memref<256x256xbf16, #tpu.memory_space<vmem>>, %arg5: memref<256x128xbf16, #tpu.memory_space<vmem>>, %arg6: memref<256x128xbf16, #tpu.memory_space<vmem>>, %arg7: memref<256x1xf32, #tpu.memory_space<vmem>>, %arg8: memref<128x128xbf16, #tpu.memory_space<vmem>>, %arg9: memref<128x128xbf16, #tpu.memory_space<vmem>>, %arg10: memref<1x128xf32, #tpu.memory_space<vmem>>, %arg11: memref<128x128xbf16, #tpu.memory_space<vmem>>, %arg12: memref<1x128xf32, #tpu.memory_space<vmem>>, %arg13: memref<128x128xbf16, #tpu.memory_space<vmem>>, %arg14: memref<1x128xf32, #tpu.memory_space<vmem>>, %arg15: memref<256x128xf32, #tpu.memory_space<vmem>>, %arg16: memref<256x128xf32, #tpu.memory_space<vmem>>) attributes {dimension_semantics = [#tpu.dimension_semantics<parallel>, #tpu.dimension_semantics<arbitrary>], iteration_bounds = array<i64: 2, 2>, scalar_prefetch = 2 : i64, scratch_operands = 1 : i64, tpu.core_type = #tpu.core_type<tc>, window_params = [{transform_indices = @transform_0, window_bounds = array<i64: 256, 256>}, {transform_indices = @transform_1, window_bounds = array<i64: 256, 128>}, {transform_indices = @transform_2, window_bounds = array<i64: 256, 128>}, {transform_indices = @transform_3, window_bounds = array<i64: 256, 1>}, {pipeline_mode = #tpu.pipeline_mode<synchronous>, transform_indices = @transform_4, window_bounds = array<i64: 128, 128>}, {pipeline_mode = #tpu.pipeline_mode<synchronous>, transform_indices = @transform_5, window_bounds = array<i64: 128, 128>}, {pipeline_mode = #tpu.pipeline_mode<synchronous>, transform_indices = @transform_6, window_bounds = array<i64: 1, 128>}, {pipeline_mode = #tpu.pipeline_mode<synchronous>, transform_indices = @transform_7, window_bounds = array<i64: 128, 128>}, {pipeline_mode = #tpu.pipeline_mode<synchronous>, transform_indices = @transform_8, window_bounds = array<i64: 1, 128>}, {pipeline_mode = #tpu.pipeline_mode<synchronous>, transform_indices = @transform_9, window_bounds = array<i64: 128, 128>}, {pipeline_mode = #tpu.pipeline_mode<synchronous>, transform_indices = @transform_10, window_bounds = array<i64: 1, 128>}, {transform_indices = @transform_11, window_bounds = array<i64: 256, 128>}]} {
    %c0_i32 = arith.constant 0 : i32
    %0 = arith.cmpi eq, %arg1, %c0_i32 : i32
    %1 = arith.extui %0 : i1 to i32
    %c0_i32_0 = arith.constant 0 : i32
    %2 = arith.cmpi ne, %1, %c0_i32_0 : i32
    scf.if %2 {
      %cst = arith.constant 0.000000e+00 : f32
      %11 = vector.broadcast %cst : f32 to vector<256x128xf32>
      %c0 = arith.constant 0 : index
      %c0_3 = arith.constant 0 : index
      %12 = vector.load %arg16[%c0, %c0_3] : memref<256x128xf32, #tpu.memory_space<vmem>>, vector<256x128xf32>
      tpu.vector_store %arg16[%c0, %c0_3], %11 {strides = array<i32>} : memref<256x128xf32, #tpu.memory_space<vmem>>, vector<256x128xf32>,
    } else {
    }
    %3 = arith.index_cast %arg0 : i32 to index
    %4 = memref.load %arg2[%3] : memref<2xi32, #tpu.memory_space<smem>>
    %5 = arith.cmpi slt, %arg1, %4 : i32
    %6 = arith.extui %5 : i1 to i32
    %c0_i32_1 = arith.constant 0 : i32
    %7 = arith.cmpi ne, %6, %c0_i32_1 : i32
    scf.if %7 {
      %c0 = arith.constant 0 : index
      %c0_3 = arith.constant 0 : index
      %11 = vector.load %arg16[%c0, %c0_3] : memref<256x128xf32, #tpu.memory_space<vmem>>, vector<256x128xf32>
      %c0_4 = arith.constant 0 : index
      %c0_5 = arith.constant 0 : index
      %12 = vector.load %arg4[%c0_4, %c0_5] : memref<256x256xbf16, #tpu.memory_space<vmem>>, vector<256x256xbf16>
      %c0_6 = arith.constant 0 : index
      %c0_7 = arith.constant 0 : index
      %13 = vector.load %arg5[%c0_6, %c0_7] : memref<256x128xbf16, #tpu.memory_space<vmem>>, vector<256x128xbf16>
      %cst = arith.constant dense<0.000000e+00> : vector<256x128xf32>
      %14 = tpu.matmul %12, %13, %cst {dimension_numbers = #tpu.dot_dimension_numbers<[1], [0], [0], [1], [0, 0, 1, 1], [], []>} : vector<256x256xbf16>, vector<256x128xbf16>, vector<256x128xf32> -> vector<256x128xf32>
      %15 = arith.addf %11, %14 : vector<256x128xf32>
      %c0_8 = arith.constant 0 : index
      %c0_9 = arith.constant 0 : index
      %16 = vector.load %arg16[%c0_8, %c0_9] : memref<256x128xf32, #tpu.memory_space<vmem>>, vector<256x128xf32>
      tpu.vector_store %arg16[%c0_8, %c0_9], %15 {strides = array<i32>} : memref<256x128xf32, #tpu.memory_space<vmem>>, vector<256x128xf32>,
    } else {
    }
    %c1_i32 = arith.constant 1 : i32
    %8 = arith.cmpi eq, %arg1, %c1_i32 : i32
    %9 = arith.extui %8 : i1 to i32
    %c0_i32_2 = arith.constant 0 : i32
    %10 = arith.cmpi ne, %9, %c0_i32_2 : i32
    scf.if %10 {
      %c0 = arith.constant 0 : index
      %c0_3 = arith.constant 0 : index
      %11 = vector.load %arg16[%c0, %c0_3] : memref<256x128xf32, #tpu.memory_space<vmem>>, vector<256x128xf32>
      %c0_4 = arith.constant 0 : index
      %c0_5 = arith.constant 0 : index
      %12 = vector.load %arg7[%c0_4, %c0_5] : memref<256x1xf32, #tpu.memory_space<vmem>>, vector<256x1xf32>
      %13 = vector.broadcast %12 : vector<256x1xf32> to vector<256x128xf32>
      %14 = arith.mulf %11, %13 : vector<256x128xf32>
      %15 = arith.truncf %14 : vector<256x128xf32> to vector<256x128xbf16>
      %c0_6 = arith.constant 0 : index
      %c0_7 = arith.constant 0 : index
      %16 = vector.load %arg6[%c0_6, %c0_7] : memref<256x128xbf16, #tpu.memory_space<vmem>>, vector<256x128xbf16>
      %c0_8 = arith.constant 0 : index
      %c0_9 = arith.constant 0 : index
      %17 = vector.load %arg8[%c0_8, %c0_9] : memref<128x128xbf16, #tpu.memory_space<vmem>>, vector<128x128xbf16>
      %cst = arith.constant dense<0.000000e+00> : vector<256x128xf32>
      %18 = tpu.matmul %16, %17, %cst {dimension_numbers = #tpu.dot_dimension_numbers<[1], [0], [0], [1], [0, 0, 1, 1], [], []>} : vector<256x128xbf16>, vector<128x128xbf16>, vector<256x128xf32> -> vector<256x128xf32>
      %c0_10 = arith.constant 0 : index
      %c0_11 = arith.constant 0 : index
      %19 = vector.load %arg9[%c0_10, %c0_11] : memref<128x128xbf16, #tpu.memory_space<vmem>>, vector<128x128xbf16>
      %cst_12 = arith.constant dense<0.000000e+00> : vector<256x128xf32>
      %20 = tpu.matmul %15, %19, %cst_12 {dimension_numbers = #tpu.dot_dimension_numbers<[1], [0], [0], [1], [0, 0, 1, 1], [], []>} : vector<256x128xbf16>, vector<128x128xbf16>, vector<256x128xf32> -> vector<256x128xf32>
      %21 = arith.addf %18, %20 : vector<256x128xf32>
      %c0_13 = arith.constant 0 : index
      %c0_14 = arith.constant 0 : index
      %22 = vector.load %arg10[%c0_13, %c0_14] : memref<1x128xf32, #tpu.memory_space<vmem>>, vector<1x128xf32>
      %23 = vector.broadcast %22 : vector<1x128xf32> to vector<256x128xf32>
      %24 = arith.addf %21, %23 : vector<256x128xf32>
      %cst_15 = arith.constant 0.000000e+00 : f32
      %25 = vector.broadcast %cst_15 : f32 to vector<256x128xf32>
      %26 = arith.maximumf %24, %25 : vector<256x128xf32>
      %27 = arith.truncf %26 : vector<256x128xf32> to vector<256x128xbf16>
      %c0_16 = arith.constant 0 : index
      %c0_17 = arith.constant 0 : index
      %28 = vector.load %arg11[%c0_16, %c0_17] : memref<128x128xbf16, #tpu.memory_space<vmem>>, vector<128x128xbf16>
      %cst_18 = arith.constant dense<0.000000e+00> : vector<256x128xf32>
      %29 = tpu.matmul %27, %28, %cst_18 {dimension_numbers = #tpu.dot_dimension_numbers<[1], [0], [0], [1], [0, 0, 1, 1], [], []>} : vector<256x128xbf16>, vector<128x128xbf16>, vector<256x128xf32> -> vector<256x128xf32>
      %c0_19 = arith.constant 0 : index
      %c0_20 = arith.constant 0 : index
      %30 = vector.load %arg12[%c0_19, %c0_20] : memref<1x128xf32, #tpu.memory_space<vmem>>, vector<1x128xf32>
      %31 = vector.broadcast %30 : vector<1x128xf32> to vector<256x128xf32>
      %32 = arith.addf %29, %31 : vector<256x128xf32>
      %cst_21 = arith.constant 0.000000e+00 : f32
      %33 = vector.broadcast %cst_21 : f32 to vector<256x128xf32>
      %34 = arith.maximumf %32, %33 : vector<256x128xf32>
      %35 = arith.truncf %34 : vector<256x128xf32> to vector<256x128xbf16>
      %c0_22 = arith.constant 0 : index
      %c0_23 = arith.constant 0 : index
      %36 = vector.load %arg13[%c0_22, %c0_23] : memref<128x128xbf16, #tpu.memory_space<vmem>>, vector<128x128xbf16>
      %cst_24 = arith.constant dense<0.000000e+00> : vector<256x128xf32>
      %37 = tpu.matmul %35, %36, %cst_24 {dimension_numbers = #tpu.dot_dimension_numbers<[1], [0], [0], [1], [0, 0, 1, 1], [], []>} : vector<256x128xbf16>, vector<128x128xbf16>, vector<256x128xf32> -> vector<256x128xf32>
      %c0_25 = arith.constant 0 : index
      %c0_26 = arith.constant 0 : index
      %38 = vector.load %arg14[%c0_25, %c0_26] : memref<1x128xf32, #tpu.memory_space<vmem>>, vector<1x128xf32>
      %39 = vector.broadcast %38 : vector<1x128xf32> to vector<256x128xf32>
      %40 = arith.addf %37, %39 : vector<256x128xf32>
      %41 = tpu.iota {dimensions = array<i32: 1>} : vector<256x128xi32>
      %c8_i32 = arith.constant 8 : i32
      %42 = vector.broadcast %c8_i32 : i32 to vector<256x128xi32>
      %43 = arith.cmpi slt, %41, %42 : vector<256x128xi32>
      %cst_27 = arith.constant -1.000000e+30 : f32
      %44 = vector.broadcast %cst_27 : f32 to vector<256x128xf32>
      %45 = arith.select %43, %40, %44 : vector<256x128xi1>, vector<256x128xf32>
      %cst_28 = arith.constant dense<0xFF800000> : vector<256xf32>
      %46 = vector.multi_reduction <maximumf>, %45, %cst_28 [1] : vector<256x128xf32> to vector<256xf32>
      %47 = vector.shape_cast %46 : vector<256xf32> to vector<256x1xf32>
      %48 = vector.broadcast %47 : vector<256x1xf32> to vector<256x128xf32>
      %49 = arith.subf %45, %48 : vector<256x128xf32>
      %50 = math.exp %49 : vector<256x128xf32>
      %cst_29 = arith.constant 0.000000e+00 : f32
      %51 = vector.broadcast %cst_29 : f32 to vector<256x128xf32>
      %52 = arith.select %43, %50, %51 : vector<256x128xi1>, vector<256x128xf32>
      %cst_30 = arith.constant dense<0.000000e+00> : vector<256xf32>
      %53 = vector.multi_reduction <add>, %52, %cst_30 [1] : vector<256x128xf32> to vector<256xf32>
      %54 = vector.shape_cast %53 : vector<256xf32> to vector<256x1xf32>
      %55 = math.log %54 : vector<256x1xf32>
      %56 = vector.broadcast %55 : vector<256x1xf32> to vector<256x128xf32>
      %57 = arith.subf %49, %56 : vector<256x128xf32>
      %c0_31 = arith.constant 0 : index
      %c0_32 = arith.constant 0 : index
      %58 = vector.load %arg15[%c0_31, %c0_32] : memref<256x128xf32, #tpu.memory_space<vmem>>, vector<256x128xf32>
      tpu.vector_store %arg15[%c0_31, %c0_32], %57 {strides = array<i32>} : memref<256x128xf32, #tpu.memory_space<vmem>>, vector<256x128xf32>,
    } else {
    }
    return
  }
  func.func @transform_0(%arg0: i32, %arg1: i32, %arg2: memref<2xi32, #tpu.memory_space<smem>>, %arg3: memref<4xi32, #tpu.memory_space<smem>>) -> (i32, i32) {
    %c2_i32 = arith.constant 2 : i32
    %0 = arith.muli %arg0, %c2_i32 : i32
    %1 = arith.addi %0, %arg1 : i32
    %2 = arith.index_cast %1 : i32 to index
    %3 = memref.load %arg3[%2] : memref<4xi32, #tpu.memory_space<smem>>
    %c0_i32 = arith.constant 0 : i32
    return %arg0, %3 : i32, i32
  }
  func.func @transform_1(%arg0: i32, %arg1: i32, %arg2: memref<2xi32, #tpu.memory_space<smem>>, %arg3: memref<4xi32, #tpu.memory_space<smem>>) -> (i32, i32) {
    %c2_i32 = arith.constant 2 : i32
    %0 = arith.muli %arg0, %c2_i32 : i32
    %1 = arith.addi %0, %arg1 : i32
    %2 = arith.index_cast %1 : i32 to index
    %3 = memref.load %arg3[%2] : memref<4xi32, #tpu.memory_space<smem>>
    %c0_i32 = arith.constant 0 : i32
    %c0_i32_0 = arith.constant 0 : i32
    return %3, %c0_i32 : i32, i32
  }
  func.func @transform_2(%arg0: i32, %arg1: i32, %arg2: memref<2xi32, #tpu.memory_space<smem>>, %arg3: memref<4xi32, #tpu.memory_space<smem>>) -> (i32, i32) {
    %c0_i32 = arith.constant 0 : i32
    %c0_i32_0 = arith.constant 0 : i32
    return %arg0, %c0_i32 : i32, i32
  }
  func.func @transform_3(%arg0: i32, %arg1: i32, %arg2: memref<2xi32, #tpu.memory_space<smem>>, %arg3: memref<4xi32, #tpu.memory_space<smem>>) -> (i32, i32) {
    %c0_i32 = arith.constant 0 : i32
    %c0_i32_0 = arith.constant 0 : i32
    return %arg0, %c0_i32 : i32, i32
  }
  func.func @transform_4(%arg0: i32, %arg1: i32, %arg2: memref<2xi32, #tpu.memory_space<smem>>, %arg3: memref<4xi32, #tpu.memory_space<smem>>) -> (i32, i32) {
    %c0_i32 = arith.constant 0 : i32
    %c0_i32_0 = arith.constant 0 : i32
    %c0_i32_1 = arith.constant 0 : i32
    return %c0_i32, %c0_i32_0 : i32, i32
  }
  func.func @transform_5(%arg0: i32, %arg1: i32, %arg2: memref<2xi32, #tpu.memory_space<smem>>, %arg3: memref<4xi32, #tpu.memory_space<smem>>) -> (i32, i32) {
    %c0_i32 = arith.constant 0 : i32
    %c0_i32_0 = arith.constant 0 : i32
    %c0_i32_1 = arith.constant 0 : i32
    return %c0_i32, %c0_i32_0 : i32, i32
  }
  func.func @transform_6(%arg0: i32, %arg1: i32, %arg2: memref<2xi32, #tpu.memory_space<smem>>, %arg3: memref<4xi32, #tpu.memory_space<smem>>) -> (i32, i32) {
    %c0_i32 = arith.constant 0 : i32
    %c0_i32_0 = arith.constant 0 : i32
    %c0_i32_1 = arith.constant 0 : i32
    return %c0_i32, %c0_i32_0 : i32, i32
  }
  func.func @transform_7(%arg0: i32, %arg1: i32, %arg2: memref<2xi32, #tpu.memory_space<smem>>, %arg3: memref<4xi32, #tpu.memory_space<smem>>) -> (i32, i32) {
    %c0_i32 = arith.constant 0 : i32
    %c0_i32_0 = arith.constant 0 : i32
    %c0_i32_1 = arith.constant 0 : i32
    return %c0_i32, %c0_i32_0 : i32, i32
  }
  func.func @transform_8(%arg0: i32, %arg1: i32, %arg2: memref<2xi32, #tpu.memory_space<smem>>, %arg3: memref<4xi32, #tpu.memory_space<smem>>) -> (i32, i32) {
    %c0_i32 = arith.constant 0 : i32
    %c0_i32_0 = arith.constant 0 : i32
    %c0_i32_1 = arith.constant 0 : i32
    return %c0_i32, %c0_i32_0 : i32, i32
  }
  func.func @transform_9(%arg0: i32, %arg1: i32, %arg2: memref<2xi32, #tpu.memory_space<smem>>, %arg3: memref<4xi32, #tpu.memory_space<smem>>) -> (i32, i32) {
    %c0_i32 = arith.constant 0 : i32
    %c0_i32_0 = arith.constant 0 : i32
    %c0_i32_1 = arith.constant 0 : i32
    return %c0_i32, %c0_i32_0 : i32, i32
  }
  func.func @transform_10(%arg0: i32, %arg1: i32, %arg2: memref<2xi32, #tpu.memory_space<smem>>, %arg3: memref<4xi32, #tpu.memory_space<smem>>) -> (i32, i32) {
    %c0_i32 = arith.constant 0 : i32
    %c0_i32_0 = arith.constant 0 : i32
    %c0_i32_1 = arith.constant 0 : i32
    return %c0_i32, %c0_i32_0 : i32, i32
  }
  func.func @transform_11(%arg0: i32, %arg1: i32, %arg2: memref<2xi32, #tpu.memory_space<smem>>, %arg3: memref<4xi32, #tpu.memory_space<smem>>) -> (i32, i32) {
    %c0_i32 = arith.constant 0 : i32
    %c0_i32_0 = arith.constant 0 : i32
    return %arg0, %c0_i32 : i32, i32
  }
}

</mosaic_0001>

<bundles_post_ra>
// kernel: sage_mlp_forward.2
= control target key start
LH: loop header
LB: loop body
LE: loop exit
PB: predicated region body
PF: predicated region fallthrough
CT: control target
= control target key end

     0   :  { %s2798_s15 = smov [#allocation4]   ;;  %s2799_s16 = smov [#allocation5]   ;;  %s3253_s0 = inlined_call_operand.vmem [shape: s32[2], index: 0, kind: input, shape index: {}]   ;;  %s3254_s2 = inlined_call_operand.hbm [shape: bf16[512,512], index: 2, kind: input, shape index: {}]   ;;  %s3255_s3 = inlined_call_operand.vmem [shape: bf16[512,128], index: 3, kind: input, shape index: {}, may-alias: {3,4}]   ;;  %s3256_s4 = inlined_call_operand.vmem [shape: bf16[512,128], index: 4, kind: input, shape index: {}, may-alias: {3,4}]   ;;  %s3257_s5 = inlined_call_operand.vmem [shape: f32[512,1], index: 5, kind: input, shape index: {}]   ;;  %s3258_s6 = inlined_call_operand.vmem [shape: bf16[128,128], index: 6, kind: input, shape index: {}]   ;;  %s3259_s7 = inlined_call_operand.vmem [shape: bf16[128,128], index: 7, kind: input, shape index: {}]   ;;  %s3260_s8 = inlined_call_operand.vmem [shape: f32[1,128], index: 8, kind: input, shape index: {}]   ;;  %s3261_s9 = inlined_call_operand.vmem [shape: bf16[512,128], index: 9, kind: output, shape index: {}]   ;;  %s3262_s1 = inlined_call_operand.vmem [shape: s32[4], index: 1, kind: input, shape index: {}]  }
   0x1   :  { %s15_s11 = sshll.u32 %s3253_s0, 4  ;;  %s20_s14 = sshll.u32 %s3262_s1, 4  ;;  %s16_s11 = int_to_ptr.vmem [resolvable:$true] %s15_s11  ;;  %s21_s14 = int_to_ptr.vmem [resolvable:$true] %s20_s14 }
   0x2   :  { %18 = dma.vmem_to_smem %s16_s11, 16, %s2798_s15, [#allocation3] }
   0x3   :  { %23 = dma.vmem_to_smem %s21_s14, 16, %s2799_s16, [#allocation3] }
   0x4   :  { %2760 = dma.done.wait [#allocation3], 32 }
   0x5   :  { %2761 = vsyncadd [#allocation3], 4294967264 }
   0x6   :  { %26 = sfence }
   0x7   :  { %27 = vsyncpa [#allocation7], 0 }
   0x8   :  { %29 = vsyncpa [#allocation7 + $0x1], 0  ;;  %s2861_s17 = smov 0   ;;  %s2863_s18 = smov 0  }
   0x9   :  { %s2865_s0 = smov 0   ;;  %s2867_s19 = smov 0  }
   0xa   :  { %s2869_s1 = smov 0   ;;  %s2871_s20 = smov 0  }
   0xb   :  { %s2873_s21 = smov 0   ;;  %s2875_s22 = smov 0  }
   0xc LB: > { %3267 = sst [smem:[#allocation12_spill]] %s2788_s20  ;;  %s44_s23 = sadd.s32 1, %s2788_s20  ;;  %s2796_s22 = sphi %s2875_s22, %s35_s22   ;;  %s2792_s21 = sphi %s2873_s21, %s3280_s21   ;;  %s2788_s20 = sphi %s2871_s20, %s3279_s20   ;;  %s2784_s1 = sphi %s2869_s1, %s3278_s1   ;;  %s2780_s19 = sphi %s2867_s19, %s3277_s19   ;;  %s2776_s0 = sphi %s2865_s0, %s3283_s0   ;;  %s2772_s18 = sphi %s2863_s18, %s3282_s18   ;;  %s2768_s17 = sphi %s2861_s17, %s3281_s17  }
   0xd   : > { %3268 = sst [smem:[#allocation13_spill]] %s2792_s21  ;;  %p45_p0 = scmp.ge.s32.totalorder %s44_s23, 2 }
   0xe   : > { %s47_s24 = sadd.s32 1, %s2792_s21  ;;  %s2032_s25 = sshll.u32 %s2792_s21, 1 }
   0xf   : > { %s3285_s23 = smov (%p45_p0, %s44_s23), 0  ;;  %s3287_s24 = smov (!%p45_p0, %s47_s24), %s2792_s21 }
  0x10   : > { %3269 = sst [smem:[#allocation14_spill]] %s3285_s23  ;;  %s2030_s26 = sadd.s32 4294967295, %s2796_s22  }
  0x11   : > { %s52_s27 = sadd.s32 %s2788_s20, %s2032_s25  ;;  %p49_p1 = scmp.ge.s32.totalorder %s3287_s24, 2 }
  0x12   : > { %p69_p2 = scmp.ne.s32.totalorder %s2776_s0, %s2772_s18  ;;  %p70_p3 = scmp.eq.s32.totalorder %s2796_s22, 0 }
  0x13   : > { %p75_p4 = scmp.ne.s32.totalorder %s2772_s18, %s2768_s17  ;;  %s3289_s24 = smov (%p49_p1, %s3287_s24), 0 }
  0x14   : > { %3270 = sst [smem:[#allocation15_spill]] %s3289_s24  ;;  %p76_p5 = scmp.eq.s32.totalorder %s2030_s26, 0 }
  0x15   : > { %s53_s28 = sld [smem:[#allocation5 + %s52_s27]]  ;;  %s2033_s29 = sshll.u32 %s3289_s24, 1 }
  0x16   : > { %p2914_p6 = por %p70_p3, %p69_p2  ;;  %s55_s10 = sadd.s32 %s2033_s29, %s3285_s23 }
  0x17   : > { %p2919_p7 = por %p76_p5, %p75_p4  ;;  %s56_s12 = sld [smem:[#allocation5 + %s55_s10]] }
  0x18   : > { %s57_s13 = ssub.s32 %s2792_s21, %s3289_s24  ;;  %p2598_p8 = scmp.lt.s32.totalorder %s2796_s22, 4 }
  0x19   : > { %s281_s14 = sand.u32 1, %s2776_s0   ;;  %s3291_s27 = smov (!%p2914_p6, %s52_s27), 0 }
  0x1a   : > { %s2588_s15 = scalar_select %p2914_p6, [#allocation5], [#allocation8] }
  0x1b   : > { %s62_s17 = sadd.s32 1, %s2776_s0  ;;  %s2038_s26 = sshll.u32 %s281_s14, 8 }
  0x1c   : > { %p2934_p10 = pnand %p2598_p8, %p2914_p6  ;;  %s3293_s15 = smov (!%p2598_p8, %s2588_s15), [#allocation9] }
  0x1d   : > { %s58_s16 = ssub.s32 %s53_s28, %s56_s12  ;;  %s3295_s27 = smov (!%p2598_p8, %s3291_s27), 0 }
  0x1e   : > { %s59_s25 = sor.u32 %s58_s16, %s57_s13  ;;  %s288_s24 = sld [smem:[%s3293_s15 + %s3295_s27]] }
  0x1f   : > { %p60_p9 = scmp.eq.s32.totalorder %s59_s25, 0  ;;  %p2044_p11 = scmp.ge.s32.totalorder %s2796_s22, 1 }
  0x20   : > { %p340_p12 = scmp.lt.s32.totalorder %s2796_s22, 5  ;;  %s285_s23 = scalar_lea.vmem [#allocation6], %s2038_s26 }
  0x21   : > { %s2939_s10 = scalar_select %p60_p9, %s2776_s0, %s62_s17  }
  0x22   : > { %s2943_s20 = sshll.u32 %s285_s23, 4  ;;  %s2380_s28 = sshll.u32 %s2792_s21, 7  ;;  %s300_s20 = int_to_ptr.vmem [resolvable:$true] %s2943_s20 }
  0x23   : > { %3274 = sst [smem:[#allocation16_spill]] %s2939_s10  ;;  %p2946_p13 = pnand %p2044_p11, %p340_p12 }
  0x24   : > { %s2041_s30 = sshll.u32 %s288_s24, 1  ;;  %s282_s26 = scalar_lea.sflag [#allocation7], %s281_s14 }
  0x25   : > { %s294_s13 = sadd.s32 %s2380_s28, %s2041_s30  ;;  %p2702_p1 = pneg %p2934_p10 }
  0x26   : > { %s2043_s16 = sshll.u32 %s294_s13, 2  ;;  %s2705_s28 = scalar_lea.hbm %s3254_s2, 1024 }
  0x27   : > { %s296_s27 = scalar_lea.hbm %s3254_s2, %s2043_s16 }
  0x28   : > { %s297_s15 = sshll.u32 %s296_s27, 4  ;;  %s298_s15 = int_to_ptr.hbm [resolvable:$true] %s297_s15 }
  0x29   : > { %s2698_s10 = sshra.s32 %s298_s15, 4  ;;  %s2699_s10 = int_to_ptr.hbm [resolvable:$true] %s2698_s10 }
  0x2a   : > { %s2700_s23 = scalar_lea.hbm %s2699_s10, 256  ;;  %p2706_p4 = scmp.lt.s32.totalorder %s2699_s10, %s3254_s2 }
  0x2b   : > { %p2701_p0 = scmp.ne.s32.totalorder %s2699_s10, %s2700_s23  ;;  %p2707_p5 = scmp.lt.s32.totalorder %s2705_s28, %s2700_s23 }
  0x2d   : > { %p2703_p2 = pnand %p2702_p1, %p2701_p0  ;;  %p2708_p6 = por %p2707_p5, %p2706_p4 }
  0x2f   : > { %p2704_p3 = pneg %p2703_p2 }
  0x31   : > { %p2709_p8 = pnand %p2708_p6, %p2704_p3 }
  0x33   : > { %2712 = shalt.err (!%p2709_p8)
}
  0x34   : > { %s2800_s14 = smov 256   ;;  %s2801_s16 = smov 128  }
  0x35   : > { %s2802_s17 = smov 8   ;;  %344 = sbr.rel (%p2946_p13) target bundleno = 807 (0x327), region = 48 }
  0x36   : > { %2597 = dma.hbm_to_vmem [thread:$0]  (!%p2934_p10), %s298_s15, 4096, %s300_s20, %s282_s26, %s2800_s14, %s2801_s16, %s2802_s17  }
  0x37   : > { %s346_s21 = sand.u32 (!%p2946_p13), 1, %s2772_s18  }
  0x38   : > { %s2045_s25 = sshll.u32 (!%p2946_p13), %s346_s21, 8  ;;  %s347_s27 = scalar_lea.sflag (!%p2946_p13), [#allocation7], %s346_s21 }
  0x39   : > { %s2967_s24 = scalar_lea.vmem (!%p2946_p13), [#allocation6], %s2045_s25 }
  0x3a   : > { %2763 = dma.done.wait (%p2919_p7), %s347_s27, 4096  }
  0x3b   : > { %2765 = vsyncadd (%p2919_p7), %s347_s27, 4294963200  ;;  %s2046_s29 = sshll.u32 %s2784_s1, 1  ;;  %s2049_s20 = sshll.u32 %s2784_s1, 5 }
  0x3c   : > { %s406_s10 = sadd.s32 %s2780_s19, %s2046_s29  ;;  %p418_p9 = scmp.lt.s32.totalorder %s2049_s20, 63 }
  0x3d   : > { %s407_s12 = sld [smem:[#allocation5 + %s406_s10]]  ;;  %p2055_p10 = scmp.ne.s32.totalorder %s2780_s19, 0 }
  0x3e   : > { %s3297_s20 = smov (!%p418_p9, %s2049_s20), 63 }
  0x3f   : > { %s2050_s15 = sshll.u32 %s3297_s20, 2  ;;  %s2052_s26 = sshll.u32 %s3297_s20, 3 }
  0x40   : > { %s2979_s30 = scalar_lea.vmem %s3256_s4, %s2050_s15  ;;  %s2984_s11 = scalar_lea.vmem %s3257_s5, %s2052_s26 }
  0x41   : > { %s2989_s21 = scalar_lea.vmem %s3261_s9, %s2050_s15 }
  0x43   : > { %s2047_s25 = sshll.u32 %s407_s12, 5 }
  0x44   : > { %p409_p7 = scmp.lt.s32.totalorder %s2047_s25, 63  ;;  %438 = sbr.rel (%p2055_p10) target bundleno = 106 (0x6a), region = 56 }
  0x46   : > { %s3299_s25 = smov (!%p409_p7, %s2047_s25), 63 }
  0x47   : > { %s2048_s27 = sshll.u32 %s3299_s25, 2 }
  0x48   : > { %s2994_s10 = scalar_lea.vmem %s3255_s3, %s2048_s27 }
  0x49   : > { %v2803_v0 = vmov 0.0  }
  0x4a   : > { %439 = vst [vmem:[#allocation2 + $0xb0] sm:$0xff] %v2803_v0 }
  0x4b   : > { %440 = vst [vmem:[#allocation2] sm:$0xff] %v2803_v0 }
  0x4c   : > { %441 = vst [vmem:[#allocation2 + $0xd8] sm:$0xff] %v2803_v0 }
  0x4d   : > { %442 = vst [vmem:[#allocation2 + $0x18] sm:$0xff] %v2803_v0 }
  0x4e   : > { %443 = vst [vmem:[#allocation2 + $0x50] sm:$0xff] %v2803_v0 }
  0x4f   : > { %444 = vst [vmem:[#allocation2 + $0x68] sm:$0xff] %v2803_v0 }
  0x50   : > { %445 = vst [vmem:[#allocation2 + $0x30] sm:$0xff] %v2803_v0 }
  0x51   : > { %446 = vst [vmem:[#allocation2 + $0x48] sm:$0xff] %v2803_v0 }
  0x52   : > { %447 = vst [vmem:[#allocation2 + $0x80] sm:$0xff] %v2803_v0 }
  0x53   : > { %448 = vst [vmem:[#allocation2 + $0x88] sm:$0xff] %v2803_v0 }
  0x54   : > { %449 = vst [vmem:[#allocation2 + $0xe8] sm:$0xff] %v2803_v0 }
  0x55   : > { %450 = vst [vmem:[#allocation2 + $0xb8] sm:$0xff] %v2803_v0 }
  0x56   : > { %451 = vst [vmem:[#allocation2 + $0x60] sm:$0xff] %v2803_v0 }
  0x57   : > { %452 = vst [vmem:[#allocation2 + $0xf0] sm:$0xff] %v2803_v0 }
  0x58   : > { %453 = vst [vmem:[#allocation2 + $0x8] sm:$0xff] %v2803_v0 }
  0x59   : > { %454 = vst [vmem:[#allocation2 + $0x78] sm:$0xff] %v2803_v0 }
  0x5a   : > { %455 = vst [vmem:[#allocation2 + $0x38] sm:$0xff] %v2803_v0 }
  0x5b   : > { %456 = vst [vmem:[#allocation2 + $0x58] sm:$0xff] %v2803_v0 }
  0x5c   : > { %457 = vst [vmem:[#allocation2 + $0x40] sm:$0xff] %v2803_v0 }
  0x5d   : > { %458 = vst [vmem:[#allocation2 + $0xc8] sm:$0xff] %v2803_v0 }
  0x5e   : > { %459 = vst [vmem:[#allocation2 + $0xe0] sm:$0xff] %v2803_v0 }
  0x5f   : > { %460 = vst [vmem:[#allocation2 + $0x90] sm:$0xff] %v2803_v0 }
  0x60   : > { %461 = vst [vmem:[#allocation2 + $0x70] sm:$0xff] %v2803_v0 }
  0x61   : > { %462 = vst [vmem:[#allocation2 + $0xc0] sm:$0xff] %v2803_v0 }
  0x62   : > { %463 = vst [vmem:[#allocation2 + $0xa8] sm:$0xff] %v2803_v0 }
  0x63   : > { %464 = vst [vmem:[#allocation2 + $0xd0] sm:$0xff] %v2803_v0 }
  0x64   : > { %465 = vst [vmem:[#allocation2 + $0x10] sm:$0xff] %v2803_v0 }
  0x65   : > { %466 = vst [vmem:[#allocation2 + $0x28] sm:$0xff] %v2803_v0 }
  0x66   : > { %467 = vst [vmem:[#allocation2 + $0xa0] sm:$0xff] %v2803_v0 }
  0x67   : > { %468 = vst [vmem:[#allocation2 + $0xf8] sm:$0xff] %v2803_v0 }
  0x68   : > { %469 = vst [vmem:[#allocation2 + $0x20] sm:$0xff] %v2803_v0 }
  0x69   : > { %470 = vst [vmem:[#allocation2 + $0x98] sm:$0xff] %v2803_v0 }
  0x6a PF: > { %s471_s12 = sld [smem:[#allocation4 + %s2784_s1]] }
  0x70   : > { %p2056_p11 = scmp.ge.s32.totalorder %s2780_s19, %s471_s12 }
  0x72   : > { %475 = sbr.rel (%p2056_p11) target bundleno = 409 (0x199), region = 60 }
  0x77   : > { %v2420_v1 = vld [vmem:[%s2994_s10 + $0x38] sm:$0xff]  ;;  %v2419_v3 = vld [vmem:[%s2994_s10 + $0x30] sm:$0xff]  ;;  %v2418_v5 = vld [vmem:[%s2994_s10 + $0x28] sm:$0xff] }
  0x78   : > { %v2428_v2 = vld [vmem:[%s2994_s10 + $0x78] sm:$0xff]  ;;  %828 = vmatpush.bf16.msra.mxu0 %v2420_v1  ;;  %2556 = vmatpush.bf16.msra.mxu2 %v2420_v1  ;;  %v2427_v4 = vld [vmem:[%s2994_s10 + $0x70] sm:$0xff]  ;;  %v2426_v6 = vld [vmem:[%s2994_s10 + $0x68] sm:$0xff] }
  0x79   : > { %917 = vmatpush.bf16.msra.mxu1 %v2428_v2  ;;  %2564 = vmatpush.bf16.msra.mxu3 %v2428_v2  ;;  %v2417_v7 = vld [vmem:[%s2994_s10 + $0x20] sm:$0xff]  ;;  %v2416_v9 = vld [vmem:[%s2994_s10 + $0x18] sm:$0xff]  ;;  %v2415_v11 = vld [vmem:[%s2994_s10 + $0x10] sm:$0xff] }
  0x7a   : > { %v2425_v8 = vld [vmem:[%s2994_s10 + $0x60] sm:$0xff]  ;;  %v2424_v10 = vld [vmem:[%s2994_s10 + $0x58] sm:$0xff]  ;;  %v2423_v12 = vld [vmem:[%s2994_s10 + $0x50] sm:$0xff] }
  0x7b   : > { %v2414_v13 = vld [vmem:[%s2994_s10 + $0x8] sm:$0xff]  ;;  %v2413_v15 = vld [vmem:[%s2994_s10] sm:$0xff]  ;;  %v2067_v29 = vld [vmem:[%s2967_s24 + $0x10] sm:$0xf] }
  0x7c   : > { %829 = vmatpush.bf16.msra.mxu0 %v2419_v3  ;;  %2557 = vmatpush.bf16.msra.mxu2 %v2419_v3  ;;  %v2422_v14 = vld [vmem:[%s2994_s10 + $0x48] sm:$0xff]  ;;  %v2421_v16 = vld [vmem:[%s2994_s10 + $0x40] sm:$0xff]  ;;  %v2384_v30 = vld [vmem:[%s2967_s24 + $0x14] sm:$0xf0] }
  0x7d   : > { %918 = vmatpush.bf16.msra.mxu1 %v2427_v4  ;;  %2565 = vmatpush.bf16.msra.mxu3 %v2427_v4  ;;  %v2059_v17 = vld [vmem:[%s2967_s24] sm:$0xf]  ;;  %v2382_v18 = vld [vmem:[%s2967_s24 + $0x4] sm:$0xf0]  ;;  %v2381_v21 = vld [vmem:[%s2967_s24 + $0x4] sm:$0xf]  ;;  %v2068_v37 = vor.u32 %v2384_v30, %v2067_v29 }
  0x7e   : > { %v2123_v19 = vld [vmem:[%s2967_s24 + $0x80] sm:$0xf]  ;;  %v2398_v20 = vld [vmem:[%s2967_s24 + $0x84] sm:$0xf0]  ;;  %v2061_v22 = vld [vmem:[%s2967_s24 + $0x8] sm:$0xf0]  ;;  %v2060_v25 = vor.u32 %v2382_v18, %v2059_v17 }
  0x7f   : > { %v2397_v23 = vld [vmem:[%s2967_s24 + $0x84] sm:$0xf]  ;;  %v2125_v24 = vld [vmem:[%s2967_s24 + $0x88] sm:$0xf0]  ;;  %v2124_v26 = vor.u32 %v2398_v20, %v2123_v19  ;;  %v2064_v27 = vor.u32 %v2381_v21, %v2061_v22  ;;  %v2131_v31 = vld [vmem:[%s2967_s24 + $0x90] sm:$0xf] }
  0x80   : > { %830 = vmatpush.bf16.msra.mxu0 %v2418_v5  ;;  %2558 = vmatpush.bf16.msra.mxu2 %v2418_v5  ;;  %v2128_v28 = vor.u32 %v2397_v23, %v2125_v24  ;;  %v2400_v32 = vld [vmem:[%s2967_s24 + $0x94] sm:$0xf0]  ;;  %v2383_v33 = vld [vmem:[%s2967_s24 + $0x14] sm:$0xf]  ;;  %v2069_v34 = vld [vmem:[%s2967_s24 + $0x18] sm:$0xf0] }
  0x81   : > { %919 = vmatpush.bf16.msra.mxu1 %v2426_v6  ;;  %2566 = vmatpush.bf16.msra.mxu3 %v2426_v6  ;;  %v2399_v35 = vld [vmem:[%s2967_s24 + $0x94] sm:$0xf]  ;;  %v2133_v36 = vld [vmem:[%s2967_s24 + $0x98] sm:$0xf0]  ;;  %v2132_v38 = vor.u32 %v2400_v32, %v2131_v31  ;;  %v2072_v39 = vor.u32 %v2383_v33, %v2069_v34  ;;  %v2075_v41 = vld [vmem:[%s2967_s24 + $0x20] sm:$0xf] }
  0x82   : > { %v2136_v40 = vor.u32 %v2399_v35, %v2133_v36  ;;  %v2386_v42 = vld [vmem:[%s2967_s24 + $0x24] sm:$0xf0]  ;;  %v2139_v43 = vld [vmem:[%s2967_s24 + $0xa0] sm:$0xf]  ;;  %v2385_v45 = vld [vmem:[%s2967_s24 + $0x24] sm:$0xf] }
  0x83   : > { %v2402_v44 = vld [vmem:[%s2967_s24 + $0xa4] sm:$0xf0]  ;;  %v2077_v46 = vld [vmem:[%s2967_s24 + $0x28] sm:$0xf0]  ;;  %v2401_v47 = vld [vmem:[%s2967_s24 + $0xa4] sm:$0xf]  ;;  %v2076_v49 = vor.u32 %v2386_v42, %v2075_v41 }
  0x84   : > { %831 = vmatpush.bf16.msra.mxu0 %v2417_v7  ;;  %2559 = vmatpush.bf16.msra.mxu2 %v2417_v7  ;;  %v2141_v48 = vld [vmem:[%s2967_s24 + $0xa8] sm:$0xf0]  ;;  %v2140_v50 = vor.u32 %v2402_v44, %v2139_v43  ;;  %v2080_v51 = vor.u32 %v2385_v45, %v2077_v46  ;;  %v2083_v53 = vld [vmem:[%s2967_s24 + $0x30] sm:$0xf]  ;;  %v2388_v54 = vld [vmem:[%s2967_s24 + $0x34] sm:$0xf0] }
  0x85   : > { %920 = vmatpush.bf16.msra.mxu1 %v2425_v8  ;;  %2567 = vmatpush.bf16.msra.mxu3 %v2425_v8  ;;  %v2144_v52 = vor.u32 %v2401_v47, %v2141_v48  ;;  %v2147_v55 = vld [vmem:[%s2967_s24 + $0xb0] sm:$0xf]  ;;  %v2404_v56 = vld [vmem:[%s2967_s24 + $0xb4] sm:$0xf0]  ;;  %v2387_v57 = vld [vmem:[%s2967_s24 + $0x34] sm:$0xf]  ;;  %v2084_v61 = vor.u32 %v2388_v54, %v2083_v53 }
  0x86   : > { %v2085_v58 = vld [vmem:[%s2967_s24 + $0x38] sm:$0xf0]  ;;  %v2403_v59 = vld [vmem:[%s2967_s24 + $0xb4] sm:$0xf]  ;;  %v2148_v62 = vor.u32 %v2404_v56, %v2147_v55  ;;  %v2091_v1 = vld [vmem:[%s2967_s24 + $0x40] sm:$0xf] }
  0x87   : > { %v2149_v60 = vld [vmem:[%s2967_s24 + $0xb8] sm:$0xf0]  ;;  %v2088_v63 = vor.u32 %v2387_v57, %v2085_v58  ;;  %v2390_v2 = vld [vmem:[%s2967_s24 + $0x44] sm:$0xf0]  ;;  %v2155_v3 = vld [vmem:[%s2967_s24 + $0xc0] sm:$0xf] }
  0x88   : > { %832 = vmatpush.bf16.msra.mxu0 %v2416_v9  ;;  %2560 = vmatpush.bf16.msra.mxu2 %v2416_v9  ;;  %v2152_v0 = vor.u32 %v2403_v59, %v2149_v60  ;;  %v2406_v4 = vld [vmem:[%s2967_s24 + $0xc4] sm:$0xf0]  ;;  %v2389_v5 = vld [vmem:[%s2967_s24 + $0x44] sm:$0xf]  ;;  %v2093_v6 = vld [vmem:[%s2967_s24 + $0x48] sm:$0xf0]  ;;  %v2092_v9 = vor.u32 %v2390_v2, %v2091_v1 }
  0x89   : > { %921 = vmatpush.bf16.msra.mxu1 %v2424_v10  ;;  %2568 = vmatpush.bf16.msra.mxu3 %v2424_v10  ;;  %v2405_v7 = vld [vmem:[%s2967_s24 + $0xc4] sm:$0xf]  ;;  %v2157_v8 = vld [vmem:[%s2967_s24 + $0xc8] sm:$0xf0]  ;;  %v2156_v10 = vor.u32 %v2406_v4, %v2155_v3  ;;  %v2391_v17 = vld [vmem:[%s2967_s24 + $0x54] sm:$0xf] }
  0x8a   : > { %v2101_v18 = vld [vmem:[%s2967_s24 + $0x58] sm:$0xf0]  ;;  %v2407_v19 = vld [vmem:[%s2967_s24 + $0xd4] sm:$0xf]  ;;  %v2393_v29 = vld [vmem:[%s2967_s24 + $0x64] sm:$0xf] }
  0x8b   : > { %v2165_v20 = vld [vmem:[%s2967_s24 + $0xd8] sm:$0xf0]  ;;  %v2104_v23 = vor.u32 %v2391_v17, %v2101_v18  ;;  %v2109_v30 = vld [vmem:[%s2967_s24 + $0x68] sm:$0xf0]  ;;  %v2409_v31 = vld [vmem:[%s2967_s24 + $0xe4] sm:$0xf] }
  0x8c   : > { %833 = vmatpush.bf16.msra.mxu0 %v2415_v11  ;;  %2561 = vmatpush.bf16.msra.mxu2 %v2415_v11  ;;  %v2096_v11 = vor.u32 %v2389_v5, %v2093_v6  ;;  %v2168_v24 = vor.u32 %v2407_v19, %v2165_v20  ;;  %v2173_v32 = vld [vmem:[%s2967_s24 + $0xe8] sm:$0xf0]  ;;  %v2112_v35 = vor.u32 %v2393_v29, %v2109_v30  ;;  %v2395_v41 = vld [vmem:[%s2967_s24 + $0x74] sm:$0xf]  ;;  %v2117_v42 = vld [vmem:[%s2967_s24 + $0x78] sm:$0xf0] }
  0x8d   : > { %922 = vmatpush.bf16.msra.mxu1 %v2423_v12  ;;  %2569 = vmatpush.bf16.msra.mxu3 %v2423_v12  ;;  %v2160_v12 = vor.u32 %v2405_v7, %v2157_v8  ;;  %v2176_v36 = vor.u32 %v2409_v31, %v2173_v32  ;;  %v2411_v43 = vld [vmem:[%s2967_s24 + $0xf4] sm:$0xf]  ;;  %v2181_v44 = vld [vmem:[%s2967_s24 + $0xf8] sm:$0xf0]  ;;  %v2120_v47 = vor.u32 %v2395_v41, %v2117_v42  ;;  %v477_v59 = vld [vmem:[#allocation2] sm:$0xff] }
  0x8e   : > { %v2184_v48 = vor.u32 %v2411_v43, %v2181_v44  ;;  %v492_v55 = vld [vmem:[#allocation2 + $0x38] sm:$0xff]  ;;  %v496_v31 = vld [vmem:[#allocation2 + $0xe0] sm:$0xff]  ;;  %v497_v41 = vld [vmem:[#allocation2 + $0x90] sm:$0xff] }
  0x8f   : > { %v493_v1 = vld [vmem:[#allocation2 + $0x58] sm:$0xff] }
  0x90   : > { %834 = vmatpush.bf16.msra.mxu0 %v2414_v13  ;;  %2562 = vmatpush.bf16.msra.mxu2 %v2414_v13  ;;  %v2099_v13 = vld [vmem:[%s2967_s24 + $0x50] sm:$0xf]  ;;  %v478_v5 = vld [vmem:[#allocation2 + $0xd8] sm:$0xff] }
  0x91   : > { %923 = vmatpush.bf16.msra.mxu1 %v2422_v14  ;;  %2570 = vmatpush.bf16.msra.mxu3 %v2422_v14  ;;  %v2392_v14 = vld [vmem:[%s2967_s24 + $0x54] sm:$0xf0] }
  0x92   : > { %v2100_v21 = vor.u32 %v2392_v14, %v2099_v13 }
  0x94   : > { %835 = vmatpush.bf16.msra.mxu0 %v2413_v15  ;;  %2563 = vmatpush.bf16.msra.mxu2 %v2413_v15  ;;  %v2163_v15 = vld [vmem:[%s2967_s24 + $0xd0] sm:$0xf] }
  0x95   : > { %924 = vmatpush.bf16.msra.mxu1 %v2421_v16  ;;  %2571 = vmatpush.bf16.msra.mxu3 %v2421_v16  ;;  %v2408_v16 = vld [vmem:[%s2967_s24 + $0xd4] sm:$0xf0] }
  0x96   : > { %v2164_v22 = vor.u32 %v2408_v16, %v2163_v15  ;;  %v479_v15 = vld [vmem:[#allocation2 + $0x18] sm:$0xff] }
  0x97   : > { %836 = vmatmul.bf16.vlgmr.msra.gmra.mxu0 %v2060_v25  ;;  %876 = vmatmul.bf16.vlgmr.msra.gmra.mxu2 %v2124_v26  ;;  %v2107_v25 = vld [vmem:[%s2967_s24 + $0x60] sm:$0xf]  ;;  %v2394_v26 = vld [vmem:[%s2967_s24 + $0x64] sm:$0xf0] }
  0x98   : > { %925 = vmatmul.bf16.vlgmr.msra.gmra.mxu1 %v2064_v27  ;;  %965 = vmatmul.bf16.vlgmr.msra.gmra.mxu3 %v2128_v28  ;;  %v2171_v27 = vld [vmem:[%s2967_s24 + $0xe0] sm:$0xf]  ;;  %v2410_v28 = vld [vmem:[%s2967_s24 + $0xe4] sm:$0xf0]  ;;  %v2108_v33 = vor.u32 %v2394_v26, %v2107_v25  ;;  %v480_v25 = vld [vmem:[#allocation2 + $0x50] sm:$0xff] }
  0x99   : > { %v2172_v34 = vor.u32 %v2410_v28, %v2171_v27 }
  0xa7   : > { %841 = vmatmul.bf16.gmra.mxu0 %v2068_v37  ;;  %881 = vmatmul.bf16.gmra.mxu2 %v2132_v38  ;;  %v2115_v37 = vld [vmem:[%s2967_s24 + $0x70] sm:$0xf]  ;;  %v2396_v38 = vld [vmem:[%s2967_s24 + $0x74] sm:$0xf0] }
  0xa8   : > { %930 = vmatmul.bf16.gmra.mxu1 %v2072_v39  ;;  %970 = vmatmul.bf16.gmra.mxu3 %v2136_v40  ;;  %v2179_v39 = vld [vmem:[%s2967_s24 + $0xf0] sm:$0xf]  ;;  %v2412_v40 = vld [vmem:[%s2967_s24 + $0xf4] sm:$0xf0]  ;;  %v2116_v45 = vor.u32 %v2396_v38, %v2115_v37 }
  0xa9   : > { %v2180_v46 = vor.u32 %v2412_v40, %v2179_v39 }
  0xb7   : > { %846 = vmatmul.bf16.gmra.mxu0 %v2076_v49  ;;  %886 = vmatmul.bf16.gmra.mxu2 %v2140_v50  ;;  %v476_v50 = vld [vmem:[#allocation2 + $0xb0] sm:$0xff] }
  0xb8   : > { %935 = vmatmul.bf16.gmra.mxu1 %v2080_v51  ;;  %975 = vmatmul.bf16.gmra.mxu3 %v2144_v52 }
  0xc7   : > { %851 = vmatmul.bf16.gmra.mxu0 %v2084_v61  ;;  %891 = vmatmul.bf16.gmra.mxu2 %v2148_v62 }
  0xc8   : > { %940 = vmatmul.bf16.gmra.mxu1 %v2088_v63  ;;  %980 = vmatmul.bf16.gmra.mxu3 %v2152_v0 }
  0xd7   : > { %856 = vmatmul.bf16.gmra.mxu0 %v2092_v9  ;;  %896 = vmatmul.bf16.gmra.mxu2 %v2156_v10 }
  0xd8   : > { %945 = vmatmul.bf16.gmra.mxu1 %v2096_v11  ;;  %985 = vmatmul.bf16.gmra.mxu3 %v2160_v12  ;;  %v494_v11 = vld [vmem:[#allocation2 + $0x40] sm:$0xff] }
  0xe7   : > { %861 = vmatmul.bf16.gmra.mxu0 %v2100_v21  ;;  %901 = vmatmul.bf16.gmra.mxu2 %v2164_v22  ;;  %v495_v21 = vld [vmem:[#allocation2 + $0xc8] sm:$0xff] }
  0xe8   : > { %950 = vmatmul.bf16.gmra.mxu1 %v2104_v23  ;;  %990 = vmatmul.bf16.gmra.mxu3 %v2168_v24 }
  0xf7   : > { %866 = vmatmul.bf16.gmra.mxu0 %v2108_v33  ;;  %906 = vmatmul.bf16.gmra.mxu2 %v2172_v34 }
  0xf8   : > { %955 = vmatmul.bf16.gmra.mxu1 %v2112_v35  ;;  %995 = vmatmul.bf16.gmra.mxu3 %v2176_v36  ;;  %v481_v35 = vld [vmem:[#allocation2 + $0x68] sm:$0xff] }
 0x107   : > { %871 = vmatmul.bf16.gmra.mxu0 %v2116_v45  ;;  %911 = vmatmul.bf16.gmra.mxu2 %v2180_v46  ;;  %v482_v45 = vld [vmem:[#allocation2 + $0x30] sm:$0xff] }
 0x108   : > { %960 = vmatmul.bf16.gmra.mxu1 %v2120_v47  ;;  %1000 = vmatmul.bf16.gmra.mxu3 %v2184_v48 }
 0x114   : > { %v837_v49 = vpop.f32.mrf.mxu0 }
 0x115   : > { %v926_v51 = vpop.f32.mrf.mxu1 }
 0x116   : > { %v927_v52 = vadd.f32 %v926_v51, %v837_v49  ;;  %v498_v51 = vld [vmem:[#allocation2 + $0x70] sm:$0xff] }
 0x118   : > { %v1006_v53 = vadd.f32 %v927_v52, %v476_v50 }
 0x11a   : > { %1038 = vst [vmem:[#allocation2 + $0xb0] sm:$0xff] %v1006_v53  ;;  %v877_v54 = vpop.f32.mrf.mxu2 }
 0x11b   : > { %v966_v56 = vpop.f32.mrf.mxu3 }
 0x11c   : > { %v967_v57 = vadd.f32 %v966_v56, %v877_v54  ;;  %v839_v58 = vpop.f32.mrf.mxu0 }
 0x11d   : > { %v928_v60 = vpop.f32.mrf.mxu1 }
 0x11e   : > { %v1022_v61 = vadd.f32 %v967_v57, %v492_v55  ;;  %v929_v62 = vadd.f32 %v928_v60, %v839_v58  ;;  %v483_v55 = vld [vmem:[#allocation2 + $0x48] sm:$0xff] }
 0x120   : > { %1054 = vst [vmem:[#allocation2 + $0x38] sm:$0xff] %v1022_v61  ;;  %v1007_v63 = vadd.f32 %v929_v62, %v477_v59  ;;  %v499_v61 = vld [vmem:[#allocation2 + $0xc0] sm:$0xff] }
 0x122   : > { %1039 = vst [vmem:[#allocation2] sm:$0xff] %v1007_v63  ;;  %v879_v0 = vpop.f32.mrf.mxu2 }
 0x123   : > { %v968_v2 = vpop.f32.mrf.mxu3 }
 0x124   : > { %v969_v3 = vadd.f32 %v968_v2, %v879_v0  ;;  %v842_v4 = vpop.f32.mrf.mxu0 }
 0x125   : > { %v931_v6 = vpop.f32.mrf.mxu1 }
 0x126   : > { %v1023_v7 = vadd.f32 %v969_v3, %v493_v1  ;;  %v932_v8 = vadd.f32 %v931_v6, %v842_v4  ;;  %v484_v1 = vld [vmem:[#allocation2 + $0x80] sm:$0xff] }
 0x128   : > { %1055 = vst [vmem:[#allocation2 + $0x58] sm:$0xff] %v1023_v7  ;;  %v1008_v9 = vadd.f32 %v932_v8, %v478_v5  ;;  %v500_v7 = vld [vmem:[#allocation2 + $0xa8] sm:$0xff] }
 0x12a   : > { %1040 = vst [vmem:[#allocation2 + $0xd8] sm:$0xff] %v1008_v9  ;;  %v882_v10 = vpop.f32.mrf.mxu2 }
 0x12b   : > { %v971_v12 = vpop.f32.mrf.mxu3 }
 0x12c   : > { %v972_v13 = vadd.f32 %v971_v12, %v882_v10  ;;  %v844_v14 = vpop.f32.mrf.mxu0 }
 0x12d   : > { %v933_v16 = vpop.f32.mrf.mxu1 }
 0x12e   : > { %v1024_v17 = vadd.f32 %v972_v13, %v494_v11  ;;  %v934_v18 = vadd.f32 %v933_v16, %v844_v14  ;;  %v485_v11 = vld [vmem:[#allocation2 + $0x88] sm:$0xff] }
 0x130   : > { %1056 = vst [vmem:[#allocation2 + $0x40] sm:$0xff] %v1024_v17  ;;  %v1009_v19 = vadd.f32 %v934_v18, %v479_v15  ;;  %v501_v17 = vld [vmem:[#allocation2 + $0xd0] sm:$0xff] }
 0x132   : > { %1041 = vst [vmem:[#allocation2 + $0x18] sm:$0xff] %v1009_v19  ;;  %v884_v20 = vpop.f32.mrf.mxu2 }
 0x133   : > { %v973_v22 = vpop.f32.mrf.mxu3 }
 0x134   : > { %v974_v23 = vadd.f32 %v973_v22, %v884_v20  ;;  %v847_v24 = vpop.f32.mrf.mxu0 }
 0x135   : > { %v936_v26 = vpop.f32.mrf.mxu1 }
 0x136   : > { %v1025_v27 = vadd.f32 %v974_v23, %v495_v21  ;;  %v937_v28 = vadd.f32 %v936_v26, %v847_v24  ;;  %v486_v21 = vld [vmem:[#allocation2 + $0xe8] sm:$0xff] }
 0x138   : > { %1057 = vst [vmem:[#allocation2 + $0xc8] sm:$0xff] %v1025_v27  ;;  %v1010_v29 = vadd.f32 %v937_v28, %v480_v25  ;;  %v502_v27 = vld [vmem:[#allocation2 + $0x10] sm:$0xff] }
 0x13a   : > { %1042 = vst [vmem:[#allocation2 + $0x50] sm:$0xff] %v1010_v29  ;;  %v887_v30 = vpop.f32.mrf.mxu2 }
 0x13b   : > { %v976_v32 = vpop.f32.mrf.mxu3 }
 0x13c   : > { %v977_v33 = vadd.f32 %v976_v32, %v887_v30  ;;  %v849_v34 = vpop.f32.mrf.mxu0 }
 0x13d   : > { %v938_v36 = vpop.f32.mrf.mxu1 }
 0x13e   : > { %v1026_v37 = vadd.f32 %v977_v33, %v496_v31  ;;  %v939_v38 = vadd.f32 %v938_v36, %v849_v34  ;;  %v487_v31 = vld [vmem:[#allocation2 + $0xb8] sm:$0xff] }
 0x140   : > { %1058 = vst [vmem:[#allocation2 + $0xe0] sm:$0xff] %v1026_v37  ;;  %v1011_v39 = vadd.f32 %v939_v38, %v481_v35  ;;  %v503_v37 = vld [vmem:[#allocation2 + $0x28] sm:$0xff] }
 0x142   : > { %1043 = vst [vmem:[#allocation2 + $0x68] sm:$0xff] %v1011_v39  ;;  %v889_v40 = vpop.f32.mrf.mxu2 }
 0x143   : > { %v978_v42 = vpop.f32.mrf.mxu3 }
 0x144   : > { %v979_v43 = vadd.f32 %v978_v42, %v889_v40  ;;  %v852_v44 = vpop.f32.mrf.mxu0 }
 0x145   : > { %v941_v46 = vpop.f32.mrf.mxu1 }
 0x146   : > { %v1027_v47 = vadd.f32 %v979_v43, %v497_v41  ;;  %v942_v48 = vadd.f32 %v941_v46, %v852_v44  ;;  %v488_v41 = vld [vmem:[#allocation2 + $0x60] sm:$0xff] }
 0x148   : > { %1059 = vst [vmem:[#allocation2 + $0x90] sm:$0xff] %v1027_v47  ;;  %v1012_v49 = vadd.f32 %v942_v48, %v482_v45  ;;  %v504_v47 = vld [vmem:[#allocation2 + $0xa0] sm:$0xff] }
 0x14a   : > { %1044 = vst [vmem:[#allocation2 + $0x30] sm:$0xff] %v1012_v49  ;;  %v892_v50 = vpop.f32.mrf.mxu2 }
 0x14b   : > { %v981_v52 = vpop.f32.mrf.mxu3 }
 0x14c   : > { %v982_v53 = vadd.f32 %v981_v52, %v892_v50  ;;  %v854_v54 = vpop.f32.mrf.mxu0 }
 0x14d   : > { %v943_v56 = vpop.f32.mrf.mxu1 }
 0x14e   : > { %v1028_v57 = vadd.f32 %v982_v53, %v498_v51  ;;  %v944_v58 = vadd.f32 %v943_v56, %v854_v54  ;;  %v489_v51 = vld [vmem:[#allocation2 + $0xf0] sm:$0xff] }
 0x150   : > { %1060 = vst [vmem:[#allocation2 + $0x70] sm:$0xff] %v1028_v57  ;;  %v1013_v59 = vadd.f32 %v944_v58, %v483_v55  ;;  %v505_v57 = vld [vmem:[#allocation2 + $0xf8] sm:$0xff] }
 0x152   : > { %1045 = vst [vmem:[#allocation2 + $0x48] sm:$0xff] %v1013_v59  ;;  %v894_v60 = vpop.f32.mrf.mxu2 }
 0x153   : > { %v983_v62 = vpop.f32.mrf.mxu3 }
 0x154   : > { %v984_v63 = vadd.f32 %v983_v62, %v894_v60  ;;  %v857_v0 = vpop.f32.mrf.mxu0 }
 0x155   : > { %v946_v2 = vpop.f32.mrf.mxu1 }
 0x156   : > { %v1029_v3 = vadd.f32 %v984_v63, %v499_v61  ;;  %v947_v4 = vadd.f32 %v946_v2, %v857_v0  ;;  %v490_v61 = vld [vmem:[#allocation2 + $0x8] sm:$0xff] }
 0x158   : > { %1061 = vst [vmem:[#allocation2 + $0xc0] sm:$0xff] %v1029_v3  ;;  %v1014_v5 = vadd.f32 %v947_v4, %v484_v1  ;;  %v506_v3 = vld [vmem:[#allocation2 + $0x20] sm:$0xff] }
 0x15a   : > { %1046 = vst [vmem:[#allocation2 + $0x80] sm:$0xff] %v1014_v5  ;;  %v897_v6 = vpop.f32.mrf.mxu2 }
 0x15b   : > { %v986_v8 = vpop.f32.mrf.mxu3 }
 0x15c   : > { %v987_v9 = vadd.f32 %v986_v8, %v897_v6  ;;  %v859_v10 = vpop.f32.mrf.mxu0 }
 0x15d   : > { %v948_v12 = vpop.f32.mrf.mxu1 }
 0x15e   : > { %v1030_v13 = vadd.f32 %v987_v9, %v500_v7  ;;  %v949_v14 = vadd.f32 %v948_v12, %v859_v10  ;;  %v491_v7 = vld [vmem:[#allocation2 + $0x78] sm:$0xff] }
 0x160   : > { %1062 = vst [vmem:[#allocation2 + $0xa8] sm:$0xff] %v1030_v13  ;;  %v1015_v15 = vadd.f32 %v949_v14, %v485_v11  ;;  %v507_v13 = vld [vmem:[#allocation2 + $0x98] sm:$0xff] }
 0x162   : > { %1047 = vst [vmem:[#allocation2 + $0x88] sm:$0xff] %v1015_v15  ;;  %v899_v16 = vpop.f32.mrf.mxu2 }
 0x163   : > { %v988_v18 = vpop.f32.mrf.mxu3 }
 0x164   : > { %v989_v19 = vadd.f32 %v988_v18, %v899_v16  ;;  %v862_v20 = vpop.f32.mrf.mxu0 }
 0x165   : > { %v951_v22 = vpop.f32.mrf.mxu1 }
 0x166   : > { %v1031_v23 = vadd.f32 %v989_v19, %v501_v17  ;;  %v952_v24 = vadd.f32 %v951_v22, %v862_v20 }
 0x168   : > { %1063 = vst [vmem:[#allocation2 + $0xd0] sm:$0xff] %v1031_v23  ;;  %v1016_v25 = vadd.f32 %v952_v24, %v486_v21 }
 0x16a   : > { %1048 = vst [vmem:[#allocation2 + $0xe8] sm:$0xff] %v1016_v25  ;;  %v902_v26 = vpop.f32.mrf.mxu2 }
 0x16b   : > { %v991_v28 = vpop.f32.mrf.mxu3 }
 0x16c   : > { %v992_v29 = vadd.f32 %v991_v28, %v902_v26  ;;  %v864_v30 = vpop.f32.mrf.mxu0 }
 0x16d   : > { %v953_v32 = vpop.f32.mrf.mxu1 }
 0x16e   : > { %v1032_v33 = vadd.f32 %v992_v29, %v502_v27  ;;  %v954_v34 = vadd.f32 %v953_v32, %v864_v30 }
 0x170   : > { %1064 = vst [vmem:[#allocation2 + $0x10] sm:$0xff] %v1032_v33  ;;  %v1017_v35 = vadd.f32 %v954_v34, %v487_v31 }
 0x172   : > { %1049 = vst [vmem:[#allocation2 + $0xb8] sm:$0xff] %v1017_v35  ;;  %v904_v36 = vpop.f32.mrf.mxu2 }
 0x173   : > { %v993_v38 = vpop.f32.mrf.mxu3 }
 0x174   : > { %v994_v39 = vadd.f32 %v993_v38, %v904_v36  ;;  %v867_v40 = vpop.f32.mrf.mxu0 }
 0x175   : > { %v956_v42 = vpop.f32.mrf.mxu1 }
 0x176   : > { %v1033_v43 = vadd.f32 %v994_v39, %v503_v37  ;;  %v957_v44 = vadd.f32 %v956_v42, %v867_v40 }
 0x178   : > { %1065 = vst [vmem:[#allocation2 + $0x28] sm:$0xff] %v1033_v43  ;;  %v1018_v45 = vadd.f32 %v957_v44, %v488_v41 }
 0x17a   : > { %1050 = vst [vmem:[#allocation2 + $0x60] sm:$0xff] %v1018_v45  ;;  %v907_v46 = vpop.f32.mrf.mxu2 }
 0x17b   : > { %v996_v48 = vpop.f32.mrf.mxu3 }
 0x17c   : > { %v997_v49 = vadd.f32 %v996_v48, %v907_v46  ;;  %v869_v50 = vpop.f32.mrf.mxu0 }
 0x17d   : > { %v958_v52 = vpop.f32.mrf.mxu1 }
 0x17e   : > { %v1034_v53 = vadd.f32 %v997_v49, %v504_v47  ;;  %v959_v54 = vadd.f32 %v958_v52, %v869_v50 }
 0x180   : > { %1066 = vst [vmem:[#allocation2 + $0xa0] sm:$0xff] %v1034_v53  ;;  %v1019_v55 = vadd.f32 %v959_v54, %v489_v51 }
 0x182   : > { %1051 = vst [vmem:[#allocation2 + $0xf0] sm:$0xff] %v1019_v55  ;;  %v909_v56 = vpop.f32.mrf.mxu2 }
 0x183   : > { %v998_v58 = vpop.f32.mrf.mxu3 }
 0x184   : > { %v999_v59 = vadd.f32 %v998_v58, %v909_v56  ;;  %v872_v60 = vpop.f32.mrf.mxu0 }
 0x185   : > { %v961_v62 = vpop.f32.mrf.mxu1 }
 0x186   : > { %v1035_v63 = vadd.f32 %v999_v59, %v505_v57  ;;  %v962_v0 = vadd.f32 %v961_v62, %v872_v60 }
 0x188   : > { %1067 = vst [vmem:[#allocation2 + $0xf8] sm:$0xff] %v1035_v63  ;;  %v1020_v1 = vadd.f32 %v962_v0, %v490_v61 }
 0x18a   : > { %1052 = vst [vmem:[#allocation2 + $0x8] sm:$0xff] %v1020_v1  ;;  %v912_v2 = vpop.f32.mrf.mxu2 }
 0x18b   : > { %v1001_v4 = vpop.f32.mrf.mxu3 }
 0x18c   : > { %v1002_v5 = vadd.f32 %v1001_v4, %v912_v2  ;;  %v874_v6 = vpop.f32.mrf.mxu0 }
 0x18d   : > { %v963_v8 = vpop.f32.mrf.mxu1 }
 0x18e   : > { %v1036_v9 = vadd.f32 %v1002_v5, %v506_v3  ;;  %v964_v10 = vadd.f32 %v963_v8, %v874_v6 }
 0x190   : > { %1068 = vst [vmem:[#allocation2 + $0x20] sm:$0xff] %v1036_v9  ;;  %v1021_v11 = vadd.f32 %v964_v10, %v491_v7 }
 0x192   : > { %1053 = vst [vmem:[#allocation2 + $0x78] sm:$0xff] %v1021_v11  ;;  %v914_v12 = vpop.f32.mrf.mxu2 }
 0x193   : > { %v1003_v14 = vpop.f32.mrf.mxu3 }
 0x194   : > { %v1004_v15 = vadd.f32 %v1003_v14, %v914_v12 }
 0x196   : > { %v1037_v16 = vadd.f32 %v1004_v15, %v507_v13 }
 0x198   : > { %1069 = vst [vmem:[#allocation2 + $0x98] sm:$0xff] %v1037_v16 }
 0x199 PF: > { %p2249_p12 = scmp.ne.s32.totalorder %s2780_s19, 1 }
 0x19b   : > { %1073 = sbr.rel (%p2249_p12) target bundleno = 807 (0x327), region = 64 }
 0x1a0   : > { %v1124_v17 = vld [vmem:[%s2984_s11 + $0x90] sm:$0xff]  ;;  %v1122_v18 = vld [vmem:[%s2984_s11 + $0x80] sm:$0xff]  ;;  %v2804_v20 = vmov 0   ;;  %v1125_v21 = vld [vmem:[%s2984_s11 + $0x98] sm:$0xff] }
 0x1a1   : > { %v1106_v19 = vld [vmem:[%s2984_s11] sm:$0xff]  ;;  %2672 = vset.pattern.permute.xlu2 %v2804_v20  ;;  %2671 = vset.pattern.permute.xlu1 %v2804_v20  ;;  %v1123_v22 = vld [vmem:[%s2984_s11 + $0x88] sm:$0xff]  ;;  %v1108_v25 = vld [vmem:[%s2984_s11 + $0x10] sm:$0xff] }
 0x1a2   : > { %2670 = vset.pattern.permute.xlu0 %v2804_v20  ;;  %1230 = vperm.xlu2 %2672, %v1124_v17   ;;  %v1107_v23 = vld [vmem:[%s2984_s11 + $0x8] sm:$0xff]  ;;  %v1126_v24 = vld [vmem:[%s2984_s11 + $0xa0] sm:$0xff]  ;;  %v1109_v26 = vld [vmem:[%s2984_s11 + $0x18] sm:$0xff] }
 0x1a3   : > { %1220 = vperm.xlu0 %2670, %v1122_v18   ;;  %1140 = vperm.xlu1 %2671, %v1106_v19   ;;  %v1111_v27 = vld [vmem:[%s2984_s11 + $0x28] sm:$0xff]  ;;  %v1110_v29 = vld [vmem:[%s2984_s11 + $0x20] sm:$0xff]  ;;  %v1112_v30 = vld [vmem:[%s2984_s11 + $0x30] sm:$0xff] }
 0x1a4   : > { %v1127_v28 = vld [vmem:[%s2984_s11 + $0xa8] sm:$0xff]  ;;  %v1128_v31 = vld [vmem:[%s2984_s11 + $0xb0] sm:$0xff]  ;;  %v1129_v32 = vld [vmem:[%s2984_s11 + $0xb8] sm:$0xff] }
 0x1a5   : > { %v1131_v33 = vld [vmem:[%s2984_s11 + $0xc8] sm:$0xff]  ;;  %v1113_v34 = vld [vmem:[%s2984_s11 + $0x38] sm:$0xff]  ;;  %v1130_v35 = vld [vmem:[%s2984_s11 + $0xc0] sm:$0xff] }
 0x1a6   : > { %v1132_v36 = vld [vmem:[%s2984_s11 + $0xd0] sm:$0xff]  ;;  %v1114_v37 = vld [vmem:[%s2984_s11 + $0x40] sm:$0xff]  ;;  %v1115_v38 = vld [vmem:[%s2984_s11 + $0x48] sm:$0xff] }
 0x1a7   : > { %v2452_v39 = vld [vmem:[%s3258_s6 + $0x38] sm:$0xff]  ;;  %v1116_v42 = vld [vmem:[%s2984_s11 + $0x50] sm:$0xff]  ;;  %v1118_v45 = vld [vmem:[%s2984_s11 + $0x60] sm:$0xff] }
 0x1a8   : > { %2580 = vmatpush.bf16.msra.mxu3 %v2452_v39  ;;  %1691 = vmatpush.bf16.msra.mxu1 %v2452_v39  ;;  %v1117_v40 = vld [vmem:[%s2984_s11 + $0x58] sm:$0xff]  ;;  %v2451_v43 = vld [vmem:[%s3258_s6 + $0x30] sm:$0xff]  ;;  %v1134_v46 = vld [vmem:[%s2984_s11 + $0xe0] sm:$0xff] }
 0x1a9   : > { %v1133_v41 = vld [vmem:[%s2984_s11 + $0xd8] sm:$0xff]  ;;  %v1135_v47 = vld [vmem:[%s2984_s11 + $0xe8] sm:$0xff]  ;;  %v2459_v49 = vld [vmem:[%s3259_s7 + $0x30] sm:$0xff] }
 0x1aa   : > { %1235 = vperm.xlu2 %2672, %v1125_v21   ;;  %v2460_v44 = vld [vmem:[%s3259_s7 + $0x38] sm:$0xff]  ;;  %v2450_v48 = vld [vmem:[%s3258_s6 + $0x28] sm:$0xff]  ;;  %v2449_v50 = vld [vmem:[%s3258_s6 + $0x20] sm:$0xff] }
 0x1ab   : > { %1225 = vperm.xlu0 %2670, %v1123_v22   ;;  %1145 = vperm.xlu1 %2671, %v1107_v23   ;;  %v1137_v51 = vld [vmem:[%s2984_s11 + $0xf8] sm:$0xff]  ;;  %v1119_v52 = vld [vmem:[%s2984_s11 + $0x68] sm:$0xff]  ;;  %v1136_v53 = vld [vmem:[%s2984_s11 + $0xf0] sm:$0xff] }
 0x1ac   : > { %2581 = vmatpush.bf16.msra.mxu3 %v2451_v43  ;;  %1458 = vmatpush.bf16.msra.mxu0 %v2460_v44  ;;  %v2458_v54 = vld [vmem:[%s3259_s7 + $0x28] sm:$0xff]  ;;  %v2448_v55 = vld [vmem:[%s3258_s6 + $0x18] sm:$0xff]  ;;  %v2457_v56 = vld [vmem:[%s3259_s7 + $0x20] sm:$0xff] }
 0x1ad   : > { %2572 = vmatpush.bf16.msra.mxu2 %v2460_v44  ;;  %1692 = vmatpush.bf16.msra.mxu1 %v2451_v43  ;;  %v2447_v57 = vld [vmem:[%s3258_s6 + $0x10] sm:$0xff]  ;;  %v1121_v59 = vld [vmem:[%s2984_s11 + $0x78] sm:$0xff]  ;;  %v2446_v61 = vld [vmem:[%s3258_s6 + $0x8] sm:$0xff] }
 0x1ae   : > { %v1120_v58 = vld [vmem:[%s2984_s11 + $0x70] sm:$0xff]  ;;  %v2456_v60 = vld [vmem:[%s3259_s7 + $0x18] sm:$0xff]  ;;  %v2445_v63 = vld [vmem:[%s3258_s6] sm:$0xff] }
 0x1af   : > { %v2455_v62 = vld [vmem:[%s3259_s7 + $0x10] sm:$0xff]  ;;  %v2437_v0 = vld [vmem:[%s2979_s30 + $0x40] sm:$0xff]  ;;  %v2454_v1 = vld [vmem:[%s3259_s7 + $0x8] sm:$0xff] }
 0x1b0   : > { %2582 = vmatpush.bf16.msra.mxu3 %v2450_v48  ;;  %1459 = vmatpush.bf16.msra.mxu0 %v2459_v49  ;;  %v2453_v2 = vld [vmem:[%s3259_s7] sm:$0xff]  ;;  %v2438_v4 = vld [vmem:[%s2979_s30 + $0x48] sm:$0xff]  ;;  %v2439_v8 = vld [vmem:[%s2979_s30 + $0x50] sm:$0xff] }
 0x1b1   : > { %1693 = vmatpush.bf16.msra.mxu1 %v2450_v48  ;;  %2573 = vmatpush.bf16.msra.mxu2 %v2459_v49  ;;  %v2429_v3 = vld [vmem:[%s2979_s30] sm:$0xff]  ;;  %v2430_v5 = vld [vmem:[%s2979_s30 + $0x8] sm:$0xff]  ;;  %v1090_v9 = vld [vmem:[#allocation2 + $0x38] sm:$0xff] }
 0x1b2   : > { %1240 = vperm.xlu2 %2672, %v1126_v24   ;;  %v1074_v10 = vld [vmem:[#allocation2 + $0xb0] sm:$0xff]  ;;  %v1091_v11 = vld [vmem:[#allocation2 + $0x58] sm:$0xff]  ;;  %v1075_v12 = vld [vmem:[#allocation2] sm:$0xff] }
 0x1b3   : > { %1150 = vperm.xlu0 %2670, %v1108_v25   ;;  %1155 = vperm.xlu1 %2671, %v1109_v26   ;;  %v2431_v20 = vld [vmem:[%s2979_s30 + $0x10] sm:$0xff]  ;;  %v1092_v23 = vld [vmem:[#allocation2 + $0x40] sm:$0xff]  ;;  %v2440_v25 = vld [vmem:[%s2979_s30 + $0x58] sm:$0xff] }
 0x1b4   : > { %2583 = vmatpush.bf16.msra.mxu3 %v2449_v50  ;;  %1460 = vmatpush.bf16.msra.mxu0 %v2458_v54  ;;  %v1093_v26 = vld [vmem:[#allocation2 + $0xc8] sm:$0xff]  ;;  %v1078_v43 = vld [vmem:[#allocation2 + $0x50] sm:$0xff]  ;;  %v1094_v44 = vld [vmem:[#allocation2 + $0xe0] sm:$0xff] }
 0x1b5   : > { %1694 = vmatpush.bf16.msra.mxu1 %v2449_v50  ;;  %2574 = vmatpush.bf16.msra.mxu2 %v2458_v54 }
 0x1b8   : > { %2584 = vmatpush.bf16.msra.mxu3 %v2448_v55  ;;  %1461 = vmatpush.bf16.msra.mxu0 %v2457_v56 }
 0x1b9   : > { %1695 = vmatpush.bf16.msra.mxu1 %v2448_v55  ;;  %2575 = vmatpush.bf16.msra.mxu2 %v2457_v56  ;;  %v2442_v56 = vld [vmem:[%s2979_s30 + $0x68] sm:$0xff] }
 0x1ba   : > { %1165 = vperm.xlu2 %2672, %v1111_v27  }
 0x1bb   : > { %1245 = vperm.xlu0 %2670, %v1127_v28   ;;  %1160 = vperm.xlu1 %2671, %v1110_v29   ;;  %v1076_v28 = vld [vmem:[#allocation2 + $0xd8] sm:$0xff] }
 0x1bc   : > { %2585 = vmatpush.bf16.msra.mxu3 %v2447_v57  ;;  %1462 = vmatpush.bf16.msra.mxu0 %v2456_v60 }
 0x1bd   : > { %1696 = vmatpush.bf16.msra.mxu1 %v2447_v57  ;;  %2576 = vmatpush.bf16.msra.mxu2 %v2456_v60  ;;  %v1096_v57 = vld [vmem:[#allocation2 + $0x70] sm:$0xff]  ;;  %v1081_v60 = vld [vmem:[#allocation2 + $0x48] sm:$0xff] }
 0x1c0   : > { %2586 = vmatpush.bf16.msra.mxu3 %v2446_v61  ;;  %1463 = vmatpush.bf16.msra.mxu0 %v2455_v62 }
 0x1c1   : > { %1697 = vmatpush.bf16.msra.mxu1 %v2446_v61  ;;  %2577 = vmatpush.bf16.msra.mxu2 %v2455_v62  ;;  %v1080_v61 = vld [vmem:[#allocation2 + $0x30] sm:$0xff] }
 0x1c2   : > { %1170 = vperm.xlu2 %2672, %v1112_v30   ;;  %v1077_v30 = vld [vmem:[#allocation2 + $0x18] sm:$0xff] }
 0x1c3   : > { %1250 = vperm.xlu0 %2670, %v1128_v31   ;;  %1255 = vperm.xlu1 %2671, %v1129_v32  }
 0x1c4   : > { %2587 = vmatpush.bf16.msra.mxu3 %v2445_v63  ;;  %1464 = vmatpush.bf16.msra.mxu0 %v2454_v1 }
 0x1c5   : > { %1698 = vmatpush.bf16.msra.mxu1 %v2445_v63  ;;  %2578 = vmatpush.bf16.msra.mxu2 %v2454_v1  ;;  %v2434_v1 = vld [vmem:[%s2979_s30 + $0x28] sm:$0xff] }
 0x1c7   : > { %1739 = vmatmul.bf16.vlgmr.msra.gmra.mxu3 %v2437_v0 }
 0x1c8   : > { %1465 = vmatpush.bf16.msra.mxu0 %v2453_v2  ;;  %1699 = vmatmul.bf16.vlgmr.msra.gmra.mxu1 %v2429_v3 }
 0x1c9   : > { %2579 = vmatpush.bf16.msra.mxu2 %v2453_v2 }
 0x1ca   : > { %1265 = vperm.xlu2 %2672, %v1131_v33  }
 0x1cb   : > { %1175 = vperm.xlu0 %2670, %v1113_v34   ;;  %1260 = vperm.xlu1 %2671, %v1130_v35   ;;  %v2432_v35 = vld [vmem:[%s2979_s30 + $0x18] sm:$0xff] }
 0x1d2   : > { %1270 = vperm.xlu2 %2672, %v1132_v36  }
 0x1d3   : > { %1180 = vperm.xlu0 %2670, %v1114_v37   ;;  %1185 = vperm.xlu1 %2671, %v1115_v38  }
 0x1d7   : > { %1744 = vmatmul.bf16.gmra.mxu3 %v2438_v4 }
 0x1d8   : > { %1704 = vmatmul.bf16.gmra.mxu1 %v2430_v5 }
 0x1da   : > { %1195 = vperm.xlu2 %2672, %v1117_v40   ;;  %v2441_v40 = vld [vmem:[%s2979_s30 + $0x60] sm:$0xff] }
 0x1db   : > { %1275 = vperm.xlu0 %2670, %v1133_v41   ;;  %1190 = vperm.xlu1 %2671, %v1116_v42   ;;  %v1095_v41 = vld [vmem:[#allocation2 + $0x90] sm:$0xff] }
 0x1e2   : > { %1200 = vperm.xlu2 %2672, %v1118_v45   ;;  %v1079_v45 = vld [vmem:[#allocation2 + $0x68] sm:$0xff] }
 0x1e3   : > { %1280 = vperm.xlu0 %2670, %v1134_v46   ;;  %1285 = vperm.xlu1 %2671, %v1135_v47  }
 0x1e7   : > { %1749 = vmatmul.bf16.gmra.mxu3 %v2439_v8  ;;  %v2443_v8 = vld [vmem:[%s2979_s30 + $0x70] sm:$0xff] }
 0x1e8   : > { %1709 = vmatmul.bf16.gmra.mxu1 %v2431_v20 }
 0x1ea   : > { %1295 = vperm.xlu2 %2672, %v1137_v51   ;;  %v2433_v51 = vld [vmem:[%s2979_s30 + $0x20] sm:$0xff] }
 0x1eb   : > { %1205 = vperm.xlu0 %2670, %v1119_v52   ;;  %1290 = vperm.xlu1 %2671, %v1136_v53  }
 0x1f3   : > { %1210 = vperm.xlu0 %2670, %v1120_v58   ;;  %1215 = vperm.xlu1 %2671, %v1121_v59   ;;  %v1097_v58 = vld [vmem:[#allocation2 + $0xc0] sm:$0xff] }
 0x1f7   : > { %1754 = vmatmul.bf16.gmra.mxu3 %v2440_v25  ;;  %v1101_v25 = vld [vmem:[#allocation2 + $0x28] sm:$0xff] }
 0x1f8   : > { %1714 = vmatmul.bf16.gmra.mxu1 %v2432_v35 }
 0x1fc   : > { %v1231_v15 = vpop.permute.xlu2 %1230 }
 0x1fd   : > { %v1316_v31 = vmul.f32 %v1231_v15, %v1092_v23 }
 0x204   : > { %v1236_v24 = vpop.permute.xlu2 %1235 }
 0x205   : > { %v1317_v32 = vmul.f32 %v1236_v24, %v1093_v26  ;;  %v2444_v24 = vld [vmem:[%s2979_s30 + $0x78] sm:$0xff] }
 0x207   : > { %v1339_v37 = vpack.c.bf16 %v1317_v32, %v1316_v31  ;;  %1759 = vmatmul.bf16.gmra.mxu3 %v2441_v40  ;;  %v1102_v40 = vld [vmem:[#allocation2 + $0xa0] sm:$0xff] }
 0x208   : > { %1719 = vmatmul.bf16.gmra.mxu1 %v2433_v51 }
 0x20c   : > { %v1241_v38 = vpop.permute.xlu2 %1240 }
 0x20d   : > { %v1318_v49 = vmul.f32 %v1241_v38, %v1094_v44 }
 0x214   : > { %v1166_v48 = vpop.permute.xlu2 %1165 }
 0x215   : > { %v1221_v6 = vpop.permute.xlu0 %1220  ;;  %v1141_v7 = vpop.permute.xlu1 %1140  ;;  %v1303_v50 = vmul.f32 %v1166_v48, %v1079_v45  ;;  %v1086_v45 = vld [vmem:[#allocation2 + $0x60] sm:$0xff] }
 0x216   : > { %v1314_v16 = vmul.f32 %v1221_v6, %v1090_v9  ;;  %v1298_v17 = vmul.f32 %v1141_v7, %v1074_v10  ;;  %v1098_v9 = vld [vmem:[#allocation2 + $0xa8] sm:$0xff] }
 0x217   : > { %1764 = vmatmul.bf16.gmra.mxu3 %v2442_v56 }
 0x218   : > { %1724 = vmatmul.bf16.gmra.mxu1 %v2434_v1 }
 0x21c   : > { %v1171_v2 = vpop.permute.xlu2 %1170 }
 0x21d   : > { %v1226_v13 = vpop.permute.xlu0 %1225  ;;  %v1146_v14 = vpop.permute.xlu1 %1145  ;;  %v1304_v3 = vmul.f32 %v1171_v2, %v1080_v61  ;;  %v1105_v61 = vld [vmem:[#allocation2 + $0x98] sm:$0xff] }
 0x21e   : > { %v1315_v18 = vmul.f32 %v1226_v13, %v1091_v11  ;;  %v1299_v19 = vmul.f32 %v1146_v14, %v1075_v12  ;;  %v1082_v11 = vld [vmem:[#allocation2 + $0x80] sm:$0xff]  ;;  %v1083_v13 = vld [vmem:[#allocation2 + $0x88] sm:$0xff]  ;;  %v1099_v14 = vld [vmem:[#allocation2 + $0xd0] sm:$0xff] }
 0x220   : > { %v1330_v21 = vpack.c.bf16 %v1299_v19, %v1298_v17  ;;  %v1338_v22 = vpack.c.bf16 %v1315_v18, %v1314_v16  ;;  %v2435_v18 = vld [vmem:[%s2979_s30 + $0x30] sm:$0xff] }
 0x222   : > { %1466 = vmatmul.bf16.vlgmr.msra.gmra.mxu0 %v1330_v21  ;;  %1506 = vmatmul.bf16.vlgmr.msra.gmra.mxu2 %v1338_v22 }
 0x224   : > { %v1266_v7 = vpop.permute.xlu2 %1265 }
 0x225   : > { %v1151_v27 = vpop.permute.xlu0 %1150  ;;  %v1156_v29 = vpop.permute.xlu1 %1155  ;;  %v1323_v19 = vmul.f32 %v1266_v7, %v1099_v14 }
 0x226   : > { %v1300_v33 = vmul.f32 %v1151_v27, %v1076_v28  ;;  %v1301_v34 = vmul.f32 %v1156_v29, %v1077_v30  ;;  %v1084_v27 = vld [vmem:[#allocation2 + $0xe8] sm:$0xff]  ;;  %v1100_v28 = vld [vmem:[#allocation2 + $0x10] sm:$0xff]  ;;  %v1085_v30 = vld [vmem:[#allocation2 + $0xb8] sm:$0xff] }
 0x227   : > { %1769 = vmatmul.bf16.gmra.mxu3 %v2443_v8 }
 0x228   : > { %v1331_v36 = vpack.c.bf16 %v1301_v34, %v1300_v33  ;;  %1729 = vmatmul.bf16.gmra.mxu1 %v2435_v18  ;;  %v2436_v33 = vld [vmem:[%s2979_s30 + $0x38] sm:$0xff] }
 0x22c   : > { %v1271_v22 = vpop.permute.xlu2 %1270 }
 0x22d   : > { %v1246_v39 = vpop.permute.xlu0 %1245  ;;  %v1161_v42 = vpop.permute.xlu1 %1160  ;;  %v1324_v34 = vmul.f32 %v1271_v22, %v1100_v28 }
 0x22e   : > { %v1319_v46 = vmul.f32 %v1246_v39, %v1095_v41  ;;  %v1302_v47 = vmul.f32 %v1161_v42, %v1078_v43  ;;  %v1103_v41 = vld [vmem:[#allocation2 + $0xf8] sm:$0xff]  ;;  %v1087_v43 = vld [vmem:[#allocation2 + $0xf0] sm:$0xff] }
 0x230   : > { %v1332_v53 = vpack.c.bf16 %v1303_v50, %v1302_v47  ;;  %v1340_v54 = vpack.c.bf16 %v1319_v46, %v1318_v49 }
 0x232   : > { %1471 = vmatmul.bf16.gmra.mxu0 %v1331_v36  ;;  %1511 = vmatmul.bf16.gmra.mxu2 %v1339_v37 }
 0x234   : > { %v1196_v29 = vpop.permute.xlu2 %1195 }
 0x235   : > { %v1251_v52 = vpop.permute.xlu0 %1250  ;;  %v1256_v55 = vpop.permute.xlu1 %1255  ;;  %v1309_v35 = vmul.f32 %v1196_v29, %v1085_v30 }
 0x236   : > { %v1320_v62 = vmul.f32 %v1251_v52, %v1096_v57  ;;  %v1321_v63 = vmul.f32 %v1256_v55, %v1097_v58  ;;  %v1104_v55 = vld [vmem:[#allocation2 + $0x20] sm:$0xff]  ;;  %v1088_v57 = vld [vmem:[#allocation2 + $0x8] sm:$0xff] }
 0x237   : > { %1774 = vmatmul.bf16.gmra.mxu3 %v2444_v24 }
 0x238   : > { %v1341_v6 = vpack.c.bf16 %v1321_v63, %v1320_v62  ;;  %1734 = vmatmul.bf16.gmra.mxu1 %v2436_v33 }
 0x23c   : > { %v1201_v44 = vpop.permute.xlu2 %1200 }
 0x23d   : > { %v1176_v59 = vpop.permute.xlu0 %1175  ;;  %v1261_v4 = vpop.permute.xlu1 %1260  ;;  %v1310_v49 = vmul.f32 %v1201_v44, %v1086_v45 }
 0x23e   : > { %v1305_v0 = vmul.f32 %v1176_v59, %v1081_v60  ;;  %v1322_v15 = vmul.f32 %v1261_v4, %v1098_v9  ;;  %v1089_v59 = vld [vmem:[#allocation2 + $0x78] sm:$0xff] }
 0x240   : > { %v1333_v5 = vpack.c.bf16 %v1305_v0, %v1304_v3  ;;  %v1342_v21 = vpack.c.bf16 %v1323_v19, %v1322_v15 }
 0x242   : > { %1476 = vmatmul.bf16.gmra.mxu0 %v1332_v53  ;;  %1516 = vmatmul.bf16.gmra.mxu2 %v1340_v54 }
 0x244   : > { %v1296_v60 = vpop.permute.xlu2 %1295 }
 0x245   : > { %v1181_v10 = vpop.permute.xlu0 %1180  ;;  %v1186_v12 = vpop.permute.xlu1 %1185  ;;  %v1329_v2 = vmul.f32 %v1296_v60, %v1105_v61 }
 0x246   : > { %v1306_v16 = vmul.f32 %v1181_v10, %v1082_v11  ;;  %v1307_v17 = vmul.f32 %v1186_v12, %v1083_v13  ;;  %v1700_v53 = vpop.f32.mrf.mxu1  ;;  %v3179_v11 = vld [vmem:[%s3260_s8] ss:$0 sm:$0xff] }
 0x248   : > { %v1334_v20 = vpack.c.bf16 %v1307_v17, %v1306_v16 }
 0x24a   : > { %v1740_v54 = vpop.f32.mrf.mxu3 }
 0x24d   : > { %v1276_v23 = vpop.permute.xlu0 %1275  ;;  %v1191_v26 = vpop.permute.xlu1 %1190 }
 0x24e   : > { %v1325_v31 = vmul.f32 %v1276_v23, %v1101_v25  ;;  %v1308_v32 = vmul.f32 %v1191_v26, %v1084_v27  ;;  %v1702_v62 = vpop.f32.mrf.mxu1 }
 0x250   : > { %v1335_v37 = vpack.c.bf16 %v1309_v35, %v1308_v32  ;;  %v1343_v38 = vpack.c.bf16 %v1325_v31, %v1324_v34 }
 0x252   : > { %1481 = vmatmul.bf16.gmra.mxu0 %v1333_v5  ;;  %1521 = vmatmul.bf16.gmra.mxu2 %v1341_v6  ;;  %v1742_v5 = vpop.f32.mrf.mxu3 }
 0x255   : > { %v1281_v36 = vpop.permute.xlu0 %1280  ;;  %v1286_v39 = vpop.permute.xlu1 %1285 }
 0x256   : > { %v1326_v46 = vmul.f32 %v1281_v36, %v1102_v40  ;;  %v1327_v47 = vmul.f32 %v1286_v39, %v1103_v41  ;;  %v1705_v6 = vpop.f32.mrf.mxu1 }
 0x258   : > { %v1344_v52 = vpack.c.bf16 %v1327_v47, %v1326_v46 }
 0x25a   : > { %v1745_v7 = vpop.f32.mrf.mxu3 }
 0x25d   : > { %v1206_v42 = vpop.permute.xlu0 %1205  ;;  %v1291_v50 = vpop.permute.xlu1 %1290 }
 0x25e   : > { %v1311_v48 = vmul.f32 %v1206_v42, %v1087_v43  ;;  %v1328_v63 = vmul.f32 %v1291_v50, %v1104_v55  ;;  %v1707_v9 = vpop.f32.mrf.mxu1 }
 0x260   : > { %v1336_v51 = vpack.c.bf16 %v1311_v48, %v1310_v49  ;;  %v1345_v4 = vpack.c.bf16 %v1329_v2, %v1328_v63 }
 0x262   : > { %1486 = vmatmul.bf16.gmra.mxu0 %v1334_v20  ;;  %1526 = vmatmul.bf16.gmra.mxu2 %v1342_v21  ;;  %v1747_v13 = vpop.f32.mrf.mxu3 }
 0x265   : > { %v1211_v56 = vpop.permute.xlu0 %1210  ;;  %v1216_v58 = vpop.permute.xlu1 %1215 }
 0x266   : > { %v1312_v0 = vmul.f32 %v1211_v56, %v1088_v57  ;;  %v1313_v1 = vmul.f32 %v1216_v58, %v1089_v59  ;;  %v1710_v17 = vpop.f32.mrf.mxu1 }
 0x268   : > { %v1337_v3 = vpack.c.bf16 %v1313_v1, %v1312_v0 }
 0x26a   : > { %v1750_v27 = vpop.f32.mrf.mxu3 }
 0x26e   : > { %v1712_v31 = vpop.f32.mrf.mxu1 }
 0x272   : > { %1491 = vmatmul.bf16.gmra.mxu0 %v1335_v37  ;;  %1531 = vmatmul.bf16.gmra.mxu2 %v1343_v38  ;;  %v1752_v38 = vpop.f32.mrf.mxu3 }
 0x276   : > { %v1715_v44 = vpop.f32.mrf.mxu1 }
 0x27e   : > { %v1717_v57 = vpop.f32.mrf.mxu1 }
 0x282   : > { %1496 = vmatmul.bf16.gmra.mxu0 %v1336_v51  ;;  %1536 = vmatmul.bf16.gmra.mxu2 %v1344_v52  ;;  %v1755_v52 = vpop.f32.mrf.mxu3 }
 0x28a   : > { %v1757_v1 = vpop.f32.mrf.mxu3 }
 0x292   : > { %1501 = vmatmul.bf16.gmra.mxu0 %v1337_v3  ;;  %1541 = vmatmul.bf16.gmra.mxu2 %v1345_v4 }
 0x29f   : > { %v1467_v8 = vpop.f32.mrf.mxu0 }
 0x2a0   : > { %v1701_v10 = vadd.f32 %v1700_v53, %v1467_v8 }
 0x2a2   : > { %v1784_v15 = vadd.f32 %v3179_v11, %v1701_v10 }
 0x2a4   : > { %v1816_v20 = vmax.f32 %v1784_v15, 0.0  ;;  %v1760_v15 = vpop.f32.mrf.mxu3 }
 0x2a5   : > { %v1507_v12 = vpop.f32.mrf.mxu2 }
 0x2a6   : > { %v1741_v18 = vadd.f32 %v1740_v54, %v1507_v12 }
 0x2a7   : > { %v1469_v14 = vpop.f32.mrf.mxu0 }
 0x2a8   : > { %v1703_v16 = vadd.f32 %v1702_v62, %v1469_v14  ;;  %v1800_v23 = vadd.f32 %v3179_v11, %v1741_v18 }
 0x2aa   : > { %v1785_v19 = vadd.f32 %v3179_v11, %v1703_v16  ;;  %v1832_v29 = vmax.f32 %v1800_v23, 0.0 }
 0x2ac   : > { %v1817_v21 = vmax.f32 %v1785_v19, 0.0 }
 0x2ad   : > { %v1509_v22 = vpop.f32.mrf.mxu2 }
 0x2ae   : > { %v2464_v24 = vpack.c.bf16 %v1817_v21, %v1816_v20  ;;  %v1743_v25 = vadd.f32 %v1742_v5, %v1509_v22 }
 0x2af   : > { %v1472_v26 = vpop.f32.mrf.mxu0 }
 0x2b0   : > { %2465 = vst [vmem:[%s2989_s21] sm:$0xff] %v2464_v24   ;;  %v1801_v28 = vadd.f32 %v3179_v11, %v1743_v25  ;;  %v1706_v33 = vadd.f32 %v1705_v6, %v1472_v26 }
 0x2b2   : > { %v1833_v30 = vmax.f32 %v1801_v28, 0.0  ;;  %v1786_v36 = vadd.f32 %v3179_v11, %v1706_v33 }
 0x2b4   : > { %v2504_v32 = vpack.c.bf16 %v1833_v30, %v1832_v29  ;;  %v1818_v41 = vmax.f32 %v1786_v36, 0.0  ;;  %v1762_v29 = vpop.f32.mrf.mxu3 }
 0x2b5   : > { %v1512_v34 = vpop.f32.mrf.mxu2 }
 0x2b6   : > { %2548 = vst [vmem:[%s2989_s21 + $0x40] sm:$0xff] %v2504_v32   ;;  %v1746_v39 = vadd.f32 %v1745_v7, %v1512_v34  ;;  %v1720_v7 = vpop.f32.mrf.mxu1 }
 0x2b7   : > { %v1474_v35 = vpop.f32.mrf.mxu0 }
 0x2b8   : > { %v1708_v37 = vadd.f32 %v1707_v9, %v1474_v35  ;;  %v1802_v45 = vadd.f32 %v3179_v11, %v1746_v39 }
 0x2ba   : > { %v1787_v40 = vadd.f32 %v3179_v11, %v1708_v37  ;;  %v1834_v50 = vmax.f32 %v1802_v45, 0.0 }
 0x2bc   : > { %v1819_v42 = vmax.f32 %v1787_v40, 0.0 }
 0x2bd   : > { %v1514_v43 = vpop.f32.mrf.mxu2 }
 0x2be   : > { %v2469_v46 = vpack.c.bf16 %v1819_v42, %v1818_v41  ;;  %v1748_v47 = vadd.f32 %v1747_v13, %v1514_v43  ;;  %v1722_v20 = vpop.f32.mrf.mxu1  ;;  %v1765_v41 = vpop.f32.mrf.mxu3 }
 0x2bf   : > { %v1477_v48 = vpop.f32.mrf.mxu0 }
 0x2c0   : > { %2541 = vst [vmem:[%s2989_s21 + $0x8] sm:$0xff] %v2469_v46   ;;  %v1803_v49 = vadd.f32 %v3179_v11, %v1748_v47  ;;  %v1711_v54 = vadd.f32 %v1710_v17, %v1477_v48 }
 0x2c2   : > { %v1835_v51 = vmax.f32 %v1803_v49, 0.0  ;;  %v1788_v58 = vadd.f32 %v3179_v11, %v1711_v54 }
 0x2c4   : > { %v2509_v53 = vpack.c.bf16 %v1835_v51, %v1834_v50  ;;  %v1820_v62 = vmax.f32 %v1788_v58, 0.0 }
 0x2c5   : > { %v1517_v55 = vpop.f32.mrf.mxu2 }
 0x2c6   : > { %2549 = vst [vmem:[%s2989_s21 + $0x48] sm:$0xff] %v2509_v53   ;;  %v1751_v60 = vadd.f32 %v1750_v27, %v1517_v55  ;;  %v1725_v35 = vpop.f32.mrf.mxu1 }
 0x2c7   : > { %v1479_v56 = vpop.f32.mrf.mxu0 }
 0x2c8   : > { %v1713_v59 = vadd.f32 %v1712_v31, %v1479_v56  ;;  %v1804_v2 = vadd.f32 %v3179_v11, %v1751_v60  ;;  %v1767_v56 = vpop.f32.mrf.mxu3 }
 0x2ca   : > { %v1789_v61 = vadd.f32 %v3179_v11, %v1713_v59  ;;  %v1836_v8 = vmax.f32 %v1804_v2, 0.0 }
 0x2cc   : > { %v1821_v63 = vmax.f32 %v1789_v61, 0.0 }
 0x2cd   : > { %v1519_v0 = vpop.f32.mrf.mxu2 }
 0x2ce   : > { %v2474_v3 = vpack.c.bf16 %v1821_v63, %v1820_v62  ;;  %v1753_v4 = vadd.f32 %v1752_v38, %v1519_v0  ;;  %v1727_v49 = vpop.f32.mrf.mxu1 }
 0x2cf   : > { %v1482_v5 = vpop.f32.mrf.mxu0 }
 0x2d0   : > { %2542 = vst [vmem:[%s2989_s21 + $0x10] sm:$0xff] %v2474_v3   ;;  %v1805_v6 = vadd.f32 %v3179_v11, %v1753_v4  ;;  %v1716_v12 = vadd.f32 %v1715_v44, %v1482_v5  ;;  %v1770_v5 = vpop.f32.mrf.mxu3 }
 0x2d2   : > { %v1837_v9 = vmax.f32 %v1805_v6, 0.0  ;;  %v1790_v16 = vadd.f32 %v3179_v11, %v1716_v12 }
 0x2d4   : > { %v2514_v10 = vpack.c.bf16 %v1837_v9, %v1836_v8  ;;  %v1822_v21 = vmax.f32 %v1790_v16, 0.0 }
 0x2d5   : > { %v1522_v13 = vpop.f32.mrf.mxu2 }
 0x2d6   : > { %2550 = vst [vmem:[%s2989_s21 + $0x50] sm:$0xff] %v2514_v10   ;;  %v1756_v18 = vadd.f32 %v1755_v52, %v1522_v13  ;;  %v1730_v60 = vpop.f32.mrf.mxu1 }
 0x2d7   : > { %v1484_v14 = vpop.f32.mrf.mxu0 }
 0x2d8   : > { %v1718_v17 = vadd.f32 %v1717_v57, %v1484_v14  ;;  %v1806_v24 = vadd.f32 %v3179_v11, %v1756_v18  ;;  %v1772_v18 = vpop.f32.mrf.mxu3 }
 0x2da   : > { %v1791_v19 = vadd.f32 %v3179_v11, %v1718_v17  ;;  %v1838_v30 = vmax.f32 %v1806_v24, 0.0 }
 0x2dc   : > { %v1823_v22 = vmax.f32 %v1791_v19, 0.0 }
 0x2dd   : > { %v1524_v23 = vpop.f32.mrf.mxu2 }
 0x2de   : > { %v2479_v25 = vpack.c.bf16 %v1823_v22, %v1822_v21  ;;  %v1758_v26 = vadd.f32 %v1757_v1, %v1524_v23  ;;  %v1732_v10 = vpop.f32.mrf.mxu1 }
 0x2df   : > { %v1487_v27 = vpop.f32.mrf.mxu0 }
 0x2e0   : > { %2543 = vst [vmem:[%s2989_s21 + $0x18] sm:$0xff] %v2479_v25   ;;  %v1807_v28 = vadd.f32 %v3179_v11, %v1758_v26  ;;  %v1721_v33 = vadd.f32 %v1720_v7, %v1487_v27 }
 0x2e2   : > { %v1839_v31 = vmax.f32 %v1807_v28, 0.0  ;;  %v1792_v37 = vadd.f32 %v3179_v11, %v1721_v33 }
 0x2e4   : > { %v2519_v32 = vpack.c.bf16 %v1839_v31, %v1838_v30  ;;  %v1824_v42 = vmax.f32 %v1792_v37, 0.0 }
 0x2e5   : > { %v1527_v34 = vpop.f32.mrf.mxu2 }
 0x2e6   : > { %2551 = vst [vmem:[%s2989_s21 + $0x58] sm:$0xff] %v2519_v32   ;;  %v1761_v39 = vadd.f32 %v1760_v15, %v1527_v34  ;;  %v1735_v24 = vpop.f32.mrf.mxu1  ;;  %v1775_v32 = vpop.f32.mrf.mxu3 }
 0x2e7   : > { %v1489_v36 = vpop.f32.mrf.mxu0 }
 0x2e8   : > { %v1723_v38 = vadd.f32 %v1722_v20, %v1489_v36  ;;  %v1808_v45 = vadd.f32 %v3179_v11, %v1761_v39 }
 0x2ea   : > { %v1793_v40 = vadd.f32 %v3179_v11, %v1723_v38  ;;  %v1840_v51 = vmax.f32 %v1808_v45, 0.0 }
 0x2ec   : > { %v1825_v43 = vmax.f32 %v1793_v40, 0.0 }
 0x2ed   : > { %v1529_v44 = vpop.f32.mrf.mxu2 }
 0x2ee   : > { %v2484_v46 = vpack.c.bf16 %v1825_v43, %v1824_v42  ;;  %v1763_v47 = vadd.f32 %v1762_v29, %v1529_v44  ;;  %v1737_v36 = vpop.f32.mrf.mxu1  ;;  %v1777_v44 = vpop.f32.mrf.mxu3 }
 0x2ef   : > { %v1492_v48 = vpop.f32.mrf.mxu0 }
 0x2f0   : > { %2544 = vst [vmem:[%s2989_s21 + $0x20] sm:$0xff] %v2484_v46   ;;  %v1809_v50 = vadd.f32 %v3179_v11, %v1763_v47  ;;  %v1726_v54 = vadd.f32 %v1725_v35, %v1492_v48 }
 0x2f2   : > { %v1841_v52 = vmax.f32 %v1809_v50, 0.0  ;;  %v1794_v58 = vadd.f32 %v3179_v11, %v1726_v54 }
 0x2f4   : > { %v2524_v53 = vpack.c.bf16 %v1841_v52, %v1840_v51  ;;  %v1826_v63 = vmax.f32 %v1794_v58, 0.0 }
 0x2f5   : > { %v1532_v55 = vpop.f32.mrf.mxu2 }
 0x2f6   : > { %2552 = vst [vmem:[%s2989_s21 + $0x60] sm:$0xff] %v2524_v53   ;;  %v1766_v61 = vadd.f32 %v1765_v41, %v1532_v55 }
 0x2f7   : > { %v1494_v57 = vpop.f32.mrf.mxu0 }
 0x2f8   : > { %v1728_v59 = vadd.f32 %v1727_v49, %v1494_v57  ;;  %v1810_v2 = vadd.f32 %v3179_v11, %v1766_v61 }
 0x2fa   : > { %v1795_v62 = vadd.f32 %v3179_v11, %v1728_v59  ;;  %v1842_v8 = vmax.f32 %v1810_v2, 0.0 }
 0x2fc   : > { %v1827_v0 = vmax.f32 %v1795_v62, 0.0 }
 0x2fd   : > { %v1534_v1 = vpop.f32.mrf.mxu2 }
 0x2fe   : > { %v2489_v3 = vpack.c.bf16 %v1827_v0, %v1826_v63  ;;  %v1768_v4 = vadd.f32 %v1767_v56, %v1534_v1 }
 0x2ff   : > { %v1497_v6 = vpop.f32.mrf.mxu0 }
 0x300   : > { %2545 = vst [vmem:[%s2989_s21 + $0x28] sm:$0xff] %v2489_v3   ;;  %v1811_v7 = vadd.f32 %v3179_v11, %v1768_v4  ;;  %v1731_v13 = vadd.f32 %v1730_v60, %v1497_v6 }
 0x302   : > { %v1843_v9 = vmax.f32 %v1811_v7, 0.0  ;;  %v1796_v16 = vadd.f32 %v3179_v11, %v1731_v13 }
 0x304   : > { %v2529_v12 = vpack.c.bf16 %v1843_v9, %v1842_v8  ;;  %v1828_v21 = vmax.f32 %v1796_v16, 0.0 }
 0x305   : > { %v1537_v14 = vpop.f32.mrf.mxu2 }
 0x306   : > { %2553 = vst [vmem:[%s2989_s21 + $0x68] sm:$0xff] %v2529_v12   ;;  %v1771_v19 = vadd.f32 %v1770_v5, %v1537_v14 }
 0x307   : > { %v1499_v15 = vpop.f32.mrf.mxu0 }
 0x308   : > { %v1733_v17 = vadd.f32 %v1732_v10, %v1499_v15  ;;  %v1812_v25 = vadd.f32 %v3179_v11, %v1771_v19 }
 0x30a   : > { %v1797_v20 = vadd.f32 %v3179_v11, %v1733_v17  ;;  %v1844_v30 = vmax.f32 %v1812_v25, 0.0 }
 0x30c   : > { %v1829_v22 = vmax.f32 %v1797_v20, 0.0 }
 0x30d   : > { %v1539_v23 = vpop.f32.mrf.mxu2 }
 0x30e   : > { %v2494_v26 = vpack.c.bf16 %v1829_v22, %v1828_v21  ;;  %v1773_v27 = vadd.f32 %v1772_v18, %v1539_v23 }
 0x30f   : > { %v1502_v28 = vpop.f32.mrf.mxu0 }
 0x310   : > { %2546 = vst [vmem:[%s2989_s21 + $0x30] sm:$0xff] %v2494_v26   ;;  %v1813_v29 = vadd.f32 %v3179_v11, %v1773_v27  ;;  %v1736_v34 = vadd.f32 %v1735_v24, %v1502_v28 }
 0x312   : > { %v1845_v31 = vmax.f32 %v1813_v29, 0.0  ;;  %v1798_v38 = vadd.f32 %v3179_v11, %v1736_v34 }
 0x314   : > { %v2534_v33 = vpack.c.bf16 %v1845_v31, %v1844_v30  ;;  %v1830_v42 = vmax.f32 %v1798_v38, 0.0 }
 0x315   : > { %v1542_v35 = vpop.f32.mrf.mxu2 }
 0x316   : > { %2554 = vst [vmem:[%s2989_s21 + $0x70] sm:$0xff] %v2534_v33   ;;  %v1776_v40 = vadd.f32 %v1775_v32, %v1542_v35 }
 0x317   : > { %v1504_v37 = vpop.f32.mrf.mxu0 }
 0x318   : > { %v1738_v39 = vadd.f32 %v1737_v36, %v1504_v37  ;;  %v1814_v46 = vadd.f32 %v3179_v11, %v1776_v40 }
 0x31a   : > { %v1799_v41 = vadd.f32 %v3179_v11, %v1738_v39  ;;  %v1846_v50 = vmax.f32 %v1814_v46, 0.0 }
 0x31c   : > { %v1831_v43 = vmax.f32 %v1799_v41, 0.0 }
 0x31d   : > { %v1544_v45 = vpop.f32.mrf.mxu2 }
 0x31e   : > { %v2499_v47 = vpack.c.bf16 %v1831_v43, %v1830_v42  ;;  %v1778_v48 = vadd.f32 %v1777_v44, %v1544_v45 }
 0x320   : > { %2547 = vst [vmem:[%s2989_s21 + $0x38] sm:$0xff] %v2499_v47   ;;  %v1815_v49 = vadd.f32 %v3179_v11, %v1778_v48 }
 0x322   : > { %v1847_v51 = vmax.f32 %v1815_v49, 0.0 }
 0x324   : > { %v2539_v52 = vpack.c.bf16 %v1847_v51, %v1846_v50 }
 0x326   : > { %2555 = vst [vmem:[%s2989_s21 + $0x78] sm:$0xff] %v2539_v52  }
 0x327 PF: > { %s35_s22 = sadd.s32 1, %s2796_s22   ;;  %s3276_s10 = sld [smem:[#allocation16_spill]] }
 0x328   : > { %p32_p13 = scmp.ge.s32.totalorder %s35_s22, 6   ;;  %s3277_s19 = sld [smem:[#allocation12_spill]] }
 0x329   : > { %s3278_s1 = sld [smem:[#allocation13_spill]]  ;;  %s3281_s17 = smov %s2772_s18 }
 0x32a   : > { %s3279_s20 = sld [smem:[#allocation14_spill]]  ;;  %s3282_s18 = smov %s2776_s0 }
 0x32b   : > { %s3280_s21 = sld [smem:[#allocation15_spill]]  ;;  %34 = sbr.rel (!%p32_p13) target bundleno = 12 (0xc), region = 109 }
 0x32d   : > { %s3283_s0 = smov %s3276_s10 }
 0x330   :  { %1934 = vsyncpa [#allocation7], 1 }
 0x331   :  { %1936 = vsyncpa [#allocation7 + $0x1], 1 }

// kernel: sage_mlp_forward.3
= control target key start
LH: loop header
LB: loop body
LE: loop exit
PB: predicated region body
PF: predicated region fallthrough
CT: control target
= control target key end

     0   :  { %s3992_s14 = smov [#allocation4]   ;;  %s3993_s15 = smov [#allocation5]   ;;  %s5036_s0 = inlined_call_operand.vmem [shape: s32[2], index: 0, kind: input, shape index: {}]   ;;  %s5037_s2 = inlined_call_operand.hbm [shape: bf16[512,512], index: 2, kind: input, shape index: {}]   ;;  %s5038_s3 = inlined_call_operand.vmem [shape: bf16[512,128], index: 3, kind: input, shape index: {}, may-alias: {3,4}]   ;;  %s5039_s4 = inlined_call_operand.vmem [shape: bf16[512,128], index: 4, kind: input, shape index: {}, may-alias: {3,4}]   ;;  %s5040_s5 = inlined_call_operand.vmem [shape: f32[512,1], index: 5, kind: input, shape index: {}]   ;;  %s5041_s6 = inlined_call_operand.vmem [shape: bf16[128,128], index: 6, kind: input, shape index: {}]   ;;  %s5042_s7 = inlined_call_operand.vmem [shape: bf16[128,128], index: 7, kind: input, shape index: {}]   ;;  %s5043_s8 = inlined_call_operand.vmem [shape: f32[1,128], index: 8, kind: input, shape index: {}]   ;;  %s5044_s9 = inlined_call_operand.hbm [shape: bf16[128,128], index: 9, kind: input, shape index: {}]   ;;  %s5045_s10 = inlined_call_operand.vmem [shape: f32[1,128], index: 10, kind: input, shape index: {}]   ;;  %s5046_s11 = inlined_call_operand.hbm [shape: bf16[128,128], index: 11, kind: input, shape index: {}]   ;;  %s5047_s12 = inlined_call_operand.vmem [shape: f32[1,128], index: 12, kind: input, shape index: {}]   ;;  %s5048_s13 = inlined_call_operand.hbm [shape: f32[512,128], index: 13, kind: output, shape index: {}]   ;;  %s5049_s1 = inlined_call_operand.vmem [shape: s32[4], index: 1, kind: input, shape index: {}]  }
   0x1   :  { %5062 = sst [smem:[#allocation28_spill]] %s5038_s3  ;;  %s19_s27 = sshll.u32 %s5036_s0, 4  ;;  %s20_s27 = int_to_ptr.vmem [resolvable:$true] %s19_s27 }
   0x2   :  { %5063 = sst [smem:[#allocation29_spill]] %s5041_s6  ;;  %s24_s30 = sshll.u32 %s5049_s1, 4  ;;  %s25_s30 = int_to_ptr.vmem [resolvable:$true] %s24_s30 }
   0x3   :  { %5064 = sst [smem:[#allocation30_spill]] %s5042_s7 }
   0x4   :  { %5065 = sst [smem:[#allocation31_spill]] %s5043_s8 }
   0x5   :  { %5066 = sst [smem:[#allocation32_spill]] %s5044_s9 }
   0x6   :  { %5067 = sst [smem:[#allocation33_spill]] %s5045_s10 }
   0x7   :  { %5068 = sst [smem:[#allocation34_spill]] %s5046_s11 }
   0x8   :  { %5069 = sst [smem:[#allocation35_spill]] %s5047_s12 }
   0x9   :  { %5070 = sst [smem:[#allocation36_spill]] %s5048_s13 }
   0xa   :  { %22 = dma.vmem_to_smem %s20_s27, 16, %s3992_s14, [#allocation3] }
   0xb   :  { %27 = dma.vmem_to_smem %s25_s30, 16, %s3993_s15, [#allocation3] }
   0xc   :  { %3934 = dma.done.wait [#allocation3], 32 }
   0xd   :  { %3935 = vsyncadd [#allocation3], 4294967264 }
   0xe   :  { %30 = sfence }
   0xf   :  { %31 = vsyncpa [#allocation7], 0 }
  0x10   :  { %33 = vsyncpa [#allocation7 + $0x1], 0 }
  0x11   :  { %34 = vsyncpa [#allocation10], 0 }
  0x12   :  { %35 = vsyncpa [#allocation8], 0 }
  0x13   :  { %37 = vsyncpa [#allocation8 + $0x1], 0  ;;  %s4081_s16 = smov 0   ;;  %s4083_s0 = smov 0  }
  0x14   :  { %s4085_s17 = smov 0   ;;  %s4087_s1 = smov 0  }
  0x15   :  { %s4089_s18 = smov 0   ;;  %s4091_s19 = smov 0  }
  0x16   :  { %s4093_s20 = smov 0   ;;  %s4095_s21 = smov 0  }
  0x17   :  { %s4097_s22 = smov 0   ;;  %s4099_s23 = smov 0  }
  0x18   :  { %s4101_s24 = smov 0  }
  0x19 LB: > { %5071 = sst [smem:[#allocation19_spill]] %s3950_s16  ;;  %s2942_s25 = sadd.s32 4294967295, %s3990_s24   ;;  %s3990_s24 = sphi %s4101_s24, %s43_s24   ;;  %s3986_s23 = sphi %s4099_s23, %s5113_s23   ;;  %s3982_s22 = sphi %s4097_s22, %s5105_s22   ;;  %s3978_s21 = sphi %s4095_s21, %s5112_s21   ;;  %s3974_s20 = sphi %s4093_s20, %s5104_s20   ;;  %s3970_s19 = sphi %s4091_s19, %s5111_s19   ;;  %s3966_s18 = sphi %s4089_s18, %s5110_s18   ;;  %s3962_s1 = sphi %s4087_s1, %s5109_s1   ;;  %s3958_s17 = sphi %s4085_s17, %s5102_s17   ;;  %s3954_s0 = sphi %s4083_s0, %s5108_s0   ;;  %s3950_s16 = sphi %s4081_s16, %s5107_s16  }
  0x1a   : > { %5072 = sst [smem:[#allocation20_spill]] %s3958_s17  ;;  %s2943_s26 = sadd.s32 4294967294, %s3990_s24  }
  0x1b   : > { %5073 = sst [smem:[#allocation21_spill]] %s3982_s22  ;;  %p83_p0 = scmp.ne.s32.totalorder %s3966_s18, %s3962_s1 }
  0x1c   : > { %p4137_p1 = scmp.eq.s32.totalorder %s2942_s25, 0  ;;  %p337_p2 = scmp.ne.s32.totalorder %s3958_s17, %s3954_s0 }
  0x1d   : > { %p338_p4 = scmp.eq.s32.totalorder %s2942_s25, 3  ;;  %p343_p5 = scmp.ne.s32.totalorder %s3954_s0, %s3950_s16 }
  0x1e   : > { %p4145_p3 = por %p4137_p1, %p83_p0  ;;  %p344_p6 = scmp.eq.s32.totalorder %s2943_s26, 3 }
  0x1f   : > { %p4151_p7 = por %p338_p4, %p337_p2  ;;  %p2948_p8 = scmp.ge.s32.totalorder %s3990_s24, 1 }
  0x20   : > { %p4156_p9 = por %p344_p6, %p343_p5  ;;  %p351_p10 = scmp.lt.s32.totalorder %s3990_s24, 5 }
  0x21   : > { %s5076_s29 = scalar_select %p4151_p7, 1, 0 }
  0x22   : > { %s5078_s30 = scalar_select %p4156_p9, 1, 0 }
  0x23   : > { %5077 = sst [smem:[#allocation22_spill]] %s5076_s29  ;;  %p4164_p11 = pnand %p2948_p8, %p351_p10 }
  0x24   : > { %5079 = sst [smem:[#allocation23_spill]] %s5078_s30  ;;  %s3994_s25 = smov [#allocation9]  }
  0x25   : > { %s5080_s9 = sld [smem:[#allocation32_spill]]  ;;  %p3490_p12 = pneg %p4164_p11 }
  0x26   : > { %s373_s26 = sshll.u32 %s3994_s25, 4  ;;  %s5082_s11 = sld [smem:[#allocation34_spill]]  ;;  %s374_s26 = int_to_ptr.vmem [resolvable:$true] %s373_s26 }
  0x27   : > { %p3491_p13 = pnand %p3490_p12, %p4137_p1  ;;  %s3996_s16 = smov 4  }
  0x28   : > { %s3997_s29 = smov [#allocation11]   ;;  %s52_s25 = sadd.s32 1, %s3982_s22 }
  0x29   : > { %s390_s12 = sshll.u32 %s3997_s29, 4  ;;  %p53_p0 = scmp.ge.s32.totalorder %s52_s25, 2  ;;  %s391_s12 = int_to_ptr.vmem [resolvable:$true] %s390_s12 }
  0x2a   : > { %s55_s10 = sadd.s32 1, %s3986_s23  ;;  %s2944_s30 = sshll.u32 %s3986_s23, 1 }
  0x2b   : > { %s371_s1 = sshll.u32 %s5080_s9, 4  ;;  %s3995_s9 = smov 64   ;;  %s372_s1 = int_to_ptr.hbm [resolvable:$true] %s371_s1 }
  0x2c   : > { %s388_s15 = sshll.u32 %s5082_s11, 4  ;;  %s5115_s25 = smov (%p53_p0, %s52_s25), 0  ;;  %s389_s15 = int_to_ptr.hbm [resolvable:$true] %s388_s15 }
  0x2d   : > { %3493 = dma.hbm_to_vmem [thread:$0]  (!%p3491_p13), %s372_s1, 1024, %s374_s26, [#allocation10], %s3995_s9, %s3995_s9, %s3996_s16  }
  0x2e   : > { %3496 = dma.hbm_to_vmem [thread:$0]  (!%p3491_p13), %s389_s15, 1024, %s391_s12, [#allocation10], %s3995_s9, %s3995_s9, %s3996_s16  }
  0x2f   : > { %5083 = sst [smem:[#allocation24_spill]] %s5115_s25  ;;  %s5117_s10 = smov (!%p53_p0, %s55_s10), %s3986_s23 }
  0x30   : > { %s60_s14 = sadd.s32 %s3982_s22, %s2944_s30  ;;  %p77_p2 = scmp.ne.s32.totalorder %s3970_s19, %s3966_s18 }
  0x31   : > { %p57_p4 = scmp.ge.s32.totalorder %s5117_s10, 2  ;;  %p78_p5 = scmp.eq.s32.totalorder %s3990_s24, 0 }
  0x32   : > { %s327_s29 = sadd.s32 1, %s3958_s17  ;;  %s61_s1 = sld [smem:[#allocation5 + %s60_s14]] }
  0x33   : > { %s5119_s10 = smov (%p57_p4, %s5117_s10), 0  ;;  %p4188_p6 = por %p78_p5, %p77_p2 }
  0x34   : > { %5084 = sst [smem:[#allocation25_spill]] %s5119_s10  ;;  %s5058_s12 = sand.u32 1, %s3970_s19  }
  0x35   : > { %s2945_s16 = sshll.u32 %s5119_s10, 1  ;;  %s65_s26 = ssub.s32 %s3986_s23, %s5119_s10 }
  0x36   : > { %s63_s15 = sadd.s32 %s2945_s16, %s5115_s25  ;;  %p325_p8 = scmp.eq.s32.totalorder %s65_s26, 0 }
  0x37   : > { %s64_s30 = sld [smem:[#allocation5 + %s63_s15]]  ;;  %p3509_p10 = scmp.lt.s32.totalorder %s3990_s24, 4 }
  0x38   : > { %s4199_s11 = scalar_select %p325_p8, %s3958_s17, %s327_s29  }
  0x39   : > { %s2952_s22 = sshll.u32 %s5058_s12, 8  ;;  %s5121_s14 = smov (!%p4188_p6, %s60_s14), 0 }
  0x3a   : > { %5086 = sst [smem:[#allocation26_spill]] %s4199_s11  ;;  %s70_s6 = sadd.s32 1, %s3970_s19 }
  0x3b   : > { %s3480_s8 = scalar_select %p4188_p6, [#allocation5], [#allocation13] }
  0x3c   : > { %p4210_p13 = pnand %p3509_p10, %p4188_p6  ;;  %s5125_s14 = smov (!%p3509_p10, %s5121_s14), 0 }
  0x3d   : > { %s5123_s8 = smov (!%p3509_p10, %s3480_s8), [#allocation14]  ;;  %s66_s7 = ssub.s32 %s61_s1, %s64_s30 }
  0x3e   : > { %s67_s3 = sor.u32 %s66_s7, %s65_s26  ;;  %s414_s15 = sld [smem:[%s5123_s8 + %s5125_s14]] }
  0x3f   : > { %p68_p12 = scmp.eq.s32.totalorder %s67_s3, 0  ;;  %s411_s12 = scalar_lea.vmem [#allocation6], %s2952_s22 }
  0x40   : > { %s4217_s10 = sshll.u32 %s411_s12, 4  ;;  %s3362_s25 = sshll.u32 %s3986_s23, 7  ;;  %s426_s10 = int_to_ptr.vmem [resolvable:$true] %s4217_s10 }
  0x41   : > { %s4215_s29 = scalar_select %p68_p12, %s3970_s19, %s70_s6  }
  0x42   : > { %s5089_s17 = sand.u32 1, %s3970_s19   ;;  %p3836_p2 = pneg %p4210_p13 }
  0x43   : > { %5088 = sst [smem:[#allocation27_spill]] %s4215_s29  ;;  %s408_s6 = scalar_lea.sflag [#allocation7], %s5089_s17 }
  0x44   : > { %s2955_s1 = sshll.u32 %s414_s15, 1 }
  0x45   : > { %s420_s7 = sadd.s32 %s3362_s25, %s2955_s1  ;;  %s3839_s25 = scalar_lea.hbm %s5037_s2, 1024 }
  0x46   : > { %s2957_s26 = sshll.u32 %s420_s7, 2 }
  0x47   : > { %s422_s30 = scalar_lea.hbm %s5037_s2, %s2957_s26 }
  0x48   : > { %s423_s11 = sshll.u32 %s422_s30, 4  ;;  %s424_s11 = int_to_ptr.hbm [resolvable:$true] %s423_s11 }
  0x49   : > { %s3832_s29 = sshra.s32 %s424_s11, 4  ;;  %s3833_s29 = int_to_ptr.hbm [resolvable:$true] %s3832_s29 }
  0x4a   : > { %s3834_s8 = scalar_lea.hbm %s3833_s29, 256  ;;  %p3840_p6 = scmp.lt.s32.totalorder %s3833_s29, %s5037_s2 }
  0x4b   : > { %p3835_p0 = scmp.ne.s32.totalorder %s3833_s29, %s3834_s8  ;;  %p3841_p8 = scmp.lt.s32.totalorder %s3839_s25, %s3834_s8 }
  0x4d   : > { %p3837_p4 = pnand %p3836_p2, %p3835_p0  ;;  %p3842_p10 = por %p3841_p8, %p3840_p6 }
  0x4f   : > { %p3838_p5 = pneg %p3837_p4 }
  0x51   : > { %p3843_p12 = pnand %p3842_p10, %p3838_p5 }
  0x53   : > { %3846 = shalt.err (!%p3843_p12)
}
  0x54   : > { %s3998_s17 = smov 256   ;;  %s3999_s1 = smov 128  }
  0x55   : > { %s4000_s7 = smov 8   ;;  %470 = sbr.rel (%p4164_p11) target bundleno = 1528 (0x5f8), region = 64 }
  0x56   : > { %3502 = dma.hbm_to_vmem [thread:$0]  (!%p4210_p13), %s424_s11, 4096, %s426_s10, %s408_s6, %s3998_s17, %s3999_s1, %s4000_s7  }
  0x57   : > { %s472_s26 = sand.u32 (!%p4164_p11), 1, %s3966_s18  }
  0x58   : > { %s2959_s3 = sshll.u32 (!%p4164_p11), %s472_s26, 8  ;;  %s473_s9 = scalar_lea.sflag (!%p4164_p11), [#allocation7], %s472_s26 }
  0x59   : > { %s4239_s30 = scalar_lea.vmem (!%p4164_p11), [#allocation6], %s2959_s3 }
  0x5a   : > { %3937 = dma.done.wait (%p4145_p3), %s473_s9, 4096  }
  0x5b   : > { %3939 = vsyncadd (%p4145_p3), %s473_s9, 4294963200 }
  0x5c   : > { %3941 = dma.done.wait (%p4137_p1), [#allocation10], 2048  }
  0x5d   : > { %3943 = vsyncadd (%p4137_p1), [#allocation10], 4294965248  ;;  %s2963_s10 = sshll.u32 %s3978_s21, 1  ;;  %s541_s11 = sand.u32 1, %s3954_s0  }
  0x5e   : > { %s550_s13 = sadd.s32 %s3974_s20, %s2963_s10  ;;  %s2962_s16 = sshll.u32 %s541_s11, 8 }
  0x5f   : > { %s551_s29 = sld [smem:[#allocation5 + %s550_s13]]  ;;  %s2966_s6 = sshll.u32 %s3978_s21, 5 }
  0x60   : > { %p562_p11 = scmp.lt.s32.totalorder %s2966_s6, 63  ;;  %s5090_s3 = sld [smem:[#allocation28_spill]] }
  0x61   : > { %s4270_s10 = scalar_lea.vmem [#allocation12], %s2962_s16  ;;  %p2970_p1 = scmp.ne.s32.totalorder %s3974_s20, 0 }
  0x62   : > { %s5127_s6 = smov (!%p562_p11, %s2966_s6), 63 }
  0x63   : > { %s2967_s8 = sshll.u32 %s5127_s6, 2  ;;  %s2969_s25 = sshll.u32 %s5127_s6, 3 }
  0x64   : > { %s4258_s14 = scalar_lea.vmem %s5039_s4, %s2967_s8  ;;  %s4263_s17 = scalar_lea.vmem %s5040_s5, %s2969_s25 }
  0x65   : > { %s2964_s28 = sshll.u32 %s551_s29, 5 }
  0x66   : > { %p553_p3 = scmp.lt.s32.totalorder %s2964_s28, 63  ;;  %577 = sbr.rel (%p2970_p1) target bundleno = 140 (0x8c), region = 80 }
  0x68   : > { %s5129_s28 = smov (!%p553_p3, %s2964_s28), 63 }
  0x69   : > { %s2965_s1 = sshll.u32 %s5129_s28, 2 }
  0x6a   : > { %s4268_s9 = scalar_lea.vmem %s5090_s3, %s2965_s1 }
  0x6b   : > { %v4001_v0 = vmov 0.0  }
  0x6c   : > { %578 = vst [vmem:[#allocation2 + $0xb0] sm:$0xff] %v4001_v0 }
  0x6d   : > { %579 = vst [vmem:[#allocation2] sm:$0xff] %v4001_v0 }
  0x6e   : > { %580 = vst [vmem:[#allocation2 + $0xd8] sm:$0xff] %v4001_v0 }
  0x6f   : > { %581 = vst [vmem:[#allocation2 + $0x18] sm:$0xff] %v4001_v0 }
  0x70   : > { %582 = vst [vmem:[#allocation2 + $0x50] sm:$0xff] %v4001_v0 }
  0x71   : > { %583 = vst [vmem:[#allocation2 + $0x68] sm:$0xff] %v4001_v0 }
  0x72   : > { %584 = vst [vmem:[#allocation2 + $0x30] sm:$0xff] %v4001_v0 }
  0x73   : > { %585 = vst [vmem:[#allocation2 + $0x48] sm:$0xff] %v4001_v0 }
  0x74   : > { %586 = vst [vmem:[#allocation2 + $0x80] sm:$0xff] %v4001_v0 }
  0x75   : > { %587 = vst [vmem:[#allocation2 + $0x88] sm:$0xff] %v4001_v0 }
  0x76   : > { %588 = vst [vmem:[#allocation2 + $0xe8] sm:$0xff] %v4001_v0 }
  0x77   : > { %589 = vst [vmem:[#allocation2 + $0xb8] sm:$0xff] %v4001_v0 }
  0x78   : > { %590 = vst [vmem:[#allocation2 + $0x60] sm:$0xff] %v4001_v0 }
  0x79   : > { %591 = vst [vmem:[#allocation2 + $0xf0] sm:$0xff] %v4001_v0 }
  0x7a   : > { %592 = vst [vmem:[#allocation2 + $0x8] sm:$0xff] %v4001_v0 }
  0x7b   : > { %593 = vst [vmem:[#allocation2 + $0x78] sm:$0xff] %v4001_v0 }
  0x7c   : > { %594 = vst [vmem:[#allocation2 + $0x38] sm:$0xff] %v4001_v0 }
  0x7d   : > { %595 = vst [vmem:[#allocation2 + $0x58] sm:$0xff] %v4001_v0 }
  0x7e   : > { %596 = vst [vmem:[#allocation2 + $0x40] sm:$0xff] %v4001_v0 }
  0x7f   : > { %597 = vst [vmem:[#allocation2 + $0xc8] sm:$0xff] %v4001_v0 }
  0x80   : > { %598 = vst [vmem:[#allocation2 + $0xe0] sm:$0xff] %v4001_v0 }
  0x81   : > { %599 = vst [vmem:[#allocation2 + $0x90] sm:$0xff] %v4001_v0 }
  0x82   : > { %600 = vst [vmem:[#allocation2 + $0x70] sm:$0xff] %v4001_v0 }
  0x83   : > { %601 = vst [vmem:[#allocation2 + $0xc0] sm:$0xff] %v4001_v0 }
  0x84   : > { %602 = vst [vmem:[#allocation2 + $0xa8] sm:$0xff] %v4001_v0 }
  0x85   : > { %603 = vst [vmem:[#allocation2 + $0xd0] sm:$0xff] %v4001_v0 }
  0x86   : > { %604 = vst [vmem:[#allocation2 + $0x10] sm:$0xff] %v4001_v0 }
  0x87   : > { %605 = vst [vmem:[#allocation2 + $0x28] sm:$0xff] %v4001_v0 }
  0x88   : > { %606 = vst [vmem:[#allocation2 + $0xa0] sm:$0xff] %v4001_v0 }
  0x89   : > { %607 = vst [vmem:[#allocation2 + $0xf8] sm:$0xff] %v4001_v0 }
  0x8a   : > { %608 = vst [vmem:[#allocation2 + $0x20] sm:$0xff] %v4001_v0 }
  0x8b   : > { %609 = vst [vmem:[#allocation2 + $0x98] sm:$0xff] %v4001_v0 }
  0x8c PF: > { %s610_s13 = sld [smem:[#allocation4 + %s3978_s21]] }
  0x92   : > { %p2971_p13 = scmp.ge.s32.totalorder %s3974_s20, %s610_s13 }
  0x94   : > { %614 = sbr.rel (%p2971_p13) target bundleno = 443 (0x1bb), region = 84 }
  0x99   : > { %v3402_v1 = vld [vmem:[%s4268_s9 + $0x38] sm:$0xff]  ;;  %v3401_v3 = vld [vmem:[%s4268_s9 + $0x30] sm:$0xff]  ;;  %v3400_v5 = vld [vmem:[%s4268_s9 + $0x28] sm:$0xff] }
  0x9a   : > { %v3410_v2 = vld [vmem:[%s4268_s9 + $0x78] sm:$0xff]  ;;  %967 = vmatpush.bf16.msra.mxu0 %v3402_v1  ;;  %3460 = vmatpush.bf16.msra.mxu2 %v3402_v1  ;;  %v3409_v4 = vld [vmem:[%s4268_s9 + $0x70] sm:$0xff]  ;;  %v3408_v6 = vld [vmem:[%s4268_s9 + $0x68] sm:$0xff] }
  0x9b   : > { %1056 = vmatpush.bf16.msra.mxu1 %v3410_v2  ;;  %3468 = vmatpush.bf16.msra.mxu3 %v3410_v2  ;;  %v3399_v7 = vld [vmem:[%s4268_s9 + $0x20] sm:$0xff]  ;;  %v3398_v9 = vld [vmem:[%s4268_s9 + $0x18] sm:$0xff]  ;;  %v3397_v11 = vld [vmem:[%s4268_s9 + $0x10] sm:$0xff] }
  0x9c   : > { %v3407_v8 = vld [vmem:[%s4268_s9 + $0x60] sm:$0xff]  ;;  %v3406_v10 = vld [vmem:[%s4268_s9 + $0x58] sm:$0xff]  ;;  %v3405_v12 = vld [vmem:[%s4268_s9 + $0x50] sm:$0xff] }
  0x9d   : > { %v3396_v13 = vld [vmem:[%s4268_s9 + $0x8] sm:$0xff]  ;;  %v3395_v15 = vld [vmem:[%s4268_s9] sm:$0xff]  ;;  %v2982_v29 = vld [vmem:[%s4239_s30 + $0x10] sm:$0xf] }
  0x9e   : > { %968 = vmatpush.bf16.msra.mxu0 %v3401_v3  ;;  %3461 = vmatpush.bf16.msra.mxu2 %v3401_v3  ;;  %v3404_v14 = vld [vmem:[%s4268_s9 + $0x48] sm:$0xff]  ;;  %v3403_v16 = vld [vmem:[%s4268_s9 + $0x40] sm:$0xff]  ;;  %v3366_v30 = vld [vmem:[%s4239_s30 + $0x14] sm:$0xf0] }
  0x9f   : > { %1057 = vmatpush.bf16.msra.mxu1 %v3409_v4  ;;  %3469 = vmatpush.bf16.msra.mxu3 %v3409_v4  ;;  %v2974_v17 = vld [vmem:[%s4239_s30] sm:$0xf]  ;;  %v3364_v18 = vld [vmem:[%s4239_s30 + $0x4] sm:$0xf0]  ;;  %v3363_v21 = vld [vmem:[%s4239_s30 + $0x4] sm:$0xf]  ;;  %v2983_v37 = vor.u32 %v3366_v30, %v2982_v29 }
  0xa0   : > { %v3038_v19 = vld [vmem:[%s4239_s30 + $0x80] sm:$0xf]  ;;  %v3380_v20 = vld [vmem:[%s4239_s30 + $0x84] sm:$0xf0]  ;;  %v2976_v22 = vld [vmem:[%s4239_s30 + $0x8] sm:$0xf0]  ;;  %v2975_v25 = vor.u32 %v3364_v18, %v2974_v17 }
  0xa1   : > { %v3379_v23 = vld [vmem:[%s4239_s30 + $0x84] sm:$0xf]  ;;  %v3040_v24 = vld [vmem:[%s4239_s30 + $0x88] sm:$0xf0]  ;;  %v3039_v26 = vor.u32 %v3380_v20, %v3038_v19  ;;  %v2979_v27 = vor.u32 %v3363_v21, %v2976_v22  ;;  %v3046_v31 = vld [vmem:[%s4239_s30 + $0x90] sm:$0xf] }
  0xa2   : > { %969 = vmatpush.bf16.msra.mxu0 %v3400_v5  ;;  %3462 = vmatpush.bf16.msra.mxu2 %v3400_v5  ;;  %v3043_v28 = vor.u32 %v3379_v23, %v3040_v24  ;;  %v3382_v32 = vld [vmem:[%s4239_s30 + $0x94] sm:$0xf0]  ;;  %v3365_v33 = vld [vmem:[%s4239_s30 + $0x14] sm:$0xf]  ;;  %v2984_v34 = vld [vmem:[%s4239_s30 + $0x18] sm:$0xf0] }
  0xa3   : > { %1058 = vmatpush.bf16.msra.mxu1 %v3408_v6  ;;  %3470 = vmatpush.bf16.msra.mxu3 %v3408_v6  ;;  %v3381_v35 = vld [vmem:[%s4239_s30 + $0x94] sm:$0xf]  ;;  %v3048_v36 = vld [vmem:[%s4239_s30 + $0x98] sm:$0xf0]  ;;  %v3047_v38 = vor.u32 %v3382_v32, %v3046_v31  ;;  %v2987_v39 = vor.u32 %v3365_v33, %v2984_v34  ;;  %v2990_v41 = vld [vmem:[%s4239_s30 + $0x20] sm:$0xf] }
  0xa4   : > { %v3051_v40 = vor.u32 %v3381_v35, %v3048_v36  ;;  %v3368_v42 = vld [vmem:[%s4239_s30 + $0x24] sm:$0xf0]  ;;  %v3054_v43 = vld [vmem:[%s4239_s30 + $0xa0] sm:$0xf]  ;;  %v3367_v45 = vld [vmem:[%s4239_s30 + $0x24] sm:$0xf] }
  0xa5   : > { %v3384_v44 = vld [vmem:[%s4239_s30 + $0xa4] sm:$0xf0]  ;;  %v2992_v46 = vld [vmem:[%s4239_s30 + $0x28] sm:$0xf0]  ;;  %v3383_v47 = vld [vmem:[%s4239_s30 + $0xa4] sm:$0xf]  ;;  %v2991_v49 = vor.u32 %v3368_v42, %v2990_v41 }
  0xa6   : > { %970 = vmatpush.bf16.msra.mxu0 %v3399_v7  ;;  %3463 = vmatpush.bf16.msra.mxu2 %v3399_v7  ;;  %v3056_v48 = vld [vmem:[%s4239_s30 + $0xa8] sm:$0xf0]  ;;  %v3055_v50 = vor.u32 %v3384_v44, %v3054_v43  ;;  %v2995_v51 = vor.u32 %v3367_v45, %v2992_v46  ;;  %v2998_v53 = vld [vmem:[%s4239_s30 + $0x30] sm:$0xf]  ;;  %v3370_v54 = vld [vmem:[%s4239_s30 + $0x34] sm:$0xf0] }
  0xa7   : > { %1059 = vmatpush.bf16.msra.mxu1 %v3407_v8  ;;  %3471 = vmatpush.bf16.msra.mxu3 %v3407_v8  ;;  %v3059_v52 = vor.u32 %v3383_v47, %v3056_v48  ;;  %v3062_v55 = vld [vmem:[%s4239_s30 + $0xb0] sm:$0xf]  ;;  %v3386_v56 = vld [vmem:[%s4239_s30 + $0xb4] sm:$0xf0]  ;;  %v3369_v57 = vld [vmem:[%s4239_s30 + $0x34] sm:$0xf]  ;;  %v2999_v61 = vor.u32 %v3370_v54, %v2998_v53 }
  0xa8   : > { %v3000_v58 = vld [vmem:[%s4239_s30 + $0x38] sm:$0xf0]  ;;  %v3385_v59 = vld [vmem:[%s4239_s30 + $0xb4] sm:$0xf]  ;;  %v3063_v62 = vor.u32 %v3386_v56, %v3062_v55  ;;  %v3006_v1 = vld [vmem:[%s4239_s30 + $0x40] sm:$0xf] }
  0xa9   : > { %v3064_v60 = vld [vmem:[%s4239_s30 + $0xb8] sm:$0xf0]  ;;  %v3003_v63 = vor.u32 %v3369_v57, %v3000_v58  ;;  %v3372_v2 = vld [vmem:[%s4239_s30 + $0x44] sm:$0xf0]  ;;  %v3070_v3 = vld [vmem:[%s4239_s30 + $0xc0] sm:$0xf] }
  0xaa   : > { %971 = vmatpush.bf16.msra.mxu0 %v3398_v9  ;;  %3464 = vmatpush.bf16.msra.mxu2 %v3398_v9  ;;  %v3067_v0 = vor.u32 %v3385_v59, %v3064_v60  ;;  %v3388_v4 = vld [vmem:[%s4239_s30 + $0xc4] sm:$0xf0]  ;;  %v3371_v5 = vld [vmem:[%s4239_s30 + $0x44] sm:$0xf]  ;;  %v3008_v6 = vld [vmem:[%s4239_s30 + $0x48] sm:$0xf0]  ;;  %v3007_v9 = vor.u32 %v3372_v2, %v3006_v1 }
  0xab   : > { %1060 = vmatpush.bf16.msra.mxu1 %v3406_v10  ;;  %3472 = vmatpush.bf16.msra.mxu3 %v3406_v10  ;;  %v3387_v7 = vld [vmem:[%s4239_s30 + $0xc4] sm:$0xf]  ;;  %v3072_v8 = vld [vmem:[%s4239_s30 + $0xc8] sm:$0xf0]  ;;  %v3071_v10 = vor.u32 %v3388_v4, %v3070_v3  ;;  %v3373_v17 = vld [vmem:[%s4239_s30 + $0x54] sm:$0xf] }
  0xac   : > { %v3016_v18 = vld [vmem:[%s4239_s30 + $0x58] sm:$0xf0]  ;;  %v3389_v19 = vld [vmem:[%s4239_s30 + $0xd4] sm:$0xf]  ;;  %v3375_v29 = vld [vmem:[%s4239_s30 + $0x64] sm:$0xf] }
  0xad   : > { %v3080_v20 = vld [vmem:[%s4239_s30 + $0xd8] sm:$0xf0]  ;;  %v3019_v23 = vor.u32 %v3373_v17, %v3016_v18  ;;  %v3024_v30 = vld [vmem:[%s4239_s30 + $0x68] sm:$0xf0]  ;;  %v3391_v31 = vld [vmem:[%s4239_s30 + $0xe4] sm:$0xf] }
  0xae   : > { %972 = vmatpush.bf16.msra.mxu0 %v3397_v11  ;;  %3465 = vmatpush.bf16.msra.mxu2 %v3397_v11  ;;  %v3011_v11 = vor.u32 %v3371_v5, %v3008_v6  ;;  %v3083_v24 = vor.u32 %v3389_v19, %v3080_v20  ;;  %v3088_v32 = vld [vmem:[%s4239_s30 + $0xe8] sm:$0xf0]  ;;  %v3027_v35 = vor.u32 %v3375_v29, %v3024_v30  ;;  %v3377_v41 = vld [vmem:[%s4239_s30 + $0x74] sm:$0xf]  ;;  %v3032_v42 = vld [vmem:[%s4239_s30 + $0x78] sm:$0xf0] }
  0xaf   : > { %1061 = vmatpush.bf16.msra.mxu1 %v3405_v12  ;;  %3473 = vmatpush.bf16.msra.mxu3 %v3405_v12  ;;  %v3075_v12 = vor.u32 %v3387_v7, %v3072_v8  ;;  %v3091_v36 = vor.u32 %v3391_v31, %v3088_v32  ;;  %v3393_v43 = vld [vmem:[%s4239_s30 + $0xf4] sm:$0xf]  ;;  %v3096_v44 = vld [vmem:[%s4239_s30 + $0xf8] sm:$0xf0]  ;;  %v3035_v47 = vor.u32 %v3377_v41, %v3032_v42  ;;  %v616_v59 = vld [vmem:[#allocation2] sm:$0xff] }
  0xb0   : > { %v3099_v48 = vor.u32 %v3393_v43, %v3096_v44  ;;  %v631_v55 = vld [vmem:[#allocation2 + $0x38] sm:$0xff]  ;;  %v635_v31 = vld [vmem:[#allocation2 + $0xe0] sm:$0xff]  ;;  %v636_v41 = vld [vmem:[#allocation2 + $0x90] sm:$0xff] }
  0xb1   : > { %v632_v1 = vld [vmem:[#allocation2 + $0x58] sm:$0xff] }
  0xb2   : > { %973 = vmatpush.bf16.msra.mxu0 %v3396_v13  ;;  %3466 = vmatpush.bf16.msra.mxu2 %v3396_v13  ;;  %v3014_v13 = vld [vmem:[%s4239_s30 + $0x50] sm:$0xf]  ;;  %v617_v5 = vld [vmem:[#allocation2 + $0xd8] sm:$0xff] }
  0xb3   : > { %1062 = vmatpush.bf16.msra.mxu1 %v3404_v14  ;;  %3474 = vmatpush.bf16.msra.mxu3 %v3404_v14  ;;  %v3374_v14 = vld [vmem:[%s4239_s30 + $0x54] sm:$0xf0] }
  0xb4   : > { %v3015_v21 = vor.u32 %v3374_v14, %v3014_v13 }
  0xb6   : > { %974 = vmatpush.bf16.msra.mxu0 %v3395_v15  ;;  %3467 = vmatpush.bf16.msra.mxu2 %v3395_v15  ;;  %v3078_v15 = vld [vmem:[%s4239_s30 + $0xd0] sm:$0xf] }
  0xb7   : > { %1063 = vmatpush.bf16.msra.mxu1 %v3403_v16  ;;  %3475 = vmatpush.bf16.msra.mxu3 %v3403_v16  ;;  %v3390_v16 = vld [vmem:[%s4239_s30 + $0xd4] sm:$0xf0] }
  0xb8   : > { %v3079_v22 = vor.u32 %v3390_v16, %v3078_v15  ;;  %v618_v15 = vld [vmem:[#allocation2 + $0x18] sm:$0xff] }
  0xb9   : > { %975 = vmatmul.bf16.vlgmr.msra.gmra.mxu0 %v2975_v25  ;;  %1015 = vmatmul.bf16.vlgmr.msra.gmra.mxu2 %v3039_v26  ;;  %v3022_v25 = vld [vmem:[%s4239_s30 + $0x60] sm:$0xf]  ;;  %v3376_v26 = vld [vmem:[%s4239_s30 + $0x64] sm:$0xf0] }
  0xba   : > { %1064 = vmatmul.bf16.vlgmr.msra.gmra.mxu1 %v2979_v27  ;;  %1104 = vmatmul.bf16.vlgmr.msra.gmra.mxu3 %v3043_v28  ;;  %v3086_v27 = vld [vmem:[%s4239_s30 + $0xe0] sm:$0xf]  ;;  %v3392_v28 = vld [vmem:[%s4239_s30 + $0xe4] sm:$0xf0]  ;;  %v3023_v33 = vor.u32 %v3376_v26, %v3022_v25  ;;  %v619_v25 = vld [vmem:[#allocation2 + $0x50] sm:$0xff] }
  0xbb   : > { %v3087_v34 = vor.u32 %v3392_v28, %v3086_v27 }
  0xc9   : > { %980 = vmatmul.bf16.gmra.mxu0 %v2983_v37  ;;  %1020 = vmatmul.bf16.gmra.mxu2 %v3047_v38  ;;  %v3030_v37 = vld [vmem:[%s4239_s30 + $0x70] sm:$0xf]  ;;  %v3378_v38 = vld [vmem:[%s4239_s30 + $0x74] sm:$0xf0] }
  0xca   : > { %1069 = vmatmul.bf16.gmra.mxu1 %v2987_v39  ;;  %1109 = vmatmul.bf16.gmra.mxu3 %v3051_v40  ;;  %v3094_v39 = vld [vmem:[%s4239_s30 + $0xf0] sm:$0xf]  ;;  %v3394_v40 = vld [vmem:[%s4239_s30 + $0xf4] sm:$0xf0]  ;;  %v3031_v45 = vor.u32 %v3378_v38, %v3030_v37 }
  0xcb   : > { %v3095_v46 = vor.u32 %v3394_v40, %v3094_v39 }
  0xd9   : > { %985 = vmatmul.bf16.gmra.mxu0 %v2991_v49  ;;  %1025 = vmatmul.bf16.gmra.mxu2 %v3055_v50  ;;  %v615_v50 = vld [vmem:[#allocation2 + $0xb0] sm:$0xff] }
  0xda   : > { %1074 = vmatmul.bf16.gmra.mxu1 %v2995_v51  ;;  %1114 = vmatmul.bf16.gmra.mxu3 %v3059_v52 }
  0xe9   : > { %990 = vmatmul.bf16.gmra.mxu0 %v2999_v61  ;;  %1030 = vmatmul.bf16.gmra.mxu2 %v3063_v62 }
  0xea   : > { %1079 = vmatmul.bf16.gmra.mxu1 %v3003_v63  ;;  %1119 = vmatmul.bf16.gmra.mxu3 %v3067_v0 }
  0xf9   : > { %995 = vmatmul.bf16.gmra.mxu0 %v3007_v9  ;;  %1035 = vmatmul.bf16.gmra.mxu2 %v3071_v10 }
  0xfa   : > { %1084 = vmatmul.bf16.gmra.mxu1 %v3011_v11  ;;  %1124 = vmatmul.bf16.gmra.mxu3 %v3075_v12  ;;  %v633_v11 = vld [vmem:[#allocation2 + $0x40] sm:$0xff] }
 0x109   : > { %1000 = vmatmul.bf16.gmra.mxu0 %v3015_v21  ;;  %1040 = vmatmul.bf16.gmra.mxu2 %v3079_v22  ;;  %v634_v21 = vld [vmem:[#allocation2 + $0xc8] sm:$0xff] }
 0x10a   : > { %1089 = vmatmul.bf16.gmra.mxu1 %v3019_v23  ;;  %1129 = vmatmul.bf16.gmra.mxu3 %v3083_v24 }
 0x119   : > { %1005 = vmatmul.bf16.gmra.mxu0 %v3023_v33  ;;  %1045 = vmatmul.bf16.gmra.mxu2 %v3087_v34 }
 0x11a   : > { %1094 = vmatmul.bf16.gmra.mxu1 %v3027_v35  ;;  %1134 = vmatmul.bf16.gmra.mxu3 %v3091_v36  ;;  %v620_v35 = vld [vmem:[#allocation2 + $0x68] sm:$0xff] }
 0x129   : > { %1010 = vmatmul.bf16.gmra.mxu0 %v3031_v45  ;;  %1050 = vmatmul.bf16.gmra.mxu2 %v3095_v46  ;;  %v621_v45 = vld [vmem:[#allocation2 + $0x30] sm:$0xff] }
 0x12a   : > { %1099 = vmatmul.bf16.gmra.mxu1 %v3035_v47  ;;  %1139 = vmatmul.bf16.gmra.mxu3 %v3099_v48 }
 0x136   : > { %v976_v49 = vpop.f32.mrf.mxu0 }
 0x137   : > { %v1065_v51 = vpop.f32.mrf.mxu1 }
 0x138   : > { %v1066_v52 = vadd.f32 %v1065_v51, %v976_v49  ;;  %v637_v51 = vld [vmem:[#allocation2 + $0x70] sm:$0xff] }
 0x13a   : > { %v1145_v53 = vadd.f32 %v1066_v52, %v615_v50 }
 0x13c   : > { %1177 = vst [vmem:[#allocation2 + $0xb0] sm:$0xff] %v1145_v53  ;;  %v1016_v54 = vpop.f32.mrf.mxu2 }
 0x13d   : > { %v1105_v56 = vpop.f32.mrf.mxu3 }
 0x13e   : > { %v1106_v57 = vadd.f32 %v1105_v56, %v1016_v54  ;;  %v978_v58 = vpop.f32.mrf.mxu0 }
 0x13f   : > { %v1067_v60 = vpop.f32.mrf.mxu1 }
 0x140   : > { %v1161_v61 = vadd.f32 %v1106_v57, %v631_v55  ;;  %v1068_v62 = vadd.f32 %v1067_v60, %v978_v58  ;;  %v622_v55 = vld [vmem:[#allocation2 + $0x48] sm:$0xff] }
 0x142   : > { %1193 = vst [vmem:[#allocation2 + $0x38] sm:$0xff] %v1161_v61  ;;  %v1146_v63 = vadd.f32 %v1068_v62, %v616_v59  ;;  %v638_v61 = vld [vmem:[#allocation2 + $0xc0] sm:$0xff] }
 0x144   : > { %1178 = vst [vmem:[#allocation2] sm:$0xff] %v1146_v63  ;;  %v1018_v0 = vpop.f32.mrf.mxu2 }
 0x145   : > { %v1107_v2 = vpop.f32.mrf.mxu3 }
 0x146   : > { %v1108_v3 = vadd.f32 %v1107_v2, %v1018_v0  ;;  %v981_v4 = vpop.f32.mrf.mxu0 }
 0x147   : > { %v1070_v6 = vpop.f32.mrf.mxu1 }
 0x148   : > { %v1162_v7 = vadd.f32 %v1108_v3, %v632_v1  ;;  %v1071_v8 = vadd.f32 %v1070_v6, %v981_v4  ;;  %v623_v1 = vld [vmem:[#allocation2 + $0x80] sm:$0xff] }
 0x14a   : > { %1194 = vst [vmem:[#allocation2 + $0x58] sm:$0xff] %v1162_v7  ;;  %v1147_v9 = vadd.f32 %v1071_v8, %v617_v5  ;;  %v639_v7 = vld [vmem:[#allocation2 + $0xa8] sm:$0xff] }
 0x14c   : > { %1179 = vst [vmem:[#allocation2 + $0xd8] sm:$0xff] %v1147_v9  ;;  %v1021_v10 = vpop.f32.mrf.mxu2 }
 0x14d   : > { %v1110_v12 = vpop.f32.mrf.mxu3 }
 0x14e   : > { %v1111_v13 = vadd.f32 %v1110_v12, %v1021_v10  ;;  %v983_v14 = vpop.f32.mrf.mxu0 }
 0x14f   : > { %v1072_v16 = vpop.f32.mrf.mxu1 }
 0x150   : > { %v1163_v17 = vadd.f32 %v1111_v13, %v633_v11  ;;  %v1073_v18 = vadd.f32 %v1072_v16, %v983_v14  ;;  %v624_v11 = vld [vmem:[#allocation2 + $0x88] sm:$0xff] }
 0x152   : > { %1195 = vst [vmem:[#allocation2 + $0x40] sm:$0xff] %v1163_v17  ;;  %v1148_v19 = vadd.f32 %v1073_v18, %v618_v15  ;;  %v640_v17 = vld [vmem:[#allocation2 + $0xd0] sm:$0xff] }
 0x154   : > { %1180 = vst [vmem:[#allocation2 + $0x18] sm:$0xff] %v1148_v19  ;;  %v1023_v20 = vpop.f32.mrf.mxu2 }
 0x155   : > { %v1112_v22 = vpop.f32.mrf.mxu3 }
 0x156   : > { %v1113_v23 = vadd.f32 %v1112_v22, %v1023_v20  ;;  %v986_v24 = vpop.f32.mrf.mxu0 }
 0x157   : > { %v1075_v26 = vpop.f32.mrf.mxu1 }
 0x158   : > { %v1164_v27 = vadd.f32 %v1113_v23, %v634_v21  ;;  %v1076_v28 = vadd.f32 %v1075_v26, %v986_v24  ;;  %v625_v21 = vld [vmem:[#allocation2 + $0xe8] sm:$0xff] }
 0x15a   : > { %1196 = vst [vmem:[#allocation2 + $0xc8] sm:$0xff] %v1164_v27  ;;  %v1149_v29 = vadd.f32 %v1076_v28, %v619_v25  ;;  %v641_v27 = vld [vmem:[#allocation2 + $0x10] sm:$0xff] }
 0x15c   : > { %1181 = vst [vmem:[#allocation2 + $0x50] sm:$0xff] %v1149_v29  ;;  %v1026_v30 = vpop.f32.mrf.mxu2 }
 0x15d   : > { %v1115_v32 = vpop.f32.mrf.mxu3 }
 0x15e   : > { %v1116_v33 = vadd.f32 %v1115_v32, %v1026_v30  ;;  %v988_v34 = vpop.f32.mrf.mxu0 }
 0x15f   : > { %v1077_v36 = vpop.f32.mrf.mxu1 }
 0x160   : > { %v1165_v37 = vadd.f32 %v1116_v33, %v635_v31  ;;  %v1078_v38 = vadd.f32 %v1077_v36, %v988_v34  ;;  %v626_v31 = vld [vmem:[#allocation2 + $0xb8] sm:$0xff] }
 0x162   : > { %1197 = vst [vmem:[#allocation2 + $0xe0] sm:$0xff] %v1165_v37  ;;  %v1150_v39 = vadd.f32 %v1078_v38, %v620_v35  ;;  %v642_v37 = vld [vmem:[#allocation2 + $0x28] sm:$0xff] }
 0x164   : > { %1182 = vst [vmem:[#allocation2 + $0x68] sm:$0xff] %v1150_v39  ;;  %v1028_v40 = vpop.f32.mrf.mxu2 }
 0x165   : > { %v1117_v42 = vpop.f32.mrf.mxu3 }
 0x166   : > { %v1118_v43 = vadd.f32 %v1117_v42, %v1028_v40  ;;  %v991_v44 = vpop.f32.mrf.mxu0 }
 0x167   : > { %v1080_v46 = vpop.f32.mrf.mxu1 }
 0x168   : > { %v1166_v47 = vadd.f32 %v1118_v43, %v636_v41  ;;  %v1081_v48 = vadd.f32 %v1080_v46, %v991_v44  ;;  %v627_v41 = vld [vmem:[#allocation2 + $0x60] sm:$0xff] }
 0x16a   : > { %1198 = vst [vmem:[#allocation2 + $0x90] sm:$0xff] %v1166_v47  ;;  %v1151_v49 = vadd.f32 %v1081_v48, %v621_v45  ;;  %v643_v47 = vld [vmem:[#allocation2 + $0xa0] sm:$0xff] }
 0x16c   : > { %1183 = vst [vmem:[#allocation2 + $0x30] sm:$0xff] %v1151_v49  ;;  %v1031_v50 = vpop.f32.mrf.mxu2 }
 0x16d   : > { %v1120_v52 = vpop.f32.mrf.mxu3 }
 0x16e   : > { %v1121_v53 = vadd.f32 %v1120_v52, %v1031_v50  ;;  %v993_v54 = vpop.f32.mrf.mxu0 }
 0x16f   : > { %v1082_v56 = vpop.f32.mrf.mxu1 }
 0x170   : > { %v1167_v57 = vadd.f32 %v1121_v53, %v637_v51  ;;  %v1083_v58 = vadd.f32 %v1082_v56, %v993_v54  ;;  %v628_v51 = vld [vmem:[#allocation2 + $0xf0] sm:$0xff] }
 0x172   : > { %1199 = vst [vmem:[#allocation2 + $0x70] sm:$0xff] %v1167_v57  ;;  %v1152_v59 = vadd.f32 %v1083_v58, %v622_v55  ;;  %v644_v57 = vld [vmem:[#allocation2 + $0xf8] sm:$0xff] }
 0x174   : > { %1184 = vst [vmem:[#allocation2 + $0x48] sm:$0xff] %v1152_v59  ;;  %v1033_v60 = vpop.f32.mrf.mxu2 }
 0x175   : > { %v1122_v62 = vpop.f32.mrf.mxu3 }
 0x176   : > { %v1123_v63 = vadd.f32 %v1122_v62, %v1033_v60  ;;  %v996_v0 = vpop.f32.mrf.mxu0 }
 0x177   : > { %v1085_v2 = vpop.f32.mrf.mxu1 }
 0x178   : > { %v1168_v3 = vadd.f32 %v1123_v63, %v638_v61  ;;  %v1086_v4 = vadd.f32 %v1085_v2, %v996_v0  ;;  %v629_v61 = vld [vmem:[#allocation2 + $0x8] sm:$0xff] }
 0x17a   : > { %1200 = vst [vmem:[#allocation2 + $0xc0] sm:$0xff] %v1168_v3  ;;  %v1153_v5 = vadd.f32 %v1086_v4, %v623_v1  ;;  %v645_v3 = vld [vmem:[#allocation2 + $0x20] sm:$0xff] }
 0x17c   : > { %1185 = vst [vmem:[#allocation2 + $0x80] sm:$0xff] %v1153_v5  ;;  %v1036_v6 = vpop.f32.mrf.mxu2 }
 0x17d   : > { %v1125_v8 = vpop.f32.mrf.mxu3 }
 0x17e   : > { %v1126_v9 = vadd.f32 %v1125_v8, %v1036_v6  ;;  %v998_v10 = vpop.f32.mrf.mxu0 }
 0x17f   : > { %v1087_v12 = vpop.f32.mrf.mxu1 }
 0x180   : > { %v1169_v13 = vadd.f32 %v1126_v9, %v639_v7  ;;  %v1088_v14 = vadd.f32 %v1087_v12, %v998_v10  ;;  %v630_v7 = vld [vmem:[#allocation2 + $0x78] sm:$0xff] }
 0x182   : > { %1201 = vst [vmem:[#allocation2 + $0xa8] sm:$0xff] %v1169_v13  ;;  %v1154_v15 = vadd.f32 %v1088_v14, %v624_v11  ;;  %v646_v13 = vld [vmem:[#allocation2 + $0x98] sm:$0xff] }
 0x184   : > { %1186 = vst [vmem:[#allocation2 + $0x88] sm:$0xff] %v1154_v15  ;;  %v1038_v16 = vpop.f32.mrf.mxu2 }
 0x185   : > { %v1127_v18 = vpop.f32.mrf.mxu3 }
 0x186   : > { %v1128_v19 = vadd.f32 %v1127_v18, %v1038_v16  ;;  %v1001_v20 = vpop.f32.mrf.mxu0 }
 0x187   : > { %v1090_v22 = vpop.f32.mrf.mxu1 }
 0x188   : > { %v1170_v23 = vadd.f32 %v1128_v19, %v640_v17  ;;  %v1091_v24 = vadd.f32 %v1090_v22, %v1001_v20 }
 0x18a   : > { %1202 = vst [vmem:[#allocation2 + $0xd0] sm:$0xff] %v1170_v23  ;;  %v1155_v25 = vadd.f32 %v1091_v24, %v625_v21 }
 0x18c   : > { %1187 = vst [vmem:[#allocation2 + $0xe8] sm:$0xff] %v1155_v25  ;;  %v1041_v26 = vpop.f32.mrf.mxu2 }
 0x18d   : > { %v1130_v28 = vpop.f32.mrf.mxu3 }
 0x18e   : > { %v1131_v29 = vadd.f32 %v1130_v28, %v1041_v26  ;;  %v1003_v30 = vpop.f32.mrf.mxu0 }
 0x18f   : > { %v1092_v32 = vpop.f32.mrf.mxu1 }
 0x190   : > { %v1171_v33 = vadd.f32 %v1131_v29, %v641_v27  ;;  %v1093_v34 = vadd.f32 %v1092_v32, %v1003_v30 }
 0x192   : > { %1203 = vst [vmem:[#allocation2 + $0x10] sm:$0xff] %v1171_v33  ;;  %v1156_v35 = vadd.f32 %v1093_v34, %v626_v31 }
 0x194   : > { %1188 = vst [vmem:[#allocation2 + $0xb8] sm:$0xff] %v1156_v35  ;;  %v1043_v36 = vpop.f32.mrf.mxu2 }
 0x195   : > { %v1132_v38 = vpop.f32.mrf.mxu3 }
 0x196   : > { %v1133_v39 = vadd.f32 %v1132_v38, %v1043_v36  ;;  %v1006_v40 = vpop.f32.mrf.mxu0 }
 0x197   : > { %v1095_v42 = vpop.f32.mrf.mxu1 }
 0x198   : > { %v1172_v43 = vadd.f32 %v1133_v39, %v642_v37  ;;  %v1096_v44 = vadd.f32 %v1095_v42, %v1006_v40 }
 0x19a   : > { %1204 = vst [vmem:[#allocation2 + $0x28] sm:$0xff] %v1172_v43  ;;  %v1157_v45 = vadd.f32 %v1096_v44, %v627_v41 }
 0x19c   : > { %1189 = vst [vmem:[#allocation2 + $0x60] sm:$0xff] %v1157_v45  ;;  %v1046_v46 = vpop.f32.mrf.mxu2 }
 0x19d   : > { %v1135_v48 = vpop.f32.mrf.mxu3 }
 0x19e   : > { %v1136_v49 = vadd.f32 %v1135_v48, %v1046_v46  ;;  %v1008_v50 = vpop.f32.mrf.mxu0 }
 0x19f   : > { %v1097_v52 = vpop.f32.mrf.mxu1 }
 0x1a0   : > { %v1173_v53 = vadd.f32 %v1136_v49, %v643_v47  ;;  %v1098_v54 = vadd.f32 %v1097_v52, %v1008_v50 }
 0x1a2   : > { %1205 = vst [vmem:[#allocation2 + $0xa0] sm:$0xff] %v1173_v53  ;;  %v1158_v55 = vadd.f32 %v1098_v54, %v628_v51 }
 0x1a4   : > { %1190 = vst [vmem:[#allocation2 + $0xf0] sm:$0xff] %v1158_v55  ;;  %v1048_v56 = vpop.f32.mrf.mxu2 }
 0x1a5   : > { %v1137_v58 = vpop.f32.mrf.mxu3 }
 0x1a6   : > { %v1138_v59 = vadd.f32 %v1137_v58, %v1048_v56  ;;  %v1011_v60 = vpop.f32.mrf.mxu0 }
 0x1a7   : > { %v1100_v62 = vpop.f32.mrf.mxu1 }
 0x1a8   : > { %v1174_v63 = vadd.f32 %v1138_v59, %v644_v57  ;;  %v1101_v0 = vadd.f32 %v1100_v62, %v1011_v60 }
 0x1aa   : > { %1206 = vst [vmem:[#allocation2 + $0xf8] sm:$0xff] %v1174_v63  ;;  %v1159_v1 = vadd.f32 %v1101_v0, %v629_v61 }
 0x1ac   : > { %1191 = vst [vmem:[#allocation2 + $0x8] sm:$0xff] %v1159_v1  ;;  %v1051_v2 = vpop.f32.mrf.mxu2 }
 0x1ad   : > { %v1140_v4 = vpop.f32.mrf.mxu3 }
 0x1ae   : > { %v1141_v5 = vadd.f32 %v1140_v4, %v1051_v2  ;;  %v1013_v6 = vpop.f32.mrf.mxu0 }
 0x1af   : > { %v1102_v8 = vpop.f32.mrf.mxu1 }
 0x1b0   : > { %v1175_v9 = vadd.f32 %v1141_v5, %v645_v3  ;;  %v1103_v10 = vadd.f32 %v1102_v8, %v1013_v6 }
 0x1b2   : > { %1207 = vst [vmem:[#allocation2 + $0x20] sm:$0xff] %v1175_v9  ;;  %v1160_v11 = vadd.f32 %v1103_v10, %v630_v7 }
 0x1b4   : > { %1192 = vst [vmem:[#allocation2 + $0x78] sm:$0xff] %v1160_v11  ;;  %v1053_v12 = vpop.f32.mrf.mxu2 }
 0x1b5   : > { %v1142_v14 = vpop.f32.mrf.mxu3 }
 0x1b6   : > { %v1143_v15 = vadd.f32 %v1142_v14, %v1053_v12 }
 0x1b8   : > { %v1176_v16 = vadd.f32 %v1143_v15, %v646_v13 }
 0x1ba   : > { %1208 = vst [vmem:[#allocation2 + $0x98] sm:$0xff] %v1176_v16 }
 0x1bb PF: > { %p3164_p0 = scmp.ne.s32.totalorder %s3974_s20, 1 }
 0x1bc   : > { %s5091_s16 = sld [smem:[#allocation29_spill]] (!%p3164_p0) }
 0x1bd   : > { %1212 = sbr.rel (%p3164_p0) target bundleno = 1507 (0x5e3), region = 88  ;;  %s5093_s27 = sld [smem:[#allocation30_spill]] (!%p3164_p0) }
 0x1be   : > { %s5095_s28 = sld [smem:[#allocation33_spill]] (!%p3164_p0) }
 0x1bf   : > { %s5096_s25 = sld [smem:[#allocation35_spill]] (!%p3164_p0) }
 0x1c2   : > { %v1249_v17 = vld [vmem:[%s4263_s17 + $0x20] sm:$0xff]  ;;  %v1247_v18 = vld [vmem:[%s4263_s17 + $0x10] sm:$0xff]  ;;  %v4002_v20 = vmov 0   ;;  %v1250_v21 = vld [vmem:[%s4263_s17 + $0x28] sm:$0xff]  ;;  %s5092_s29 = smov %s5091_s16 }
 0x1c3   : > { %v1245_v19 = vld [vmem:[%s4263_s17] sm:$0xff]  ;;  %3616 = vset.pattern.permute.xlu2 %v4002_v20  ;;  %3615 = vset.pattern.permute.xlu1 %v4002_v20  ;;  %v1248_v22 = vld [vmem:[%s4263_s17 + $0x18] sm:$0xff]  ;;  %v1246_v23 = vld [vmem:[%s4263_s17 + $0x8] sm:$0xff] }
 0x1c4   : > { %3614 = vset.pattern.permute.xlu0 %v4002_v20  ;;  %1299 = vperm.xlu2 %3616, %v1249_v17   ;;  %v1253_v24 = vld [vmem:[%s4263_s17 + $0x40] sm:$0xff]  ;;  %v1252_v25 = vld [vmem:[%s4263_s17 + $0x38] sm:$0xff]  ;;  %v1251_v26 = vld [vmem:[%s4263_s17 + $0x30] sm:$0xff] }
 0x1c5   : > { %1289 = vperm.xlu1 %3615, %v1247_v18   ;;  %1279 = vperm.xlu0 %3614, %v1245_v19   ;;  %v1256_v27 = vld [vmem:[%s4263_s17 + $0x58] sm:$0xff]  ;;  %v1255_v28 = vld [vmem:[%s4263_s17 + $0x50] sm:$0xff]  ;;  %v1254_v29 = vld [vmem:[%s4263_s17 + $0x48] sm:$0xff] }
 0x1c6   : > { %v1259_v30 = vld [vmem:[%s4263_s17 + $0x70] sm:$0xff]  ;;  %v1258_v31 = vld [vmem:[%s4263_s17 + $0x68] sm:$0xff]  ;;  %v1257_v32 = vld [vmem:[%s4263_s17 + $0x60] sm:$0xff] }
 0x1c7   : > { %v1262_v33 = vld [vmem:[%s4263_s17 + $0x88] sm:$0xff]  ;;  %v1261_v34 = vld [vmem:[%s4263_s17 + $0x80] sm:$0xff]  ;;  %v1260_v35 = vld [vmem:[%s4263_s17 + $0x78] sm:$0xff] }
 0x1c8   : > { %v1265_v36 = vld [vmem:[%s4263_s17 + $0xa0] sm:$0xff]  ;;  %v1264_v37 = vld [vmem:[%s4263_s17 + $0x98] sm:$0xff]  ;;  %v1263_v38 = vld [vmem:[%s4263_s17 + $0x90] sm:$0xff] }
 0x1c9   : > { %v3434_v39 = vld [vmem:[%s5091_s16 + $0x38] sm:$0xff]  ;;  %v1267_v41 = vld [vmem:[%s4263_s17 + $0xb0] sm:$0xff]  ;;  %v1266_v42 = vld [vmem:[%s4263_s17 + $0xa8] sm:$0xff]  ;;  %s5094_s16 = sld [smem:[#allocation31_spill]] }
 0x1ca   : > { %1830 = vmatpush.bf16.msra.mxu1 %v3434_v39  ;;  %v1268_v40 = vld [vmem:[%s4263_s17 + $0xb8] sm:$0xff]  ;;  %v3433_v43 = vld [vmem:[%s5092_s29 + $0x30] sm:$0xff]  ;;  %v1270_v46 = vld [vmem:[%s4263_s17 + $0xc8] sm:$0xff] }
 0x1cb   : > { %v3442_v44 = vld [vmem:[%s5093_s27 + $0x38] sm:$0xff]  ;;  %v1271_v45 = vld [vmem:[%s4263_s17 + $0xd0] sm:$0xff]  ;;  %v1269_v47 = vld [vmem:[%s4263_s17 + $0xc0] sm:$0xff] }
 0x1cc   : > { %1304 = vperm.xlu2 %3616, %v1250_v21   ;;  %1597 = vmatpush.bf16.msra.mxu0 %v3442_v44  ;;  %v3432_v48 = vld [vmem:[%s5092_s29 + $0x28] sm:$0xff]  ;;  %v3441_v49 = vld [vmem:[%s5093_s27 + $0x30] sm:$0xff]  ;;  %v3431_v50 = vld [vmem:[%s5092_s29 + $0x20] sm:$0xff] }
 0x1cd   : > { %1294 = vperm.xlu1 %3615, %v1248_v22   ;;  %1284 = vperm.xlu0 %3614, %v1246_v23   ;;  %v1274_v51 = vld [vmem:[%s4263_s17 + $0xe8] sm:$0xff]  ;;  %v1273_v52 = vld [vmem:[%s4263_s17 + $0xe0] sm:$0xff]  ;;  %v1272_v53 = vld [vmem:[%s4263_s17 + $0xd8] sm:$0xff] }
 0x1ce   : > { %1831 = vmatpush.bf16.msra.mxu1 %v3433_v43  ;;  %v3440_v54 = vld [vmem:[%s5093_s27 + $0x28] sm:$0xff]  ;;  %v3430_v55 = vld [vmem:[%s5092_s29 + $0x18] sm:$0xff]  ;;  %v3439_v56 = vld [vmem:[%s5093_s27 + $0x20] sm:$0xff] }
 0x1cf   : > { %v3429_v57 = vld [vmem:[%s5092_s29 + $0x10] sm:$0xff]  ;;  %v1276_v58 = vld [vmem:[%s4263_s17 + $0xf8] sm:$0xff]  ;;  %v3428_v61 = vld [vmem:[%s5092_s29 + $0x8] sm:$0xff] }
 0x1d0   : > { %1598 = vmatpush.bf16.msra.mxu0 %v3441_v49  ;;  %v1275_v59 = vld [vmem:[%s4263_s17 + $0xf0] sm:$0xff]  ;;  %v3438_v60 = vld [vmem:[%s5093_s27 + $0x18] sm:$0xff]  ;;  %v3427_v63 = vld [vmem:[%s5092_s29] sm:$0xff] }
 0x1d1   : > { %v3437_v62 = vld [vmem:[%s5093_s27 + $0x10] sm:$0xff]  ;;  %v3411_v0 = vld [vmem:[%s4258_s14] sm:$0xff]  ;;  %v3436_v1 = vld [vmem:[%s5093_s27 + $0x8] sm:$0xff] }
 0x1d2   : > { %1832 = vmatpush.bf16.msra.mxu1 %v3432_v48  ;;  %v3435_v2 = vld [vmem:[%s5093_s27] sm:$0xff]  ;;  %v3412_v3 = vld [vmem:[%s4258_s14 + $0x8] sm:$0xff]  ;;  %v3413_v5 = vld [vmem:[%s4258_s14 + $0x10] sm:$0xff] }
 0x1d3   : > { %v1213_v6 = vld [vmem:[#allocation2 + $0xb0] sm:$0xff]  ;;  %v1214_v7 = vld [vmem:[#allocation2] sm:$0xff]  ;;  %v3414_v13 = vld [vmem:[%s4258_s14 + $0x18] sm:$0xff] }
 0x1d4   : > { %1319 = vperm.xlu2 %3616, %v1253_v24   ;;  %1599 = vmatpush.bf16.msra.mxu0 %v3440_v54  ;;  %v1215_v14 = vld [vmem:[#allocation2 + $0xd8] sm:$0xff]  ;;  %v3415_v21 = vld [vmem:[%s4258_s14 + $0x20] sm:$0xff]  ;;  %v1217_v22 = vld [vmem:[#allocation2 + $0x50] sm:$0xff] }
 0x1d5   : > { %1314 = vperm.xlu1 %3615, %v1252_v25   ;;  %1309 = vperm.xlu0 %3614, %v1251_v26   ;;  %v1216_v15 = vld [vmem:[#allocation2 + $0x18] sm:$0xff]  ;;  %v1218_v23 = vld [vmem:[#allocation2 + $0x68] sm:$0xff] }
 0x1d6   : > { %1833 = vmatpush.bf16.msra.mxu1 %v3431_v50  ;;  %v1222_v39 = vld [vmem:[#allocation2 + $0x88] sm:$0xff]  ;;  %v3450_v44 = vld [vmem:[#allocation9 + $0x38] sm:$0xff] }
 0x1d7   : > { %2071 = vmatpush.bf16.msra.mxu2 %v3450_v44  ;;  %v1223_v48 = vld [vmem:[#allocation2 + $0xe8] sm:$0xff] }
 0x1d8   : > { %1600 = vmatpush.bf16.msra.mxu0 %v3439_v56  ;;  %v3448_v54 = vld [vmem:[#allocation9 + $0x28] sm:$0xff] }
 0x1da   : > { %1834 = vmatpush.bf16.msra.mxu1 %v3430_v55  ;;  %v3419_v55 = vld [vmem:[%s4258_s14 + $0x40] sm:$0xff] }
 0x1dc   : > { %1334 = vperm.xlu2 %3616, %v1256_v27   ;;  %1601 = vmatpush.bf16.msra.mxu0 %v3438_v60 }
 0x1dd   : > { %1329 = vperm.xlu1 %3615, %v1255_v28   ;;  %1324 = vperm.xlu0 %3614, %v1254_v29   ;;  %v3416_v28 = vld [vmem:[%s4258_s14 + $0x28] sm:$0xff] }
 0x1de   : > { %1835 = vmatpush.bf16.msra.mxu1 %v3429_v57  ;;  %v3447_v57 = vld [vmem:[#allocation9 + $0x20] sm:$0xff] }
 0x1e0   : > { %1602 = vmatpush.bf16.msra.mxu0 %v3437_v62 }
 0x1e2   : > { %1836 = vmatpush.bf16.msra.mxu1 %v3428_v61  ;;  %v1225_v61 = vld [vmem:[#allocation2 + $0x60] sm:$0xff] }
 0x1e4   : > { %1349 = vperm.xlu2 %3616, %v1259_v30   ;;  %1603 = vmatpush.bf16.msra.mxu0 %v3436_v1  ;;  %v1220_v30 = vld [vmem:[#allocation2 + $0x48] sm:$0xff] }
 0x1e5   : > { %1344 = vperm.xlu1 %3615, %v1258_v31   ;;  %1339 = vperm.xlu0 %3614, %v1257_v32   ;;  %v1219_v32 = vld [vmem:[#allocation2 + $0x30] sm:$0xff] }
 0x1e6   : > { %1837 = vmatpush.bf16.msra.mxu1 %v3427_v63 }
 0x1e8   : > { %1604 = vmatpush.bf16.msra.mxu0 %v3435_v2 }
 0x1e9   : > { %1838 = vmatmul.bf16.vlgmr.msra.gmra.mxu1 %v3411_v0  ;;  %v3446_v0 = vld [vmem:[#allocation9 + $0x18] sm:$0xff] }
 0x1ec   : > { %1364 = vperm.xlu2 %3616, %v1262_v33  }
 0x1ed   : > { %1359 = vperm.xlu1 %3615, %v1261_v34   ;;  %1354 = vperm.xlu0 %3614, %v1260_v35  }
 0x1f4   : > { %1379 = vperm.xlu2 %3616, %v1265_v36   ;;  %v3417_v36 = vld [vmem:[%s4258_s14 + $0x30] sm:$0xff] }
 0x1f5   : > { %1374 = vperm.xlu1 %3615, %v1264_v37   ;;  %1369 = vperm.xlu0 %3614, %v1263_v38   ;;  %v1221_v37 = vld [vmem:[#allocation2 + $0x80] sm:$0xff] }
 0x1f9   : > { %1843 = vmatmul.bf16.gmra.mxu1 %v3412_v3  ;;  %v3445_v3 = vld [vmem:[#allocation9 + $0x10] sm:$0xff] }
 0x1fc   : > { %1394 = vperm.xlu2 %3616, %v1268_v40  }
 0x1fd   : > { %1389 = vperm.xlu1 %3615, %v1267_v41   ;;  %1384 = vperm.xlu0 %3614, %v1266_v42  }
 0x204   : > { %1409 = vperm.xlu2 %3616, %v1271_v45   ;;  %v3418_v45 = vld [vmem:[%s4258_s14 + $0x38] sm:$0xff] }
 0x205   : > { %1404 = vperm.xlu1 %3615, %v1270_v46   ;;  %1399 = vperm.xlu0 %3614, %v1269_v47   ;;  %v1224_v46 = vld [vmem:[#allocation2 + $0xb8] sm:$0xff] }
 0x209   : > { %1848 = vmatmul.bf16.gmra.mxu1 %v3413_v5 }
 0x20c   : > { %1424 = vperm.xlu2 %3616, %v1274_v51  }
 0x20d   : > { %1419 = vperm.xlu1 %3615, %v1273_v52   ;;  %1414 = vperm.xlu0 %3614, %v1272_v53   ;;  %v3449_v53 = vld [vmem:[#allocation9 + $0x30] sm:$0xff] }
 0x20e   : > { %2072 = vmatpush.bf16.msra.mxu2 %v3449_v53 }
 0x212   : > { %2073 = vmatpush.bf16.msra.mxu2 %v3448_v54  ;;  %v1234_v54 = vld [vmem:[#allocation2 + $0x90] sm:$0xff] }
 0x215   : > { %1434 = vperm.xlu1 %3615, %v1276_v58   ;;  %1429 = vperm.xlu0 %3614, %v1275_v59   ;;  %v1226_v59 = vld [vmem:[#allocation2 + $0xf0] sm:$0xff] }
 0x216   : > { %2074 = vmatpush.bf16.msra.mxu2 %v3447_v57 }
 0x219   : > { %1853 = vmatmul.bf16.gmra.mxu1 %v3414_v13 }
 0x21a   : > { %2075 = vmatpush.bf16.msra.mxu2 %v3446_v0 }
 0x21e   : > { %v1300_v20 = vpop.permute.xlu2 %1299  ;;  %2076 = vmatpush.bf16.msra.mxu2 %v3445_v3 }
 0x21f   : > { %v1441_v25 = vmul.f32 %v1300_v20, %v1217_v22  ;;  %v1230_v20 = vld [vmem:[#allocation2 + $0x58] sm:$0xff] }
 0x226   : > { %v1305_v24 = vpop.permute.xlu2 %1304 }
 0x227   : > { %v1442_v26 = vmul.f32 %v1305_v24, %v1218_v23 }
 0x229   : > { %1858 = vmatmul.bf16.gmra.mxu1 %v3415_v21  ;;  %v1471_v27 = vpack.c.bf16 %v1442_v26, %v1441_v25 }
 0x22e   : > { %v1320_v40 = vpop.permute.xlu2 %1319 }
 0x22f   : > { %v1445_v41 = vmul.f32 %v1320_v40, %v1221_v37  ;;  %v1231_v37 = vld [vmem:[#allocation2 + $0x40] sm:$0xff] }
 0x236   : > { %v1335_v49 = vpop.permute.xlu2 %1334 }
 0x237   : > { %v1280_v4 = vpop.permute.xlu0 %1279  ;;  %v1290_v12 = vpop.permute.xlu1 %1289  ;;  %v1448_v50 = vmul.f32 %v1335_v49, %v1224_v46 }
 0x238   : > { %v1437_v9 = vmul.f32 %v1280_v4, %v1213_v6  ;;  %v1439_v17 = vmul.f32 %v1290_v12, %v1215_v14  ;;  %v3444_v4 = vld [vmem:[#allocation9 + $0x8] sm:$0xff] }
 0x239   : > { %1863 = vmatmul.bf16.gmra.mxu1 %v3416_v28  ;;  %v3420_v6 = vld [vmem:[%s4258_s14 + $0x48] sm:$0xff]  ;;  %2077 = vmatpush.bf16.msra.mxu2 %v3444_v4  ;;  %v4450_v28 = vld [vmem:[%s5094_s16] ss:$0 sm:$0xff] }
 0x23e   : > { %v1350_v12 = vpop.permute.xlu2 %1349 }
 0x23f   : > { %v1285_v8 = vpop.permute.xlu0 %1284  ;;  %v1295_v16 = vpop.permute.xlu1 %1294 }
 0x240   : > { %v1438_v10 = vmul.f32 %v1285_v8, %v1214_v7  ;;  %v1440_v18 = vmul.f32 %v1295_v16, %v1216_v15  ;;  %v1228_v8 = vld [vmem:[#allocation2 + $0x78] sm:$0xff] }
 0x242   : > { %v1469_v11 = vpack.c.bf16 %v1438_v10, %v1437_v9  ;;  %v1470_v19 = vpack.c.bf16 %v1440_v18, %v1439_v17  ;;  %v3443_v9 = vld [vmem:[#allocation9] sm:$0xff]  ;;  %v1227_v10 = vld [vmem:[#allocation2 + $0x8] sm:$0xff]  ;;  %v3421_v17 = vld [vmem:[%s4258_s14 + $0x50] sm:$0xff] }
 0x243   : > { %2078 = vmatpush.bf16.msra.mxu2 %v3443_v9  ;;  %v1451_v13 = vmul.f32 %v1350_v12, %v1227_v10  ;;  %v1235_v9 = vld [vmem:[#allocation2 + $0x70] sm:$0xff]  ;;  %v1236_v12 = vld [vmem:[#allocation2 + $0xc0] sm:$0xff] }
 0x244   : > { %1605 = vmatmul.bf16.vlgmr.msra.gmra.mxu0 %v1469_v11 }
 0x246   : > { %v1365_v22 = vpop.permute.xlu2 %1364 }
 0x247   : > { %v1315_v29 = vpop.permute.xlu1 %1314  ;;  %v1310_v31 = vpop.permute.xlu0 %1309  ;;  %v1454_v23 = vmul.f32 %v1365_v22, %v1230_v20 }
 0x248   : > { %v1444_v33 = vmul.f32 %v1315_v29, %v1220_v30  ;;  %v1443_v34 = vmul.f32 %v1310_v31, %v1219_v32 }
 0x249   : > { %1868 = vmatmul.bf16.gmra.mxu1 %v3417_v36 }
 0x24a   : > { %v1472_v35 = vpack.c.bf16 %v1444_v33, %v1443_v34  ;;  %v3422_v33 = vld [vmem:[%s4258_s14 + $0x58] sm:$0xff] }
 0x24f   : > { %v1325_v38 = vpop.permute.xlu0 %1324  ;;  %v1330_v47 = vpop.permute.xlu1 %1329 }
 0x250   : > { %v1446_v42 = vmul.f32 %v1325_v38, %v1222_v39  ;;  %v1447_v51 = vmul.f32 %v1330_v47, %v1223_v48 }
 0x252   : > { %v1473_v43 = vpack.c.bf16 %v1446_v42, %v1445_v41  ;;  %v1474_v52 = vpack.c.bf16 %v1448_v50, %v1447_v51 }
 0x254   : > { %1610 = vmatmul.bf16.gmra.mxu0 %v1470_v19  ;;  %v1229_v19 = vld [vmem:[#allocation2 + $0x38] sm:$0xff] }
 0x257   : > { %v1345_v58 = vpop.permute.xlu1 %1344  ;;  %v1340_v60 = vpop.permute.xlu0 %1339 }
 0x258   : > { %v1450_v62 = vmul.f32 %v1345_v58, %v1226_v59  ;;  %v1449_v63 = vmul.f32 %v1340_v60, %v1225_v61  ;;  %v1380_v60 = vpop.permute.xlu2 %1379 }
 0x259   : > { %1873 = vmatmul.bf16.gmra.mxu1 %v3418_v45 }
 0x25a   : > { %v1475_v1 = vpack.c.bf16 %v1450_v62, %v1449_v63 }
 0x25f   : > { %v1355_v7 = vpop.permute.xlu0 %1354  ;;  %v1360_v18 = vpop.permute.xlu1 %1359 }
 0x260   : > { %v1452_v11 = vmul.f32 %v1355_v7, %v1228_v8  ;;  %v1453_v21 = vmul.f32 %v1360_v18, %v1229_v19  ;;  %v3424_v7 = vld [vmem:[%s4258_s14 + $0x68] sm:$0xff] }
 0x262   : > { %v1476_v14 = vpack.c.bf16 %v1452_v11, %v1451_v13  ;;  %v1477_v25 = vpack.c.bf16 %v1454_v23, %v1453_v21  ;;  %v1395_v11 = vpop.permute.xlu2 %1394 }
 0x264   : > { %1615 = vmatmul.bf16.gmra.mxu0 %v1471_v27 }
 0x266   : > { %v1839_v56 = vpop.f32.mrf.mxu1 }
 0x267   : > { %v1375_v34 = vpop.permute.xlu1 %1374  ;;  %v1370_v36 = vpop.permute.xlu0 %1369 }
 0x268   : > { %v1455_v40 = vmul.f32 %v1370_v36, %v1231_v37 }
 0x269   : > { %1878 = vmatmul.bf16.gmra.mxu1 %v3419_v55 }
 0x26e   : > { %v1841_v2 = vpop.f32.mrf.mxu1 }
 0x26f   : > { %v1385_v53 = vpop.permute.xlu0 %1384  ;;  %v1390_v8 = vpop.permute.xlu1 %1389 }
 0x270   : > { %v1458_v57 = vmul.f32 %v1385_v53, %v1234_v54  ;;  %v1459_v13 = vmul.f32 %v1390_v8, %v1235_v9 }
 0x274   : > { %1620 = vmatmul.bf16.gmra.mxu0 %v1472_v35  ;;  %v1232_v35 = vld [vmem:[#allocation2 + $0xc8] sm:$0xff] }
 0x275   : > { %v1456_v39 = vmul.f32 %v1375_v34, %v1232_v35 }
 0x276   : > { %v1844_v5 = vpop.f32.mrf.mxu1 }
 0x277   : > { %v1478_v45 = vpack.c.bf16 %v1456_v39, %v1455_v40  ;;  %v1405_v23 = vpop.permute.xlu1 %1404 }
 0x279   : > { %1883 = vmatmul.bf16.gmra.mxu1 %v3420_v6 }
 0x27e   : > { %v1846_v15 = vpop.f32.mrf.mxu1 }
 0x284   : > { %1625 = vmatmul.bf16.gmra.mxu0 %v1473_v43 }
 0x286   : > { %v1849_v16 = vpop.f32.mrf.mxu1 }
 0x289   : > { %1888 = vmatmul.bf16.gmra.mxu1 %v3421_v17  ;;  %v1460_v17 = vmul.f32 %v1395_v11, %v1236_v12 }
 0x28b   : > { %v1480_v19 = vpack.c.bf16 %v1460_v17, %v1459_v13  ;;  %v3458_v13 = vld [vmem:[#allocation11 + $0x38] sm:$0xff] }
 0x28c   : > { %2276 = vmatpush.bf16.msra.mxu3 %v3458_v13 }
 0x28e   : > { %v1851_v26 = vpop.f32.mrf.mxu1 }
 0x294   : > { %1630 = vmatmul.bf16.gmra.mxu0 %v1474_v52  ;;  %v3423_v52 = vld [vmem:[%s4258_s14 + $0x60] sm:$0xff] }
 0x296   : > { %v1854_v32 = vpop.f32.mrf.mxu1 }
 0x299   : > { %1893 = vmatmul.bf16.gmra.mxu1 %v3422_v33 }
 0x29e   : > { %v1856_v46 = vpop.f32.mrf.mxu1 }
 0x2a4   : > { %1635 = vmatmul.bf16.gmra.mxu0 %v1475_v1 }
 0x2a6   : > { %v1859_v51 = vpop.f32.mrf.mxu1 }
 0x2a9   : > { %1898 = vmatmul.bf16.gmra.mxu1 %v3423_v52 }
 0x2ae   : > { %v1861_v1 = vpop.f32.mrf.mxu1 }
 0x2b4   : > { %1640 = vmatmul.bf16.gmra.mxu0 %v1476_v14 }
 0x2b6   : > { %v1864_v6 = vpop.f32.mrf.mxu1 }
 0x2b9   : > { %1903 = vmatmul.bf16.gmra.mxu1 %v3424_v7 }
 0x2be   : > { %v1866_v20 = vpop.f32.mrf.mxu1 }
 0x2c1   : > { %v1606_v24 = vpop.f32.mrf.mxu0 }
 0x2c2   : > { %v1840_v27 = vadd.f32 %v1839_v56, %v1606_v24  ;;  %v1233_v56 = vld [vmem:[#allocation2 + $0xe0] sm:$0xff] }
 0x2c3   : > { %v1457_v61 = vmul.f32 %v1380_v60, %v1233_v56 }
 0x2c4   : > { %1645 = vmatmul.bf16.gmra.mxu0 %v1477_v25  ;;  %v1923_v30 = vadd.f32 %v4450_v28, %v1840_v27  ;;  %v1238_v27 = vld [vmem:[#allocation2 + $0xd0] sm:$0xff] }
 0x2c5   : > { %v1479_v0 = vpack.c.bf16 %v1458_v57, %v1457_v61  ;;  %v1462_v34 = vmul.f32 %v1405_v23, %v1238_v27  ;;  %v3456_v23 = vld [vmem:[#allocation11 + $0x28] sm:$0xff] }
 0x2c6   : > { %v1955_v41 = vmax.f32 %v1923_v30, 0.0  ;;  %v1237_v30 = vld [vmem:[#allocation2 + $0xa8] sm:$0xff] }
 0x2c9   : > { %v1608_v29 = vpop.f32.mrf.mxu0 }
 0x2ca   : > { %v1842_v31 = vadd.f32 %v1841_v2, %v1608_v29  ;;  %v1400_v29 = vpop.permute.xlu0 %1399 }
 0x2cb   : > { %v1461_v35 = vmul.f32 %v1400_v29, %v1237_v30 }
 0x2cc   : > { %v1924_v38 = vadd.f32 %v4450_v28, %v1842_v31  ;;  %v1869_v31 = vpop.f32.mrf.mxu1 }
 0x2cd   : > { %v1481_v39 = vpack.c.bf16 %v1462_v34, %v1461_v35 }
 0x2ce   : > { %v1956_v42 = vmax.f32 %v1924_v38, 0.0 }
 0x2d0   : > { %v1987_v43 = vpack.c.bf16 %v1956_v42, %v1955_v41 }
 0x2d1   : > { %v1611_v44 = vpop.f32.mrf.mxu0 }
 0x2d2   : > { %2079 = vmatmul.bf16.vlgmr.msra.gmra.mxu2 %v1987_v43  ;;  %v1845_v47 = vadd.f32 %v1844_v5, %v1611_v44 }
 0x2d4   : > { %1650 = vmatmul.bf16.gmra.mxu0 %v1478_v45  ;;  %v1925_v49 = vadd.f32 %v4450_v28, %v1845_v47  ;;  %v1871_v40 = vpop.f32.mrf.mxu1  ;;  %v3426_v45 = vld [vmem:[%s4258_s14 + $0x78] sm:$0xff]  ;;  %v1240_v47 = vld [vmem:[#allocation2 + $0x28] sm:$0xff] }
 0x2d6   : > { %v1957_v58 = vmax.f32 %v1925_v49, 0.0  ;;  %v1410_v49 = vpop.permute.xlu2 %1409 }
 0x2d9   : > { %v1613_v48 = vpop.f32.mrf.mxu0 }
 0x2da   : > { %v1847_v50 = vadd.f32 %v1846_v15, %v1613_v48 }
 0x2dc   : > { %v1926_v55 = vadd.f32 %v4450_v28, %v1847_v50  ;;  %v1239_v50 = vld [vmem:[#allocation2 + $0x10] sm:$0xff] }
 0x2dd   : > { %v1463_v56 = vmul.f32 %v1410_v49, %v1239_v50 }
 0x2de   : > { %v1958_v59 = vmax.f32 %v1926_v55, 0.0  ;;  %v1874_v55 = vpop.f32.mrf.mxu1 }
 0x2e0   : > { %v1988_v62 = vpack.c.bf16 %v1958_v59, %v1957_v58 }
 0x2e1   : > { %v1616_v63 = vpop.f32.mrf.mxu0 }
 0x2e2   : > { %2084 = vmatmul.bf16.gmra.mxu2 %v1988_v62  ;;  %v1850_v2 = vadd.f32 %v1849_v16, %v1616_v63 }
 0x2e4   : > { %1655 = vmatmul.bf16.gmra.mxu0 %v1479_v0  ;;  %v1927_v4 = vadd.f32 %v4450_v28, %v1850_v2  ;;  %v1420_v0 = vpop.permute.xlu1 %1419 }
 0x2e6   : > { %v1959_v14 = vmax.f32 %v1927_v4, 0.0  ;;  %v1876_v61 = vpop.f32.mrf.mxu1  ;;  %v1242_v4 = vld [vmem:[#allocation2 + $0xf8] sm:$0xff] }
 0x2e9   : > { %v1618_v3 = vpop.f32.mrf.mxu0 }
 0x2ea   : > { %v1852_v5 = vadd.f32 %v1851_v26, %v1618_v3  ;;  %v3425_v26 = vld [vmem:[%s4258_s14 + $0x70] sm:$0xff]  ;;  %v1425_v3 = vpop.permute.xlu2 %1424 }
 0x2eb   : > { %1908 = vmatmul.bf16.gmra.mxu1 %v3425_v26  ;;  %v1466_v9 = vmul.f32 %v1425_v3, %v1242_v4 }
 0x2ec   : > { %v1928_v10 = vadd.f32 %v4450_v28, %v1852_v5 }
 0x2ee   : > { %v1960_v15 = vmax.f32 %v1928_v10, 0.0 }
 0x2f0   : > { %v1989_v18 = vpack.c.bf16 %v1960_v15, %v1959_v14  ;;  %v3457_v15 = vld [vmem:[#allocation11 + $0x30] sm:$0xff] }
 0x2f1   : > { %v1621_v16 = vpop.f32.mrf.mxu0  ;;  %2277 = vmatpush.bf16.msra.mxu3 %v3457_v15 }
 0x2f2   : > { %2089 = vmatmul.bf16.gmra.mxu2 %v1989_v18  ;;  %v1855_v21 = vadd.f32 %v1854_v32, %v1621_v16 }
 0x2f4   : > { %1660 = vmatmul.bf16.gmra.mxu0 %v1480_v19  ;;  %v1929_v24 = vadd.f32 %v4450_v28, %v1855_v21  ;;  %v1435_v19 = vpop.permute.xlu1 %1434 }
 0x2f5   : > { %2278 = vmatpush.bf16.msra.mxu3 %v3456_v23 }
 0x2f6   : > { %v1961_v36 = vmax.f32 %v1929_v24, 0.0 }
 0x2f9   : > { %v1623_v22 = vpop.f32.mrf.mxu0 }
 0x2fa   : > { %v1857_v25 = vadd.f32 %v1856_v46, %v1623_v22  ;;  %v1415_v46 = vpop.permute.xlu0 %1414  ;;  %v1243_v22 = vld [vmem:[#allocation2 + $0x20] sm:$0xff] }
 0x2fb   : > { %1913 = vmatmul.bf16.gmra.mxu1 %v3426_v45  ;;  %v1464_v52 = vmul.f32 %v1415_v46, %v1240_v47  ;;  %v3451_v46 = vld [vmem:[#allocation11] sm:$0xff] }
 0x2fc   : > { %v1930_v33 = vadd.f32 %v4450_v28, %v1857_v25 }
 0x2fe   : > { %v1962_v37 = vmax.f32 %v1930_v33, 0.0 }
 0x300   : > { %v1990_v38 = vpack.c.bf16 %v1962_v37, %v1961_v36  ;;  %v3454_v36 = vld [vmem:[#allocation11 + $0x18] sm:$0xff] }
 0x301   : > { %v1626_v32 = vpop.f32.mrf.mxu0 }
 0x302   : > { %2094 = vmatmul.bf16.gmra.mxu2 %v1990_v38  ;;  %v1860_v41 = vadd.f32 %v1859_v51, %v1626_v32  ;;  %v1482_v51 = vpack.c.bf16 %v1464_v52, %v1463_v56  ;;  %v1430_v21 = vpop.permute.xlu0 %1429  ;;  %v3453_v32 = vld [vmem:[#allocation11 + $0x10] sm:$0xff] }
 0x303   : > { %v1467_v27 = vmul.f32 %v1430_v21, %v1243_v22 }
 0x304   : > { %1665 = vmatmul.bf16.gmra.mxu0 %v1481_v39  ;;  %v1931_v43 = vadd.f32 %v4450_v28, %v1860_v41 }
 0x306   : > { %v1963_v53 = vmax.f32 %v1931_v43, 0.0 }
 0x309   : > { %v1628_v42 = vpop.f32.mrf.mxu0 }
 0x30a   : > { %v1862_v44 = vadd.f32 %v1861_v1, %v1628_v42  ;;  %v1241_v1 = vld [vmem:[#allocation2 + $0xa0] sm:$0xff]  ;;  %v3452_v42 = vld [vmem:[#allocation11 + $0x8] sm:$0xff] }
 0x30b   : > { %v1465_v5 = vmul.f32 %v1420_v0, %v1241_v1 }
 0x30c   : > { %v1932_v48 = vadd.f32 %v4450_v28, %v1862_v44 }
 0x30d   : > { %v1483_v12 = vpack.c.bf16 %v1466_v9, %v1465_v5 }
 0x30e   : > { %v1964_v54 = vmax.f32 %v1932_v48, 0.0 }
 0x310   : > { %v1991_v57 = vpack.c.bf16 %v1964_v54, %v1963_v53 }
 0x311   : > { %v1631_v58 = vpop.f32.mrf.mxu0 }
 0x312   : > { %2099 = vmatmul.bf16.gmra.mxu2 %v1991_v57  ;;  %v1865_v59 = vadd.f32 %v1864_v6, %v1631_v58  ;;  %v1879_v6 = vpop.f32.mrf.mxu1 }
 0x314   : > { %1670 = vmatmul.bf16.gmra.mxu0 %v1482_v51  ;;  %v1933_v62 = vadd.f32 %v4450_v28, %v1865_v59 }
 0x316   : > { %v1965_v7 = vmax.f32 %v1933_v62, 0.0 }
 0x319   : > { %v1633_v60 = vpop.f32.mrf.mxu0 }
 0x31a   : > { %v1867_v63 = vadd.f32 %v1866_v20, %v1633_v60  ;;  %v1244_v20 = vld [vmem:[#allocation2 + $0x98] sm:$0xff]  ;;  %v1881_v25 = vpop.f32.mrf.mxu1 }
 0x31b   : > { %v1468_v26 = vmul.f32 %v1435_v19, %v1244_v20 }
 0x31c   : > { %v1934_v2 = vadd.f32 %v4450_v28, %v1867_v63  ;;  %v4478_v63 = vld [vmem:[%s5095_s28] ss:$0 sm:$0xff] }
 0x31d   : > { %v1484_v35 = vpack.c.bf16 %v1468_v26, %v1467_v27 }
 0x31e   : > { %v1966_v8 = vmax.f32 %v1934_v2, 0.0 }
 0x320   : > { %v1992_v10 = vpack.c.bf16 %v1966_v8, %v1965_v7 }
 0x321   : > { %v1636_v11 = vpop.f32.mrf.mxu0 }
 0x322   : > { %2104 = vmatmul.bf16.gmra.mxu2 %v1992_v10  ;;  %v1870_v14 = vadd.f32 %v1869_v31, %v1636_v11  ;;  %v3455_v31 = vld [vmem:[#allocation11 + $0x20] sm:$0xff]  ;;  %v1884_v38 = vpop.f32.mrf.mxu1 }
 0x323   : > { %2279 = vmatpush.bf16.msra.mxu3 %v3455_v31 }
 0x324   : > { %1675 = vmatmul.bf16.gmra.mxu0 %v1483_v12  ;;  %v1935_v18 = vadd.f32 %v4450_v28, %v1870_v14 }
 0x326   : > { %v1967_v29 = vmax.f32 %v1935_v18, 0.0 }
 0x327   : > { %2280 = vmatpush.bf16.msra.mxu3 %v3454_v36 }
 0x329   : > { %v1638_v17 = vpop.f32.mrf.mxu0 }
 0x32a   : > { %v1872_v16 = vadd.f32 %v1871_v40, %v1638_v17  ;;  %v1886_v49 = vpop.f32.mrf.mxu1 }
 0x32b   : > { %2281 = vmatpush.bf16.msra.mxu3 %v3453_v32 }
 0x32c   : > { %v1936_v24 = vadd.f32 %v4450_v28, %v1872_v16 }
 0x32e   : > { %v1968_v30 = vmax.f32 %v1936_v24, 0.0 }
 0x32f   : > { %2282 = vmatpush.bf16.msra.mxu3 %v3452_v42 }
 0x330   : > { %v1993_v33 = vpack.c.bf16 %v1968_v30, %v1967_v29 }
 0x331   : > { %v1641_v34 = vpop.f32.mrf.mxu0 }
 0x332   : > { %2109 = vmatmul.bf16.gmra.mxu2 %v1993_v33  ;;  %v1875_v37 = vadd.f32 %v1874_v55, %v1641_v34  ;;  %v1889_v55 = vpop.f32.mrf.mxu1 }
 0x333   : > { %2283 = vmatpush.bf16.msra.mxu3 %v3451_v46 }
 0x334   : > { %1680 = vmatmul.bf16.gmra.mxu0 %v1484_v35  ;;  %v1937_v40 = vadd.f32 %v4450_v28, %v1875_v37 }
 0x336   : > { %v1969_v44 = vmax.f32 %v1937_v40, 0.0 }
 0x339   : > { %v1643_v39 = vpop.f32.mrf.mxu0 }
 0x33a   : > { %v1877_v41 = vadd.f32 %v1876_v61, %v1643_v39  ;;  %v1891_v61 = vpop.f32.mrf.mxu1 }
 0x33c   : > { %v1938_v43 = vadd.f32 %v4450_v28, %v1877_v41 }
 0x33e   : > { %v1970_v45 = vmax.f32 %v1938_v43, 0.0 }
 0x340   : > { %v1994_v47 = vpack.c.bf16 %v1970_v45, %v1969_v44 }
 0x341   : > { %v1646_v48 = vpop.f32.mrf.mxu0 }
 0x342   : > { %2114 = vmatmul.bf16.gmra.mxu2 %v1994_v47  ;;  %v1880_v50 = vadd.f32 %v1879_v6, %v1646_v48  ;;  %v1894_v10 = vpop.f32.mrf.mxu1 }
 0x344   : > { %v1939_v53 = vadd.f32 %v4450_v28, %v1880_v50 }
 0x346   : > { %v1971_v57 = vmax.f32 %v1939_v53, 0.0 }
 0x349   : > { %v1648_v52 = vpop.f32.mrf.mxu0 }
 0x34a   : > { %v1882_v54 = vadd.f32 %v1881_v25, %v1648_v52  ;;  %v1896_v16 = vpop.f32.mrf.mxu1 }
 0x34c   : > { %v1940_v56 = vadd.f32 %v4450_v28, %v1882_v54 }
 0x34e   : > { %v1972_v58 = vmax.f32 %v1940_v56, 0.0 }
 0x350   : > { %v1995_v51 = vpack.c.bf16 %v1972_v58, %v1971_v57 }
 0x351   : > { %v1651_v59 = vpop.f32.mrf.mxu0 }
 0x352   : > { %2119 = vmatmul.bf16.gmra.mxu2 %v1995_v51  ;;  %v1885_v62 = vadd.f32 %v1884_v38, %v1651_v59  ;;  %v1899_v34 = vpop.f32.mrf.mxu1 }
 0x354   : > { %v1941_v1 = vadd.f32 %v4450_v28, %v1885_v62 }
 0x355   : > { %v2080_v60 = vpop.f32.mrf.mxu2 }
 0x356   : > { %v2081_v3 = vadd.f32 %v4478_v63, %v2080_v60  ;;  %v1973_v7 = vmax.f32 %v1941_v1, 0.0 }
 0x358   : > { %v2160_v11 = vmax.f32 %v2081_v3, 0.0 }
 0x359   : > { %v1653_v0 = vpop.f32.mrf.mxu0 }
 0x35a   : > { %v1887_v2 = vadd.f32 %v1886_v49, %v1653_v0  ;;  %v1901_v42 = vpop.f32.mrf.mxu1 }
 0x35c   : > { %v1942_v4 = vadd.f32 %v4450_v28, %v1887_v2 }
 0x35d   : > { %v2082_v5 = vpop.f32.mrf.mxu2 }
 0x35e   : > { %v1974_v8 = vmax.f32 %v1942_v4, 0.0  ;;  %v2083_v9 = vadd.f32 %v4478_v63, %v2082_v5 }
 0x360   : > { %v2161_v12 = vmax.f32 %v2083_v9, 0.0  ;;  %v1996_v6 = vpack.c.bf16 %v1974_v8, %v1973_v7 }
 0x361   : > { %v1656_v13 = vpop.f32.mrf.mxu0 }
 0x362   : > { %2124 = vmatmul.bf16.gmra.mxu2 %v1996_v6  ;;  %v2192_v14 = vpack.c.bf16 %v2161_v12, %v2160_v11  ;;  %v1890_v17 = vadd.f32 %v1889_v55, %v1656_v13  ;;  %v1904_v54 = vpop.f32.mrf.mxu1 }
 0x364   : > { %2284 = vmatmul.bf16.vlgmr.msra.gmra.mxu3 %v2192_v14  ;;  %v1943_v19 = vadd.f32 %v4450_v28, %v1890_v17 }
 0x365   : > { %v2085_v15 = vpop.f32.mrf.mxu2 }
 0x366   : > { %v2086_v21 = vadd.f32 %v4478_v63, %v2085_v15  ;;  %v1975_v24 = vmax.f32 %v1943_v19, 0.0 }
 0x368   : > { %v2162_v27 = vmax.f32 %v2086_v21, 0.0 }
 0x369   : > { %v1658_v18 = vpop.f32.mrf.mxu0 }
 0x36a   : > { %v1892_v20 = vadd.f32 %v1891_v61, %v1658_v18  ;;  %v1906_v4 = vpop.f32.mrf.mxu1 }
 0x36c   : > { %v1944_v22 = vadd.f32 %v4450_v28, %v1892_v20 }
 0x36d   : > { %v2087_v23 = vpop.f32.mrf.mxu2 }
 0x36e   : > { %v1976_v25 = vmax.f32 %v1944_v22, 0.0  ;;  %v2088_v26 = vadd.f32 %v4478_v63, %v2087_v23 }
 0x370   : > { %v2163_v29 = vmax.f32 %v2088_v26, 0.0  ;;  %v1997_v30 = vpack.c.bf16 %v1976_v25, %v1975_v24 }
 0x371   : > { %v1661_v31 = vpop.f32.mrf.mxu0 }
 0x372   : > { %2129 = vmatmul.bf16.gmra.mxu2 %v1997_v30  ;;  %v2193_v33 = vpack.c.bf16 %v2163_v29, %v2162_v27  ;;  %v1895_v36 = vadd.f32 %v1894_v10, %v1661_v31  ;;  %v1909_v12 = vpop.f32.mrf.mxu1 }
 0x374   : > { %2289 = vmatmul.bf16.gmra.mxu3 %v2193_v33  ;;  %v1945_v38 = vadd.f32 %v4450_v28, %v1895_v36 }
 0x375   : > { %v2090_v35 = vpop.f32.mrf.mxu2 }
 0x376   : > { %v2091_v39 = vadd.f32 %v4478_v63, %v2090_v35  ;;  %v1977_v43 = vmax.f32 %v1945_v38, 0.0 }
 0x378   : > { %v2164_v46 = vmax.f32 %v2091_v39, 0.0 }
 0x379   : > { %v1663_v37 = vpop.f32.mrf.mxu0 }
 0x37a   : > { %v1897_v32 = vadd.f32 %v1896_v16, %v1663_v37  ;;  %v1911_v23 = vpop.f32.mrf.mxu1 }
 0x37c   : > { %v1946_v40 = vadd.f32 %v4450_v28, %v1897_v32 }
 0x37d   : > { %v2092_v41 = vpop.f32.mrf.mxu2 }
 0x37e   : > { %v1978_v44 = vmax.f32 %v1946_v40, 0.0  ;;  %v2093_v45 = vadd.f32 %v4478_v63, %v2092_v41 }
 0x380   : > { %v2165_v47 = vmax.f32 %v2093_v45, 0.0  ;;  %v1998_v48 = vpack.c.bf16 %v1978_v44, %v1977_v43 }
 0x381   : > { %v1666_v49 = vpop.f32.mrf.mxu0 }
 0x382   : > { %2134 = vmatmul.bf16.gmra.mxu2 %v1998_v48  ;;  %v2194_v50 = vpack.c.bf16 %v2165_v47, %v2164_v46  ;;  %v1900_v53 = vadd.f32 %v1899_v34, %v1666_v49  ;;  %v1914_v37 = vpop.f32.mrf.mxu1 }
 0x384   : > { %2294 = vmatmul.bf16.gmra.mxu3 %v2194_v50  ;;  %v1947_v56 = vadd.f32 %v4450_v28, %v1900_v53 }
 0x385   : > { %v2095_v52 = vpop.f32.mrf.mxu2 }
 0x386   : > { %v2096_v58 = vadd.f32 %v4478_v63, %v2095_v52  ;;  %v1979_v60 = vmax.f32 %v1947_v56, 0.0 }
 0x388   : > { %v2166_v0 = vmax.f32 %v2096_v58, 0.0 }
 0x389   : > { %v1668_v55 = vpop.f32.mrf.mxu0 }
 0x38a   : > { %v1902_v57 = vadd.f32 %v1901_v42, %v1668_v55  ;;  %v1916_v44 = vpop.f32.mrf.mxu1 }
 0x38c   : > { %v1948_v51 = vadd.f32 %v4450_v28, %v1902_v57 }
 0x38d   : > { %v2097_v59 = vpop.f32.mrf.mxu2 }
 0x38e   : > { %v1980_v61 = vmax.f32 %v1948_v51, 0.0  ;;  %v2098_v62 = vadd.f32 %v4478_v63, %v2097_v59 }
 0x390   : > { %v2167_v1 = vmax.f32 %v2098_v62, 0.0  ;;  %v1999_v2 = vpack.c.bf16 %v1980_v61, %v1979_v60 }
 0x391   : > { %v1671_v3 = vpop.f32.mrf.mxu0 }
 0x392   : > { %2139 = vmatmul.bf16.gmra.mxu2 %v1999_v2  ;;  %v2195_v5 = vpack.c.bf16 %v2167_v1, %v2166_v0  ;;  %v1905_v8 = vadd.f32 %v1904_v54, %v1671_v3 }
 0x394   : > { %2299 = vmatmul.bf16.gmra.mxu3 %v2195_v5  ;;  %v1949_v10 = vadd.f32 %v4450_v28, %v1905_v8  ;;  %v2365_v5 = vlaneseq }
 0x395   : > { %v2100_v7 = vpop.f32.mrf.mxu2 }
 0x396   : > { %v2101_v6 = vadd.f32 %v4478_v63, %v2100_v7  ;;  %v1981_v15 = vmax.f32 %v1949_v10, 0.0  ;;  %v4512_v10 = vand.u32 127, %v2365_v5 }
 0x398   : > { %v2168_v16 = vmax.f32 %v2101_v6, 0.0  ;;  %vm2367_vm0 = vcmp.lt.s32.totalorder %v4512_v10, 8 }
 0x399   : > { %v1673_v9 = vpop.f32.mrf.mxu0 }
 0x39a   : > { %v1907_v11 = vadd.f32 %v1906_v4, %v1673_v9 }
 0x39c   : > { %v1950_v13 = vadd.f32 %v4450_v28, %v1907_v11  ;;  %v4517_v11 = vld [vmem:[%s5096_s25] ss:$0 sm:$0xff] }
 0x39d   : > { %v2102_v14 = vpop.f32.mrf.mxu2 }
 0x39e   : > { %v1982_v17 = vmax.f32 %v1950_v13, 0.0  ;;  %v2103_v18 = vadd.f32 %v4478_v63, %v2102_v14 }
 0x3a0   : > { %v2169_v19 = vmax.f32 %v2103_v18, 0.0  ;;  %v2000_v20 = vpack.c.bf16 %v1982_v17, %v1981_v15 }
 0x3a1   : > { %v1676_v21 = vpop.f32.mrf.mxu0 }
 0x3a2   : > { %2144 = vmatmul.bf16.gmra.mxu2 %v2000_v20  ;;  %v2196_v22 = vpack.c.bf16 %v2169_v19, %v2168_v16  ;;  %v1910_v25 = vadd.f32 %v1909_v12, %v1676_v21 }
 0x3a4   : > { %2304 = vmatmul.bf16.gmra.mxu3 %v2196_v22  ;;  %v1951_v27 = vadd.f32 %v4450_v28, %v1910_v25 }
 0x3a5   : > { %v2105_v24 = vpop.f32.mrf.mxu2 }
 0x3a6   : > { %v2106_v30 = vadd.f32 %v4478_v63, %v2105_v24  ;;  %v1983_v34 = vmax.f32 %v1951_v27, 0.0 }
 0x3a8   : > { %v2170_v38 = vmax.f32 %v2106_v30, 0.0 }
 0x3a9   : > { %v1678_v26 = vpop.f32.mrf.mxu0 }
 0x3aa   : > { %v1912_v29 = vadd.f32 %v1911_v23, %v1678_v26 }
 0x3ac   : > { %v1952_v31 = vadd.f32 %v4450_v28, %v1912_v29 }
 0x3ad   : > { %v2107_v33 = vpop.f32.mrf.mxu2 }
 0x3ae   : > { %v1984_v35 = vmax.f32 %v1952_v31, 0.0  ;;  %v2108_v36 = vadd.f32 %v4478_v63, %v2107_v33 }
 0x3b0   : > { %v2171_v32 = vmax.f32 %v2108_v36, 0.0  ;;  %v2001_v39 = vpack.c.bf16 %v1984_v35, %v1983_v34 }
 0x3b1   : > { %v1681_v40 = vpop.f32.mrf.mxu0 }
 0x3b2   : > { %2149 = vmatmul.bf16.gmra.mxu2 %v2001_v39  ;;  %v2197_v41 = vpack.c.bf16 %v2171_v32, %v2170_v38  ;;  %v1915_v43 = vadd.f32 %v1914_v37, %v1681_v40 }
 0x3b4   : > { %2309 = vmatmul.bf16.gmra.mxu3 %v2197_v41  ;;  %v1953_v46 = vadd.f32 %v4450_v28, %v1915_v43 }
 0x3b5   : > { %v2110_v42 = vpop.f32.mrf.mxu2 }
 0x3b6   : > { %v2111_v48 = vadd.f32 %v4478_v63, %v2110_v42  ;;  %v1985_v52 = vmax.f32 %v1953_v46, 0.0 }
 0x3b8   : > { %v2172_v55 = vmax.f32 %v2111_v48, 0.0 }
 0x3b9   : > { %v1683_v45 = vpop.f32.mrf.mxu0 }
 0x3ba   : > { %v1917_v47 = vadd.f32 %v1916_v44, %v1683_v45 }
 0x3bc   : > { %v1954_v49 = vadd.f32 %v4450_v28, %v1917_v47 }
 0x3bd   : > { %v2112_v50 = vpop.f32.mrf.mxu2 }
 0x3be   : > { %v1986_v53 = vmax.f32 %v1954_v49, 0.0  ;;  %v2113_v54 = vadd.f32 %v4478_v63, %v2112_v50 }
 0x3c0   : > { %v2173_v56 = vmax.f32 %v2113_v54, 0.0  ;;  %v2002_v57 = vpack.c.bf16 %v1986_v53, %v1985_v52 }
 0x3c2   : > { %2154 = vmatmul.bf16.gmra.mxu2 %v2002_v57  ;;  %v2198_v58 = vpack.c.bf16 %v2173_v56, %v2172_v55 }
 0x3c4   : > { %2314 = vmatmul.bf16.gmra.mxu3 %v2198_v58 }
 0x3c5   : > { %v2115_v51 = vpop.f32.mrf.mxu2 }
 0x3c6   : > { %v2116_v59 = vadd.f32 %v4478_v63, %v2115_v51 }
 0x3c8   : > { %v2174_v62 = vmax.f32 %v2116_v59, 0.0 }
 0x3cd   : > { %v2117_v60 = vpop.f32.mrf.mxu2 }
 0x3ce   : > { %v2118_v61 = vadd.f32 %v4478_v63, %v2117_v60 }
 0x3d0   : > { %v2175_v0 = vmax.f32 %v2118_v61, 0.0 }
 0x3d2   : > { %v2199_v28 = vpack.c.bf16 %v2175_v0, %v2174_v62 }
 0x3d4   : > { %2319 = vmatmul.bf16.gmra.mxu3 %v2199_v28 }
 0x3d5   : > { %v2120_v1 = vpop.f32.mrf.mxu2 }
 0x3d6   : > { %v2121_v2 = vadd.f32 %v4478_v63, %v2120_v1 }
 0x3d8   : > { %v2176_v7 = vmax.f32 %v2121_v2, 0.0 }
 0x3dd   : > { %v2122_v3 = vpop.f32.mrf.mxu2 }
 0x3de   : > { %v2123_v4 = vadd.f32 %v4478_v63, %v2122_v3 }
 0x3e0   : > { %v2177_v8 = vmax.f32 %v2123_v4, 0.0 }
 0x3e2   : > { %v2200_v9 = vpack.c.bf16 %v2177_v8, %v2176_v7 }
 0x3e4   : > { %2324 = vmatmul.bf16.gmra.mxu3 %v2200_v9 }
 0x3e5   : > { %v2125_v12 = vpop.f32.mrf.mxu2 }
 0x3e6   : > { %v2126_v15 = vadd.f32 %v4478_v63, %v2125_v12 }
 0x3e7   : > { %v2285_v6 = vpop.f32.mrf.mxu3 }
 0x3e8   : > { %v2286_v13 = vadd.f32 %v4517_v11, %v2285_v6  ;;  %v2178_v19 = vmax.f32 %v2126_v15, 0.0 }
 0x3ea   : > { %v4523_v14 = vsel %vm2367_vm0, %v2286_v13, -1e+30 }
 0x3eb   : > { %2400 = vmax.xlane.f32.xlu2 %v4523_v14 }
 0x3ed   : > { %v2127_v17 = vpop.f32.mrf.mxu2 }
 0x3ee   : > { %v2128_v18 = vadd.f32 %v4478_v63, %v2127_v17 }
 0x3ef   : > { %v2287_v16 = vpop.f32.mrf.mxu3 }
 0x3f0   : > { %v2179_v20 = vmax.f32 %v2128_v18, 0.0  ;;  %v2288_v21 = vadd.f32 %v4517_v11, %v2287_v16 }
 0x3f2   : > { %v4531_v22 = vsel %vm2367_vm0, %v2288_v21, -1e+30  ;;  %v2201_v23 = vpack.c.bf16 %v2179_v20, %v2178_v19 }
 0x3f3   : > { %2402 = vmax.xlane.f32.xlu0 %v4531_v22 }
 0x3f4   : > { %2329 = vmatmul.bf16.gmra.mxu3 %v2201_v23 }
 0x3f5   : > { %v2130_v24 = vpop.f32.mrf.mxu2 }
 0x3f6   : > { %v2131_v29 = vadd.f32 %v4478_v63, %v2130_v24 }
 0x3f7   : > { %v2290_v25 = vpop.f32.mrf.mxu3 }
 0x3f8   : > { %v2291_v26 = vadd.f32 %v4517_v11, %v2290_v25  ;;  %v2180_v34 = vmax.f32 %v2131_v29, 0.0 }
 0x3fa   : > { %v4537_v27 = vsel %vm2367_vm0, %v2291_v26, -1e+30 }
 0x3fb   : > { %2404 = vmax.xlane.f32.xlu1 %v4537_v27 }
 0x3fd   : > { %v2132_v30 = vpop.f32.mrf.mxu2 }
 0x3fe   : > { %v2133_v31 = vadd.f32 %v4478_v63, %v2132_v30 }
 0x3ff   : > { %v2292_v33 = vpop.f32.mrf.mxu3 }
 0x400   : > { %v2181_v35 = vmax.f32 %v2133_v31, 0.0  ;;  %v2293_v36 = vadd.f32 %v4517_v11, %v2292_v33 }
 0x402   : > { %v4545_v37 = vsel %vm2367_vm0, %v2293_v36, -1e+30  ;;  %v2202_v38 = vpack.c.bf16 %v2181_v35, %v2180_v34 }
 0x403   : > { %2406 = vmax.xlane.f32.xlu2 %v4545_v37 }
 0x404   : > { %2334 = vmatmul.bf16.gmra.mxu3 %v2202_v38 }
 0x405   : > { %v2135_v32 = vpop.f32.mrf.mxu2 }
 0x406   : > { %v2136_v42 = vadd.f32 %v4478_v63, %v2135_v32 }
 0x407   : > { %v2295_v39 = vpop.f32.mrf.mxu3 }
 0x408   : > { %v2296_v40 = vadd.f32 %v4517_v11, %v2295_v39  ;;  %v2182_v46 = vmax.f32 %v2136_v42, 0.0 }
 0x40a   : > { %v4551_v41 = vsel %vm2367_vm0, %v2296_v40, -1e+30 }
 0x40b   : > { %2408 = vmax.xlane.f32.xlu2 %v4551_v41 }
 0x40d   : > { %v2137_v43 = vpop.f32.mrf.mxu2 }
 0x40e   : > { %v2138_v44 = vadd.f32 %v4478_v63, %v2137_v43 }
 0x40f   : > { %v2297_v45 = vpop.f32.mrf.mxu3 }
 0x410   : > { %v2183_v47 = vmax.f32 %v2138_v44, 0.0  ;;  %v2298_v48 = vadd.f32 %v4517_v11, %v2297_v45 }
 0x412   : > { %v4559_v49 = vsel %vm2367_vm0, %v2298_v48, -1e+30  ;;  %v2203_v50 = vpack.c.bf16 %v2183_v47, %v2182_v46 }
 0x413   : > { %2410 = vmax.xlane.f32.xlu0 %v4559_v49 }
 0x414   : > { %2339 = vmatmul.bf16.gmra.mxu3 %v2203_v50 }
 0x415   : > { %v2140_v52 = vpop.f32.mrf.mxu2 }
 0x416   : > { %v2141_v56 = vadd.f32 %v4478_v63, %v2140_v52 }
 0x417   : > { %v2300_v53 = vpop.f32.mrf.mxu3 }
 0x418   : > { %v2301_v54 = vadd.f32 %v4517_v11, %v2300_v53  ;;  %v2184_v59 = vmax.f32 %v2141_v56, 0.0 }
 0x41a   : > { %v4565_v55 = vsel %vm2367_vm0, %v2301_v54, -1e+30 }
 0x41b   : > { %2412 = vmax.xlane.f32.xlu1 %v4565_v55 }
 0x41d   : > { %v2142_v57 = vpop.f32.mrf.mxu2 }
 0x41e   : > { %v2143_v58 = vadd.f32 %v4478_v63, %v2142_v57 }
 0x41f   : > { %v2302_v51 = vpop.f32.mrf.mxu3 }
 0x420   : > { %v2185_v60 = vmax.f32 %v2143_v58, 0.0  ;;  %v2303_v61 = vadd.f32 %v4517_v11, %v2302_v51 }
 0x422   : > { %v2204_v62 = vpack.c.bf16 %v2185_v60, %v2184_v59  ;;  %v4573_v0 = vsel %vm2367_vm0, %v2303_v61, -1e+30 }
 0x423   : > { %2414 = vmax.xlane.f32.xlu2 %v4573_v0 }
 0x424   : > { %2344 = vmatmul.bf16.gmra.mxu3 %v2204_v62 }
 0x425   : > { %v2145_v28 = vpop.f32.mrf.mxu2 }
 0x426   : > { %v2146_v4 = vadd.f32 %v4478_v63, %v2145_v28 }
 0x427   : > { %v2305_v1 = vpop.f32.mrf.mxu3 }
 0x428   : > { %v2306_v2 = vadd.f32 %v4517_v11, %v2305_v1  ;;  %v2186_v9 = vmax.f32 %v2146_v4, 0.0 }
 0x42a   : > { %v4579_v3 = vsel %vm2367_vm0, %v2306_v2, -1e+30 }
 0x42b   : > { %2416 = vmax.xlane.f32.xlu0 %v4579_v3 }
 0x42d   : > { %v2147_v5 = vpop.f32.mrf.mxu2 }
 0x42e   : > { %v2148_v7 = vadd.f32 %v4478_v63, %v2147_v5 }
 0x42f   : > { %v2307_v8 = vpop.f32.mrf.mxu3 }
 0x430   : > { %v2187_v12 = vmax.f32 %v2148_v7, 0.0  ;;  %v2308_v6 = vadd.f32 %v4517_v11, %v2307_v8 }
 0x432   : > { %v2205_v13 = vpack.c.bf16 %v2187_v12, %v2186_v9  ;;  %v4587_v15 = vsel %vm2367_vm0, %v2308_v6, -1e+30 }
 0x433   : > { %2418 = vmax.xlane.f32.xlu1 %v4587_v15 }
 0x434   : > { %2349 = vmatmul.bf16.gmra.mxu3 %v2205_v13 }
 0x435   : > { %v2150_v17 = vpop.f32.mrf.mxu2 }
 0x436   : > { %v2151_v20 = vadd.f32 %v4478_v63, %v2150_v17 }
 0x437   : > { %v2310_v18 = vpop.f32.mrf.mxu3 }
 0x438   : > { %v2311_v16 = vadd.f32 %v4517_v11, %v2310_v18  ;;  %v2188_v25 = vmax.f32 %v2151_v20, 0.0 }
 0x43a   : > { %v4593_v19 = vsel %vm2367_vm0, %v2311_v16, -1e+30 }
 0x43b   : > { %2420 = vmax.xlane.f32.xlu2 %v4593_v19 }
 0x43d   : > { %v2152_v21 = vpop.f32.mrf.mxu2 }
 0x43e   : > { %v2153_v23 = vadd.f32 %v4478_v63, %v2152_v21 }
 0x43f   : > { %v2312_v24 = vpop.f32.mrf.mxu3 }
 0x440   : > { %v2189_v26 = vmax.f32 %v2153_v23, 0.0  ;;  %v2313_v29 = vadd.f32 %v4517_v11, %v2312_v24 }
 0x442   : > { %v2206_v30 = vpack.c.bf16 %v2189_v26, %v2188_v25  ;;  %v4601_v31 = vsel %vm2367_vm0, %v2313_v29, -1e+30 }
 0x443   : > { %2422 = vmax.xlane.f32.xlu0 %v4601_v31 }
 0x444   : > { %2354 = vmatmul.bf16.gmra.mxu3 %v2206_v30 }
 0x445   : > { %v2155_v33 = vpop.f32.mrf.mxu2 }
 0x446   : > { %v2156_v38 = vadd.f32 %v4478_v63, %v2155_v33 }
 0x447   : > { %v2315_v34 = vpop.f32.mrf.mxu3 }
 0x448   : > { %v2316_v35 = vadd.f32 %v4517_v11, %v2315_v34  ;;  %v2190_v42 = vmax.f32 %v2156_v38, 0.0 }
 0x44a   : > { %v4607_v36 = vsel %vm2367_vm0, %v2316_v35, -1e+30 }
 0x44b   : > { %2424 = vmax.xlane.f32.xlu1 %v4607_v36 }
 0x44d   : > { %v2157_v32 = vpop.f32.mrf.mxu2 }
 0x44e   : > { %v2158_v39 = vadd.f32 %v4478_v63, %v2157_v32 }
 0x44f   : > { %v2317_v40 = vpop.f32.mrf.mxu3 }
 0x450   : > { %v2191_v43 = vmax.f32 %v2158_v39, 0.0  ;;  %v2318_v44 = vadd.f32 %v4517_v11, %v2317_v40 }
 0x452   : > { %v2207_v45 = vpack.c.bf16 %v2191_v43, %v2190_v42  ;;  %v4615_v46 = vsel %vm2367_vm0, %v2318_v44, -1e+30 }
 0x453   : > { %2426 = vmax.xlane.f32.xlu2 %v4615_v46 }
 0x454   : > { %2359 = vmatmul.bf16.gmra.mxu3 %v2207_v45 }
 0x457   : > { %v2320_v47 = vpop.f32.mrf.mxu3 }
 0x458   : > { %v2321_v48 = vadd.f32 %v4517_v11, %v2320_v47 }
 0x45a   : > { %v4621_v50 = vsel %vm2367_vm0, %v2321_v48, -1e+30 }
 0x45b   : > { %2428 = vmax.xlane.f32.xlu0 %v4621_v50 }
 0x45e   : > { %v2401_v63 = vpop.xlane.xlu2 %2400 }
 0x45f   : > { %v4625_v52 = vsub.f32 %v4523_v14, %v2401_v63  ;;  %v2322_v53 = vpop.f32.mrf.mxu3 }
 0x460   : > { %v2323_v54 = vadd.f32 %v4517_v11, %v2322_v53 }
 0x461   : > { %v2496_v56 = vmul.f32 1.442695, %v4625_v52 }
 0x462   : > { %v4631_v57 = vsel %vm2367_vm0, %v2323_v54, -1e+30 }
 0x463   : > { %3620 = vpow2.f32 %v2496_v56  ;;  %2430 = vmax.xlane.f32.xlu1 %v4631_v57 }
 0x466   : > { %v2403_v58 = vpop.xlane.xlu0 %2402 }
 0x467   : > { %v4635_v51 = vsub.f32 %v4531_v22, %v2403_v58  ;;  %v2325_v59 = vpop.f32.mrf.mxu3 }
 0x468   : > { %v2326_v14 = vadd.f32 %v4517_v11, %v2325_v59 }
 0x469   : > { %v3621_v60 = vpop.eup %3620  ;;  %v2498_v61 = vmul.f32 1.442695, %v4635_v51 }
 0x46a   : > { %v2560_v62 = vsel %vm2367_vm0, %v3621_v60, 0.0  ;;  %v4643_v28 = vsel %vm2367_vm0, %v2326_v14, -1e+30 }
 0x46b   : > { %3622 = vpow2.f32 %v2498_v61  ;;  %2592 = vadd.xlane.f32.xlu0 %v2560_v62  ;;  %2432 = vmax.xlane.f32.xlu2 %v4643_v28 }
 0x46e   : > { %v2405_v1 = vpop.xlane.xlu1 %2404 }
 0x46f   : > { %v4647_v22 = vsub.f32 %v4537_v27, %v2405_v1  ;;  %v2327_v2 = vpop.f32.mrf.mxu3 }
 0x470   : > { %v2328_v4 = vadd.f32 %v4517_v11, %v2327_v2 }
 0x471   : > { %v3623_v5 = vpop.eup %3622  ;;  %v2500_v7 = vmul.f32 1.442695, %v4647_v22 }
 0x472   : > { %v2561_v8 = vsel %vm2367_vm0, %v3623_v5, 0.0  ;;  %v4655_v9 = vsel %vm2367_vm0, %v2328_v4, -1e+30 }
 0x473   : > { %3624 = vpow2.f32 %v2500_v7  ;;  %2594 = vadd.xlane.f32.xlu1 %v2561_v8  ;;  %2434 = vmax.xlane.f32.xlu0 %v4655_v9 }
 0x476   : > { %v2407_v12 = vpop.xlane.xlu2 %2406 }
 0x477   : > { %v4659_v27 = vsub.f32 %v4545_v37, %v2407_v12  ;;  %v2330_v6 = vpop.f32.mrf.mxu3 }
 0x478   : > { %v2331_v13 = vadd.f32 %v4517_v11, %v2330_v6 }
 0x479   : > { %v3625_v17 = vpop.eup %3624  ;;  %v2502_v18 = vmul.f32 1.442695, %v4659_v27 }
 0x47a   : > { %v2562_v16 = vsel %vm2367_vm0, %v3625_v17, 0.0  ;;  %v4667_v20 = vsel %vm2367_vm0, %v2331_v13, -1e+30 }
 0x47b   : > { %3626 = vpow2.f32 %v2502_v18  ;;  %2596 = vadd.xlane.f32.xlu2 %v2562_v16  ;;  %2436 = vmax.xlane.f32.xlu1 %v4667_v20 }
 0x47e   : > { %v2409_v21 = vpop.xlane.xlu2 %2408 }
 0x47f   : > { %v4671_v37 = vsub.f32 %v4551_v41, %v2409_v21  ;;  %v2332_v23 = vpop.f32.mrf.mxu3 }
 0x480   : > { %v2333_v24 = vadd.f32 %v4517_v11, %v2332_v23 }
 0x481   : > { %v3627_v25 = vpop.eup %3626  ;;  %v2504_v26 = vmul.f32 1.442695, %v4671_v37 }
 0x482   : > { %v2563_v29 = vsel %vm2367_vm0, %v3627_v25, 0.0  ;;  %v4679_v30 = vsel %vm2367_vm0, %v2333_v24, -1e+30 }
 0x483   : > { %3628 = vpow2.f32 %v2504_v26  ;;  %2598 = vadd.xlane.f32.xlu0 %v2563_v29  ;;  %2438 = vmax.xlane.f32.xlu2 %v4679_v30 }
 0x486   : > { %v2411_v33 = vpop.xlane.xlu0 %2410 }
 0x487   : > { %v4683_v41 = vsub.f32 %v4559_v49, %v2411_v33  ;;  %v2335_v34 = vpop.f32.mrf.mxu3 }
 0x488   : > { %v2336_v35 = vadd.f32 %v4517_v11, %v2335_v34 }
 0x489   : > { %v3629_v38 = vpop.eup %3628  ;;  %v2506_v32 = vmul.f32 1.442695, %v4683_v41 }
 0x48a   : > { %v2564_v39 = vsel %vm2367_vm0, %v3629_v38, 0.0  ;;  %v4691_v40 = vsel %vm2367_vm0, %v2336_v35, -1e+30 }
 0x48b   : > { %3630 = vpow2.f32 %v2506_v32  ;;  %2600 = vadd.xlane.f32.xlu1 %v2564_v39  ;;  %2440 = vmax.xlane.f32.xlu0 %v4691_v40 }
 0x48e   : > { %v2413_v42 = vpop.xlane.xlu1 %2412 }
 0x48f   : > { %v4695_v49 = vsub.f32 %v4565_v55, %v2413_v42  ;;  %v2337_v43 = vpop.f32.mrf.mxu3 }
 0x490   : > { %v2338_v44 = vadd.f32 %v4517_v11, %v2337_v43 }
 0x491   : > { %v3631_v45 = vpop.eup %3630  ;;  %v2508_v47 = vmul.f32 1.442695, %v4695_v49 }
 0x492   : > { %v2565_v48 = vsel %vm2367_vm0, %v3631_v45, 0.0  ;;  %v4703_v63 = vsel %vm2367_vm0, %v2338_v44, -1e+30 }
 0x493   : > { %3632 = vpow2.f32 %v2508_v47  ;;  %2602 = vadd.xlane.f32.xlu2 %v2565_v48  ;;  %2442 = vmax.xlane.f32.xlu1 %v4703_v63 }
 0x496   : > { %v2415_v53 = vpop.xlane.xlu2 %2414 }
 0x497   : > { %v4707_v55 = vsub.f32 %v4573_v0, %v2415_v53  ;;  %v2340_v54 = vpop.f32.mrf.mxu3 }
 0x498   : > { %v2341_v56 = vadd.f32 %v4517_v11, %v2340_v54 }
 0x499   : > { %v3633_v58 = vpop.eup %3632  ;;  %v2510_v59 = vmul.f32 1.442695, %v4707_v55 }
 0x49a   : > { %v2566_v14 = vsel %vm2367_vm0, %v3633_v58, 0.0  ;;  %v4715_v60 = vsel %vm2367_vm0, %v2341_v56, -1e+30 }
 0x49b   : > { %3634 = vpow2.f32 %v2510_v59  ;;  %2604 = vadd.xlane.f32.xlu0 %v2566_v14  ;;  %2444 = vmax.xlane.f32.xlu2 %v4715_v60 }
 0x49e   : > { %v2417_v61 = vpop.xlane.xlu0 %2416 }
 0x49f   : > { %v4719_v0 = vsub.f32 %v4579_v3, %v2417_v61  ;;  %v2342_v62 = vpop.f32.mrf.mxu3 }
 0x4a0   : > { %v2343_v1 = vadd.f32 %v4517_v11, %v2342_v62 }
 0x4a1   : > { %v3635_v2 = vpop.eup %3634  ;;  %v2512_v4 = vmul.f32 1.442695, %v4719_v0 }
 0x4a2   : > { %v2567_v5 = vsel %vm2367_vm0, %v3635_v2, 0.0  ;;  %v4727_v7 = vsel %vm2367_vm0, %v2343_v1, -1e+30 }
 0x4a3   : > { %3636 = vpow2.f32 %v2512_v4  ;;  %2606 = vadd.xlane.f32.xlu1 %v2567_v5  ;;  %2446 = vmax.xlane.f32.xlu0 %v4727_v7 }
 0x4a6   : > { %v2419_v8 = vpop.xlane.xlu1 %2418 }
 0x4a7   : > { %v4731_v3 = vsub.f32 %v4587_v15, %v2419_v8  ;;  %v2345_v12 = vpop.f32.mrf.mxu3 }
 0x4a8   : > { %v2346_v6 = vadd.f32 %v4517_v11, %v2345_v12 }
 0x4a9   : > { %v3637_v13 = vpop.eup %3636  ;;  %v2514_v17 = vmul.f32 1.442695, %v4731_v3 }
 0x4aa   : > { %v2568_v18 = vsel %vm2367_vm0, %v3637_v13, 0.0  ;;  %v4739_v16 = vsel %vm2367_vm0, %v2346_v6, -1e+30 }
 0x4ab   : > { %3638 = vpow2.f32 %v2514_v17  ;;  %2608 = vadd.xlane.f32.xlu2 %v2568_v18  ;;  %2448 = vmax.xlane.f32.xlu1 %v4739_v16 }
 0x4ae   : > { %v2421_v21 = vpop.xlane.xlu2 %2420 }
 0x4af   : > { %v4743_v15 = vsub.f32 %v4593_v19, %v2421_v21  ;;  %v2347_v23 = vpop.f32.mrf.mxu3 }
 0x4b0   : > { %v2348_v24 = vadd.f32 %v4517_v11, %v2347_v23 }
 0x4b1   : > { %v3639_v25 = vpop.eup %3638  ;;  %v2516_v26 = vmul.f32 1.442695, %v4743_v15 }
 0x4b2   : > { %v2569_v29 = vsel %vm2367_vm0, %v3639_v25, 0.0  ;;  %v4751_v33 = vsel %vm2367_vm0, %v2348_v24, -1e+30 }
 0x4b3   : > { %3640 = vpow2.f32 %v2516_v26  ;;  %2610 = vadd.xlane.f32.xlu0 %v2569_v29  ;;  %2450 = vmax.xlane.f32.xlu2 %v4751_v33 }
 0x4b6   : > { %v2423_v56 = vpop.xlane.xlu0 %2422 }
 0x4b7   : > { %v2350_v34 = vpop.f32.mrf.mxu3 }
 0x4b8   : > { %v2351_v19 = vadd.f32 %v4517_v11, %v2350_v34 }
 0x4b9   : > { %v3641_v35 = vpop.eup %3640 }
 0x4ba   : > { %v2570_v38 = vsel %vm2367_vm0, %v3641_v35, 0.0  ;;  %v4759_v32 = vsel %vm2367_vm0, %v2351_v19, -1e+30 }
 0x4bb   : > { %2612 = vadd.xlane.f32.xlu1 %v2570_v38  ;;  %2452 = vmax.xlane.f32.xlu0 %v4759_v32 }
 0x4be   : > { %v2425_v44 = vpop.xlane.xlu1 %2424 }
 0x4bf   : > { %v2352_v39 = vpop.f32.mrf.mxu3  ;;  %v4770_v48 = vsub.f32 %v4607_v36, %v2425_v44 }
 0x4c0   : > { %v2353_v42 = vadd.f32 %v4517_v11, %v2352_v39 }
 0x4c1   : > { %v2520_v54 = vmul.f32 1.442695, %v4770_v48 }
 0x4c2   : > { %v4765_v43 = vsel %vm2367_vm0, %v2353_v42, -1e+30 }
 0x4c3   : > { %2454 = vmax.xlane.f32.xlu1 %v4765_v43  ;;  %3642 = vpow2.f32 %v2520_v54 }
 0x4c6   : > { %v2427_v58 = vpop.xlane.xlu2 %2426 }
 0x4c7   : > { %v2355_v45 = vpop.f32.mrf.mxu3  ;;  %v4780_v61 = vsub.f32 %v4615_v46, %v2427_v58  ;;  %v4793_v46 = vsub.f32 %v4601_v31, %v2423_v56 }
 0x4c8   : > { %v2356_v47 = vadd.f32 %v4517_v11, %v2355_v45 }
 0x4c9   : > { %v2522_v62 = vmul.f32 1.442695, %v4780_v61  ;;  %v3643_v4 = vpop.eup %3642 }
 0x4ca   : > { %v4774_v53 = vsel %vm2367_vm0, %v2356_v47, -1e+30  ;;  %v2572_v13 = vsel %vm2367_vm0, %v3643_v4, 0.0 }
 0x4cb   : > { %2456 = vmax.xlane.f32.xlu2 %v4774_v53  ;;  %3644 = vpow2.f32 %v2522_v62 }
 0x4ce   : > { %v2429_v1 = vpop.xlane.xlu0 %2428 }
 0x4cf   : > { %v2357_v59 = vpop.f32.mrf.mxu3  ;;  %v4809_v29 = vsub.f32 %v4621_v50, %v2429_v1 }
 0x4d0   : > { %v2358_v14 = vadd.f32 %v4517_v11, %v2357_v59 }
 0x4d1   : > { %v3645_v24 = vpop.eup %3644 }
 0x4d2   : > { %v4784_v36 = vsel %vm2367_vm0, %v2358_v14, -1e+30 }
 0x4d3   : > { %2458 = vmax.xlane.f32.xlu0 %v4784_v36 }
 0x4d6   : > { %v2431_v2 = vpop.xlane.xlu1 %2430 }
 0x4d7   : > { %v4789_v5 = vsub.f32 %v4631_v57, %v2431_v2  ;;  %v2360_v8 = vpop.f32.mrf.mxu3  ;;  %v2518_v57 = vmul.f32 1.442695, %v4793_v46 }
 0x4d8   : > { %v2361_v12 = vadd.f32 %v4517_v11, %v2360_v8 }
 0x4d9   : > { %v2526_v6 = vmul.f32 1.442695, %v4789_v5 }
 0x4da   : > { %v4800_v17 = vsel %vm2367_vm0, %v2361_v12, -1e+30 }
 0x4db   : > { %3646 = vpow2.f32 %v2526_v6  ;;  %2616 = vadd.xlane.f32.xlu0 %v2572_v13  ;;  %2460 = vmax.xlane.f32.xlu1 %v4800_v17 }
 0x4de   : > { %v2593_v18 = vpop.xlane.xlu0 %2592  ;;  %v2433_v21 = vpop.xlane.xlu2 %2432 }
 0x4df   : > { %3648 = vlog2.f32 %v2593_v18  ;;  %v4805_v31 = vsub.f32 %v4643_v28, %v2433_v21  ;;  %v2362_v23 = vpop.f32.mrf.mxu3  ;;  %v2524_v28 = vmul.f32 1.442695, %v4809_v29 }
 0x4e0   : > { %v2363_v25 = vadd.f32 %v4517_v11, %v2362_v23  ;;  %3650 = vpow2.f32 %v2518_v57  ;;  %v2573_v11 = vsel %vm2367_vm0, %v3645_v24, 0.0 }
 0x4e1   : > { %v3647_v26 = vpop.eup %3646  ;;  %v2528_v34 = vmul.f32 1.442695, %v4805_v31 }
 0x4e2   : > { %v2575_v19 = vsel %vm2367_vm0, %v3647_v26, 0.0  ;;  %v4816_v35 = vsel %vm2367_vm0, %v2363_v25, -1e+30 }
 0x4e3   : > { %3652 = vpow2.f32 %v2528_v34  ;;  %2622 = vadd.xlane.f32.xlu0 %v2575_v19  ;;  %2462 = vmax.xlane.f32.xlu2 %v4816_v35 }
 0x4e4   : > { %2618 = vadd.xlane.f32.xlu1 %v2573_v11 }
 0x4e5   : > { %v3649_v50 = vpop.eup %3648 }
 0x4e6   : > { %v2657_v38 = vmul.f32 0.6931472, %v3649_v50  ;;  %v2595_v39 = vpop.xlane.xlu1 %2594  ;;  %v2435_v42 = vpop.xlane.xlu0 %2434 }
 0x4e7   : > { %v3651_v44 = vpop.eup %3650  ;;  %3654 = vlog2.f32 %v2595_v39  ;;  %v4824_v54 = vsub.f32 %v4655_v9, %v2435_v42 }
 0x4e8   : > { %v2720_v45 = vsub.f32 %v4625_v52, %v2657_v38  ;;  %3656 = vpow2.f32 %v2524_v28  ;;  %v2571_v56 = vsel %vm2367_vm0, %v3651_v44, 0.0 }
 0x4e9   : > { %v3653_v47 = vpop.eup %3652  ;;  %v2530_v14 = vmul.f32 1.442695, %v4824_v54 }
 0x4ea   : > { %2752 = vst [vmem:[%s4270_s10] sm:$0xff] %v2720_v45  ;;  %v2576_v58 = vsel %vm2367_vm0, %v3653_v47, 0.0 }
 0x4eb   : > { %2614 = vadd.xlane.f32.xlu2 %v2571_v56 }
 0x4ec   : > { %2624 = vadd.xlane.f32.xlu1 %v2576_v58 }
 0x4ed   : > { %v3655_v59 = vpop.eup %3654 }
 0x4ee   : > { %v2659_v62 = vmul.f32 0.6931472, %v3655_v59  ;;  %v2597_v52 = vpop.xlane.xlu2 %2596  ;;  %v2437_v1 = vpop.xlane.xlu1 %2436 }
 0x4ef   : > { %v3657_v2 = vpop.eup %3656  ;;  %3658 = vlog2.f32 %v2597_v52  ;;  %v4833_v9 = vsub.f32 %v4667_v20, %v2437_v1 }
 0x4f0   : > { %v2721_v4 = vsub.f32 %v4635_v51, %v2659_v62  ;;  %3660 = vpow2.f32 %v2530_v14  ;;  %v2574_v12 = vsel %vm2367_vm0, %v3657_v2, 0.0 }
 0x4f1   : > { %v2532_v8 = vmul.f32 1.442695, %v4833_v9 }
 0x4f2   : > { %2753 = vst [vmem:[%s4270_s10 + $0x8] sm:$0xff] %v2721_v4 }
 0x4f3   : > { %3662 = vpow2.f32 %v2532_v8  ;;  %2620 = vadd.xlane.f32.xlu2 %v2574_v12 }
 0x4f5   : > { %v3659_v6 = vpop.eup %3658 }
 0x4f6   : > { %v2661_v13 = vmul.f32 0.6931472, %v3659_v6  ;;  %v2599_v57 = vpop.xlane.xlu0 %2598  ;;  %v2439_v18 = vpop.xlane.xlu2 %2438 }
 0x4f7   : > { %v3661_v21 = vpop.eup %3660  ;;  %3664 = vlog2.f32 %v2599_v57  ;;  %v4841_v20 = vsub.f32 %v4679_v30, %v2439_v18 }
 0x4f8   : > { %v2722_v51 = vsub.f32 %v4647_v22, %v2661_v13  ;;  %v2577_v26 = vsel %vm2367_vm0, %v3661_v21, 0.0 }
 0x4f9   : > { %v3663_v23 = vpop.eup %3662  ;;  %v2534_v24 = vmul.f32 1.442695, %v4841_v20 }
 0x4fa   : > { %2754 = vst [vmem:[%s4270_s10 + $0x10] sm:$0xff] %v2722_v51  ;;  %v2578_v25 = vsel %vm2367_vm0, %v3663_v23, 0.0 }
 0x4fb   : > { %3666 = vpow2.f32 %v2534_v24  ;;  %2628 = vadd.xlane.f32.xlu0 %v2578_v25  ;;  %2626 = vadd.xlane.f32.xlu2 %v2577_v26 }
 0x4fd   : > { %v3665_v34 = vpop.eup %3664 }
 0x4fe   : > { %v2663_v19 = vmul.f32 0.6931472, %v3665_v34  ;;  %v2601_v30 = vpop.xlane.xlu1 %2600  ;;  %v2441_v11 = vpop.xlane.xlu0 %2440 }
 0x4ff   : > { %3668 = vlog2.f32 %v2601_v30  ;;  %v4851_v22 = vsub.f32 %v4691_v40, %v2441_v11 }
 0x500   : > { %v2723_v50 = vsub.f32 %v4659_v27, %v2663_v19 }
 0x501   : > { %v3667_v28 = vpop.eup %3666  ;;  %v2536_v38 = vmul.f32 1.442695, %v4851_v22 }
 0x502   : > { %2755 = vst [vmem:[%s4270_s10 + $0x18] sm:$0xff] %v2723_v50  ;;  %v2579_v39 = vsel %vm2367_vm0, %v3667_v28, 0.0 }
 0x503   : > { %3670 = vpow2.f32 %v2536_v38  ;;  %2630 = vadd.xlane.f32.xlu1 %v2579_v39 }
 0x505   : > { %v3669_v42 = vpop.eup %3668 }
 0x506   : > { %v2665_v44 = vmul.f32 0.6931472, %v3669_v42  ;;  %v2603_v45 = vpop.xlane.xlu2 %2602  ;;  %v2443_v47 = vpop.xlane.xlu1 %2442 }
 0x507   : > { %3672 = vlog2.f32 %v2603_v45  ;;  %v4859_v40 = vsub.f32 %v4703_v63, %v2443_v47 }
 0x508   : > { %v2724_v27 = vsub.f32 %v4671_v37, %v2665_v44 }
 0x509   : > { %v3671_v56 = vpop.eup %3670  ;;  %v2538_v58 = vmul.f32 1.442695, %v4859_v40 }
 0x50a   : > { %2756 = vst [vmem:[%s4270_s10 + $0x20] sm:$0xff] %v2724_v27  ;;  %v2580_v59 = vsel %vm2367_vm0, %v3671_v56, 0.0 }
 0x50b   : > { %3674 = vpow2.f32 %v2538_v58  ;;  %2632 = vadd.xlane.f32.xlu2 %v2580_v59 }
 0x50d   : > { %v3673_v14 = vpop.eup %3672 }
 0x50e   : > { %v2667_v62 = vmul.f32 0.6931472, %v3673_v14  ;;  %v2605_v52 = vpop.xlane.xlu0 %2604  ;;  %v2445_v1 = vpop.xlane.xlu2 %2444 }
 0x50f   : > { %3676 = vlog2.f32 %v2605_v52  ;;  %v4867_v63 = vsub.f32 %v4715_v60, %v2445_v1 }
 0x510   : > { %v2725_v37 = vsub.f32 %v4683_v41, %v2667_v62 }
 0x511   : > { %v3675_v2 = vpop.eup %3674  ;;  %v2540_v4 = vmul.f32 1.442695, %v4867_v63 }
 0x512   : > { %2757 = vst [vmem:[%s4270_s10 + $0x28] sm:$0xff] %v2725_v37  ;;  %v2581_v8 = vsel %vm2367_vm0, %v3675_v2, 0.0 }
 0x513   : > { %3678 = vpow2.f32 %v2540_v4  ;;  %2634 = vadd.xlane.f32.xlu0 %v2581_v8 }
 0x515   : > { %v3677_v12 = vpop.eup %3676 }
 0x516   : > { %v2669_v6 = vmul.f32 0.6931472, %v3677_v12  ;;  %v2607_v13 = vpop.xlane.xlu1 %2606  ;;  %v2447_v57 = vpop.xlane.xlu0 %2446 }
 0x517   : > { %3680 = vlog2.f32 %v2607_v13  ;;  %v4875_v60 = vsub.f32 %v4727_v7, %v2447_v57 }
 0x518   : > { %v2726_v41 = vsub.f32 %v4695_v49, %v2669_v6 }
 0x519   : > { %v3679_v18 = vpop.eup %3678  ;;  %v2542_v21 = vmul.f32 1.442695, %v4875_v60 }
 0x51a   : > { %2758 = vst [vmem:[%s4270_s10 + $0x30] sm:$0xff] %v2726_v41  ;;  %v2582_v51 = vsel %vm2367_vm0, %v3679_v18, 0.0 }
 0x51b   : > { %3682 = vpow2.f32 %v2542_v21  ;;  %2636 = vadd.xlane.f32.xlu1 %v2582_v51 }
 0x51d   : > { %v3681_v23 = vpop.eup %3680 }
 0x51e   : > { %v2671_v24 = vmul.f32 0.6931472, %v3681_v23  ;;  %v2609_v25 = vpop.xlane.xlu2 %2608  ;;  %v2449_v26 = vpop.xlane.xlu1 %2448 }
 0x51f   : > { %3684 = vlog2.f32 %v2609_v25  ;;  %v4883_v7 = vsub.f32 %v4739_v16, %v2449_v26 }
 0x520   : > { %v2727_v49 = vsub.f32 %v4707_v55, %v2671_v24 }
 0x521   : > { %v3683_v34 = vpop.eup %3682  ;;  %v2544_v19 = vmul.f32 1.442695, %v4883_v7 }
 0x522   : > { %2759 = vst [vmem:[%s4270_s10 + $0x38] sm:$0xff] %v2727_v49  ;;  %v2583_v30 = vsel %vm2367_vm0, %v3683_v34, 0.0 }
 0x523   : > { %3686 = vpow2.f32 %v2544_v19  ;;  %2638 = vadd.xlane.f32.xlu2 %v2583_v30 }
 0x525   : > { %v3685_v11 = vpop.eup %3684 }
 0x526   : > { %v2673_v50 = vmul.f32 0.6931472, %v3685_v11  ;;  %v2611_v28 = vpop.xlane.xlu0 %2610  ;;  %v2451_v38 = vpop.xlane.xlu2 %2450 }
 0x527   : > { %3688 = vlog2.f32 %v2611_v28  ;;  %v4891_v16 = vsub.f32 %v4751_v33, %v2451_v38 }
 0x528   : > { %v2728_v55 = vsub.f32 %v4719_v0, %v2673_v50 }
 0x529   : > { %v3687_v39 = vpop.eup %3686  ;;  %v2546_v42 = vmul.f32 1.442695, %v4891_v16 }
 0x52a   : > { %2760 = vst [vmem:[%s4270_s10 + $0x40] sm:$0xff] %v2728_v55  ;;  %v2584_v44 = vsel %vm2367_vm0, %v3687_v39, 0.0 }
 0x52b   : > { %3690 = vpow2.f32 %v2546_v42  ;;  %2640 = vadd.xlane.f32.xlu0 %v2584_v44 }
 0x52d   : > { %v3689_v45 = vpop.eup %3688 }
 0x52e   : > { %v2675_v47 = vmul.f32 0.6931472, %v3689_v45  ;;  %v2613_v27 = vpop.xlane.xlu1 %2612  ;;  %v2453_v56 = vpop.xlane.xlu0 %2452 }
 0x52f   : > { %3692 = vlog2.f32 %v2613_v27  ;;  %v4899_v33 = vsub.f32 %v4759_v32, %v2453_v56 }
 0x530   : > { %v2729_v0 = vsub.f32 %v4731_v3, %v2675_v47 }
 0x531   : > { %v3691_v58 = vpop.eup %3690  ;;  %v2548_v59 = vmul.f32 1.442695, %v4899_v33 }
 0x532   : > { %2761 = vst [vmem:[%s4270_s10 + $0x48] sm:$0xff] %v2729_v0  ;;  %v2585_v14 = vsel %vm2367_vm0, %v3691_v58, 0.0 }
 0x533   : > { %3694 = vpow2.f32 %v2548_v59  ;;  %2642 = vadd.xlane.f32.xlu1 %v2585_v14 }
 0x535   : > { %v3693_v62 = vpop.eup %3692 }
 0x536   : > { %v2677_v52 = vmul.f32 0.6931472, %v3693_v62  ;;  %v2455_v1 = vpop.xlane.xlu1 %2454 }
 0x537   : > { %v4907_v37 = vsub.f32 %v4765_v43, %v2455_v1 }
 0x538   : > { %v2730_v32 = vsub.f32 %v4743_v15, %v2677_v52 }
 0x539   : > { %v3695_v2 = vpop.eup %3694  ;;  %v2550_v3 = vmul.f32 1.442695, %v4907_v37 }
 0x53a   : > { %2762 = vst [vmem:[%s4270_s10 + $0x50] sm:$0xff] %v2730_v32  ;;  %v2586_v4 = vsel %vm2367_vm0, %v3695_v2, 0.0 }
 0x53b   : > { %3696 = vpow2.f32 %v2550_v3  ;;  %2644 = vadd.xlane.f32.xlu2 %v2586_v4 }
 0x53e   : > { %v2457_v8 = vpop.xlane.xlu2 %2456 }
 0x53f   : > { %v4915_v12 = vsub.f32 %v4774_v53, %v2457_v8 }
 0x541   : > { %v3697_v6 = vpop.eup %3696  ;;  %v2552_v13 = vmul.f32 1.442695, %v4915_v12 }
 0x542   : > { %v2587_v43 = vsel %vm2367_vm0, %v3697_v6, 0.0 }
 0x543   : > { %3698 = vpow2.f32 %v2552_v13  ;;  %2646 = vadd.xlane.f32.xlu0 %v2587_v43 }
 0x546   : > { %v2459_v15 = vpop.xlane.xlu0 %2458 }
 0x547   : > { %v4921_v57 = vsub.f32 %v4784_v36, %v2459_v15 }
 0x549   : > { %v3699_v41 = vpop.eup %3698  ;;  %v2554_v18 = vmul.f32 1.442695, %v4921_v57 }
 0x54a   : > { %v2588_v21 = vsel %vm2367_vm0, %v3699_v41, 0.0 }
 0x54b   : > { %3700 = vpow2.f32 %v2554_v18  ;;  %2648 = vadd.xlane.f32.xlu1 %v2588_v21 }
 0x54e   : > { %v2617_v53 = vpop.xlane.xlu0 %2616  ;;  %v2461_v51 = vpop.xlane.xlu1 %2460 }
 0x54f   : > { %3702 = vlog2.f32 %v2617_v53  ;;  %v4927_v23 = vsub.f32 %v4800_v17, %v2461_v51 }
 0x551   : > { %v3701_v24 = vpop.eup %3700  ;;  %v2556_v25 = vmul.f32 1.442695, %v4927_v23 }
 0x552   : > { %v2589_v36 = vsel %vm2367_vm0, %v3701_v24, 0.0 }
 0x553   : > { %3704 = vpow2.f32 %v2556_v25  ;;  %2650 = vadd.xlane.f32.xlu2 %v2589_v36 }
 0x555   : > { %v3703_v26 = vpop.eup %3702 }
 0x556   : > { %v2681_v49 = vmul.f32 0.6931472, %v3703_v26  ;;  %v2623_v34 = vpop.xlane.xlu0 %2622  ;;  %v2463_v19 = vpop.xlane.xlu2 %2462 }
 0x557   : > { %3706 = vlog2.f32 %v2623_v34  ;;  %v4933_v30 = vsub.f32 %v4816_v35, %v2463_v19  ;;  %v2619_v11 = vpop.xlane.xlu1 %2618 }
 0x558   : > { %v2732_v17 = vsub.f32 %v4770_v48, %v2681_v49  ;;  %3708 = vlog2.f32 %v2619_v11 }
 0x559   : > { %v3705_v50 = vpop.eup %3704  ;;  %v2558_v28 = vmul.f32 1.442695, %v4933_v30 }
 0x55a   : > { %2764 = vst [vmem:[%s4270_s10 + $0x60] sm:$0xff] %v2732_v17  ;;  %v2590_v38 = vsel %vm2367_vm0, %v3705_v50, 0.0 }
 0x55b   : > { %3710 = vpow2.f32 %v2558_v28  ;;  %2652 = vadd.xlane.f32.xlu0 %v2590_v38 }
 0x55d   : > { %v3707_v55 = vpop.eup %3706 }
 0x55e   : > { %v3709_v39 = vpop.eup %3708  ;;  %v2687_v42 = vmul.f32 0.6931472, %v3707_v55  ;;  %v2615_v35 = vpop.xlane.xlu2 %2614 }
 0x55f   : > { %v2683_v44 = vmul.f32 0.6931472, %v3709_v39  ;;  %3712 = vlog2.f32 %v2615_v35  ;;  %v2625_v45 = vpop.xlane.xlu1 %2624 }
 0x560   : > { %v2735_v48 = vsub.f32 %v4789_v5, %v2687_v42  ;;  %3714 = vlog2.f32 %v2625_v45 }
 0x561   : > { %v3711_v47 = vpop.eup %3710  ;;  %v2733_v27 = vsub.f32 %v4780_v61, %v2683_v44 }
 0x562   : > { %2767 = vst [vmem:[%s4270_s10 + $0x78] sm:$0xff] %v2735_v48  ;;  %v2591_v56 = vsel %vm2367_vm0, %v3711_v47, 0.0 }
 0x563   : > { %2765 = vst [vmem:[%s4270_s10 + $0x68] sm:$0xff] %v2733_v27  ;;  %2654 = vadd.xlane.f32.xlu1 %v2591_v56 }
 0x565   : > { %v3713_v0 = vpop.eup %3712 }
 0x566   : > { %v3715_v58 = vpop.eup %3714  ;;  %v2679_v59 = vmul.f32 0.6931472, %v3713_v0  ;;  %v2621_v14 = vpop.xlane.xlu2 %2620 }
 0x567   : > { %v2689_v62 = vmul.f32 0.6931472, %v3715_v58  ;;  %3716 = vlog2.f32 %v2621_v14 }
 0x568   : > { %v2731_v5 = vsub.f32 %v4793_v46, %v2679_v59 }
 0x569   : > { %v2736_v52 = vsub.f32 %v4805_v31, %v2689_v62 }
 0x56a   : > { %2763 = vst [vmem:[%s4270_s10 + $0x58] sm:$0xff] %v2731_v5 }
 0x56b   : > { %2768 = vst [vmem:[%s4270_s10 + $0x80] sm:$0xff] %v2736_v52 }
 0x56d   : > { %v3717_v61 = vpop.eup %3716 }
 0x56e   : > { %v2685_v1 = vmul.f32 0.6931472, %v3717_v61  ;;  %v2629_v10 = vpop.xlane.xlu0 %2628  ;;  %v2627_v32 = vpop.xlane.xlu2 %2626 }
 0x56f   : > { %3718 = vlog2.f32 %v2629_v10 }
 0x570   : > { %v2734_v2 = vsub.f32 %v4809_v29, %v2685_v1  ;;  %3720 = vlog2.f32 %v2627_v32 }
 0x572   : > { %2766 = vst [vmem:[%s4270_s10 + $0x70] sm:$0xff] %v2734_v2 }
 0x575   : > { %v3719_v3 = vpop.eup %3718 }
 0x576   : > { %v3721_v4 = vpop.eup %3720  ;;  %v2693_v8 = vmul.f32 0.6931472, %v3719_v3  ;;  %v2631_v46 = vpop.xlane.xlu1 %2630 }
 0x577   : > { %v2691_v6 = vmul.f32 0.6931472, %v3721_v4  ;;  %3722 = vlog2.f32 %v2631_v46 }
 0x578   : > { %v2738_v31 = vsub.f32 %v4833_v9, %v2693_v8 }
 0x579   : > { %v2737_v13 = vsub.f32 %v4824_v54, %v2691_v6 }
 0x57a   : > { %2770 = vst [vmem:[%s4270_s10 + $0x90] sm:$0xff] %v2738_v31 }
 0x57b   : > { %2769 = vst [vmem:[%s4270_s10 + $0x88] sm:$0xff] %v2737_v13 }
 0x57d   : > { %v3723_v43 = vpop.eup %3722 }
 0x57e   : > { %v2695_v15 = vmul.f32 0.6931472, %v3723_v43  ;;  %v2633_v29 = vpop.xlane.xlu2 %2632 }
 0x57f   : > { %3724 = vlog2.f32 %v2633_v29 }
 0x580   : > { %v2739_v41 = vsub.f32 %v4841_v20, %v2695_v15 }
 0x582   : > { %2771 = vst [vmem:[%s4270_s10 + $0x98] sm:$0xff] %v2739_v41 }
 0x585   : > { %v3725_v18 = vpop.eup %3724 }
 0x586   : > { %v2697_v21 = vmul.f32 0.6931472, %v3725_v18  ;;  %v2635_v53 = vpop.xlane.xlu0 %2634 }
 0x587   : > { %3726 = vlog2.f32 %v2635_v53 }
 0x588   : > { %v2740_v51 = vsub.f32 %v4851_v22, %v2697_v21 }
 0x58a   : > { %2772 = vst [vmem:[%s4270_s10 + $0xa0] sm:$0xff] %v2740_v51 }
 0x58d   : > { %v3727_v9 = vpop.eup %3726 }
 0x58e   : > { %v2699_v54 = vmul.f32 0.6931472, %v3727_v9  ;;  %v2637_v24 = vpop.xlane.xlu1 %2636 }
 0x58f   : > { %3728 = vlog2.f32 %v2637_v24 }
 0x590   : > { %v2741_v25 = vsub.f32 %v4859_v40, %v2699_v54 }
 0x592   : > { %2773 = vst [vmem:[%s4270_s10 + $0xa8] sm:$0xff] %v2741_v25 }
 0x595   : > { %v3729_v36 = vpop.eup %3728 }
 0x596   : > { %v2701_v26 = vmul.f32 0.6931472, %v3729_v36  ;;  %v2639_v20 = vpop.xlane.xlu2 %2638 }
 0x597   : > { %3730 = vlog2.f32 %v2639_v20 }
 0x598   : > { %v2742_v49 = vsub.f32 %v4867_v63, %v2701_v26 }
 0x59a   : > { %2774 = vst [vmem:[%s4270_s10 + $0xb0] sm:$0xff] %v2742_v49 }
 0x59d   : > { %v3731_v34 = vpop.eup %3730 }
 0x59e   : > { %v2703_v19 = vmul.f32 0.6931472, %v3731_v34  ;;  %v2641_v22 = vpop.xlane.xlu0 %2640 }
 0x59f   : > { %3732 = vlog2.f32 %v2641_v22 }
 0x5a0   : > { %v2743_v11 = vsub.f32 %v4875_v60, %v2703_v19 }
 0x5a2   : > { %2775 = vst [vmem:[%s4270_s10 + $0xb8] sm:$0xff] %v2743_v11 }
 0x5a5   : > { %v3733_v17 = vpop.eup %3732 }
 0x5a6   : > { %v2705_v50 = vmul.f32 0.6931472, %v3733_v17  ;;  %v2643_v40 = vpop.xlane.xlu1 %2642 }
 0x5a7   : > { %3734 = vlog2.f32 %v2643_v40 }
 0x5a8   : > { %v2744_v28 = vsub.f32 %v4883_v7, %v2705_v50 }
 0x5aa   : > { %2776 = vst [vmem:[%s4270_s10 + $0xc0] sm:$0xff] %v2744_v28 }
 0x5ad   : > { %v3735_v38 = vpop.eup %3734 }
 0x5ae   : > { %v2707_v55 = vmul.f32 0.6931472, %v3735_v38  ;;  %v2645_v63 = vpop.xlane.xlu2 %2644 }
 0x5af   : > { %3736 = vlog2.f32 %v2645_v63 }
 0x5b0   : > { %v2745_v39 = vsub.f32 %v4891_v16, %v2707_v55 }
 0x5b2   : > { %2777 = vst [vmem:[%s4270_s10 + $0xc8] sm:$0xff] %v2745_v39 }
 0x5b5   : > { %v3737_v42 = vpop.eup %3736 }
 0x5b6   : > { %v2709_v35 = vmul.f32 0.6931472, %v3737_v42  ;;  %v2647_v60 = vpop.xlane.xlu0 %2646 }
 0x5b7   : > { %3738 = vlog2.f32 %v2647_v60 }
 0x5b8   : > { %v2746_v44 = vsub.f32 %v4899_v33, %v2709_v35 }
 0x5ba   : > { %2778 = vst [vmem:[%s4270_s10 + $0xd0] sm:$0xff] %v2746_v44 }
 0x5bd   : > { %v3739_v45 = vpop.eup %3738 }
 0x5be   : > { %v2711_v48 = vmul.f32 0.6931472, %v3739_v45  ;;  %v2649_v7 = vpop.xlane.xlu1 %2648 }
 0x5bf   : > { %3740 = vlog2.f32 %v2649_v7 }
 0x5c0   : > { %v2747_v47 = vsub.f32 %v4907_v37, %v2711_v48 }
 0x5c2   : > { %2779 = vst [vmem:[%s4270_s10 + $0xd8] sm:$0xff] %v2747_v47 }
 0x5c5   : > { %v3741_v27 = vpop.eup %3740 }
 0x5c6   : > { %v2713_v56 = vmul.f32 0.6931472, %v3741_v27  ;;  %v2651_v16 = vpop.xlane.xlu2 %2650 }
 0x5c7   : > { %3742 = vlog2.f32 %v2651_v16 }
 0x5c8   : > { %v2748_v0 = vsub.f32 %v4915_v12, %v2713_v56 }
 0x5ca   : > { %2780 = vst [vmem:[%s4270_s10 + $0xe0] sm:$0xff] %v2748_v0 }
 0x5cd   : > { %v3743_v58 = vpop.eup %3742 }
 0x5ce   : > { %v2715_v33 = vmul.f32 0.6931472, %v3743_v58  ;;  %v2653_v59 = vpop.xlane.xlu0 %2652 }
 0x5cf   : > { %3744 = vlog2.f32 %v2653_v59 }
 0x5d0   : > { %v2749_v14 = vsub.f32 %v4921_v57, %v2715_v33 }
 0x5d2   : > { %2781 = vst [vmem:[%s4270_s10 + $0xe8] sm:$0xff] %v2749_v14 }
 0x5d5   : > { %v3745_v62 = vpop.eup %3744 }
 0x5d6   : > { %v2717_v5 = vmul.f32 0.6931472, %v3745_v62  ;;  %v2655_v37 = vpop.xlane.xlu1 %2654 }
 0x5d7   : > { %3746 = vlog2.f32 %v2655_v37 }
 0x5d8   : > { %v2750_v52 = vsub.f32 %v4927_v23, %v2717_v5 }
 0x5da   : > { %2782 = vst [vmem:[%s4270_s10 + $0xf0] sm:$0xff] %v2750_v52 }
 0x5dd   : > { %v3747_v61 = vpop.eup %3746 }
 0x5de   : > { %v2719_v1 = vmul.f32 0.6931472, %v3747_v61 }
 0x5e0   : > { %v2751_v12 = vsub.f32 %v4933_v30, %v2719_v1 }
 0x5e2   : > { %2783 = vst [vmem:[%s4270_s10 + $0xf8] sm:$0xff] %v2751_v12 }
 0x5e3 PF: > { %s3459_s15 = sshll.u32 %s3978_s21, 8  ;;  %s5098_s7 = sld [smem:[#allocation36_spill]] }
 0x5e4   : > { %s2797_s3 = sshll.u32 %s4270_s10, 4  ;;  %s2785_s13 = scalar_lea.sflag [#allocation8], %s541_s11  ;;  %s2798_s3 = int_to_ptr.vmem [resolvable:$true] %s2797_s3 }
 0x5e9   : > { %s2796_s26 = scalar_lea.hbm %s5098_s7, %s3459_s15  ;;  %s3882_s21 = scalar_lea.hbm %s5098_s7, 512 }
 0x5ea   : > { %s2799_s9 = sshll.u32 %s2796_s26, 4  ;;  %s2800_s9 = int_to_ptr.hbm [resolvable:$true] %s2799_s9 }
 0x5eb   : > { %s3876_s20 = sshra.s32 %s2800_s9, 4  ;;  %s3877_s20 = int_to_ptr.hbm [resolvable:$true] %s3876_s20 }
 0x5ec   : > { %s3878_s30 = scalar_lea.hbm %s3877_s20, 256  ;;  %p3883_p6 = scmp.lt.s32.totalorder %s3877_s20, %s5098_s7 }
 0x5ed   : > { %p3879_p2 = scmp.ne.s32.totalorder %s3877_s20, %s3878_s30  ;;  %p3884_p8 = scmp.lt.s32.totalorder %s3882_s21, %s3878_s30 }
 0x5ef   : > { %p3880_p4 = pnand %p3879_p2, %p4151_p7  ;;  %p3885_p10 = por %p3884_p8, %p3883_p6 }
 0x5f1   : > { %p3881_p5 = pneg %p3880_p4 }
 0x5f3   : > { %p3886_p12 = pnand %p3885_p10, %p3881_p5 }
 0x5f5   : > { %3889 = shalt.err (!%p3886_p12)
}
 0x5f6   : > { %s4003_s11 = smov 128   ;;  %s4004_s10 = smov 8  }
 0x5f7   : > { %3488 = dma.vmem_to_hbm [thread:$0]  (%p4151_p7), %s2798_s3, 4096, %s2800_s9, %s2785_s13, %s4003_s11, %s4003_s11, %s4004_s10  }
 0x5f8 PF: > { %s5099_s8 = sld [smem:[#allocation19_spill]]  ;;  %p3512_p11 = scmp.ge.s32.totalorder %s3990_s24, 2 }
 0x5fa   : > { %p3504_p3 = pnand %p3512_p11, %p4156_p9 }
 0x5fc   : > { %p3505_p1 = pneg %p3504_p3 }
 0x5fe   : > { %s2814_s25 = sand.u32 1, %s5099_s8  }
 0x5ff   : > { %s2815_s15 = scalar_lea.sflag [#allocation8], %s2814_s25 }
 0x600   : > { %3945 = dma.done.wait (%p3505_p1), %s2815_s15, 4096  }
 0x601   : > { %3947 = vsyncadd (%p3505_p1), %s2815_s15, 4294963200  ;;  %s43_s24 = sadd.s32 1, %s3990_s24   ;;  %s5101_s1 = sld [smem:[#allocation20_spill]] }
 0x602   : > { %p40_p13 = scmp.ge.s32.totalorder %s43_s24, 6   ;;  %s5102_s17 = sld [smem:[#allocation26_spill]] }
 0x603   : > { %s5103_s12 = sld [smem:[#allocation27_spill]]  ;;  %s5107_s16 = smov %s3954_s0 }
 0x604   : > { %s5104_s20 = sld [smem:[#allocation21_spill]]  ;;  %s5112_s21 = smov %s3986_s23 }
 0x605   : > { %s5105_s22 = sld [smem:[#allocation24_spill]] }
 0x606   : > { %s5106_s26 = sld [smem:[#allocation25_spill]] }
 0x607   : > { %s5108_s0 = smov %s5101_s1  ;;  %s5109_s1 = smov %s3966_s18 }
 0x608   : > { %s5110_s18 = smov %s3970_s19  ;;  %42 = sbr.rel (!%p40_p13) target bundleno = 25 (0x19), region = 138 }
 0x609   : > { %s5111_s19 = smov %s5103_s12 }
 0x60c   : > { %s5113_s23 = smov %s5106_s26 }
 0x60d   :  { %2821 = vsyncpa [#allocation7], 1 }
 0x60e   :  { %2823 = vsyncpa [#allocation7 + $0x1], 1 }
 0x60f   :  { %2824 = vsyncpa [#allocation10], 1 }
 0x610   :  { %2825 = vsyncpa [#allocation8], 1 }
 0x611   :  { %2827 = vsyncpa [#allocation8 + $0x1], 1 }

</bundles_post_ra>
